<compile_context>
chip_gen: v7x
topology: tpu7x:2x2x1
jax: 0.10.0
libtpu: 0.0.40
codegen_flags: <defaults>
</compile_context>

<pallas_src>
import math
import numpy as np
import jax
import jax.numpy as jnp
from jax import lax
from jax.experimental import pallas as pl
from jax.experimental.pallas import tpu as pltpu

EPS = float(jnp.finfo(jnp.float32).eps)   # nn.RMSNorm(eps=None) -> finfo(f32).eps
NEG = -1e30                               # additive mask value for out-of-group scores


# ----------------------------- fused layer kernel ----------------------------
def make_layer_kernel(N, A, T, D, H, hidden):
    hd = D // H            # head dim
    dn = (((1,), (1,)), ((), ()))          # contract last dims:  q @ k^T

    def rmsnorm(xb, g):
        ms = jnp.mean(xb * xb, axis=-1, keepdims=True)
        return xb * lax.rsqrt(ms + EPS) * g

    def kernel(x_ref, tb_ref, sb_ref, cos_ref, sin_ref,
               g1_ref, twin, tbin, two, tbo,
               g2_ref, swin, sbin, swo, sbo,
               g3_ref, w1c, b1c, w2, b2,
               o_ref, ov_ref):

        def attention(xb, g_ref, win, bin_, wo, bo, bias, use_rope):
            nx = rmsnorm(xb, g_ref[...])
            # fused in-projection: one MXU pass for all of Q/K/V (and, for the
            # RoPE layer, the half-swapped Q/K columns as well)
            qkv = jnp.dot(nx, win[...], preferred_element_type=jnp.float32) + bin_[...]
            if use_rope:
                c = cos_ref[...]
                s = sin_ref[...]        # signed: -sin on x-half cols, +sin on y-half cols
                q = qkv[:, 0 * D:1 * D] * c + qkv[:, 1 * D:2 * D] * s
                k = qkv[:, 2 * D:3 * D] * c + qkv[:, 3 * D:4 * D] * s
                v = qkv[:, 4 * D:5 * D]
            else:
                q = qkv[:, 0 * D:1 * D]
                k = qkv[:, 1 * D:2 * D]
                v = qkv[:, 2 * D:3 * D]
            for h in range(H):                              # static unroll, H = 4
                h0, h1 = h * hd, (h + 1) * hd
                # softmax scale already folded into the Q weights at prep time
                sc = lax.dot_general(q[:, h0:h1], k[:, h0:h1], dn,
                                     preferred_element_type=jnp.float32)
                sc = sc + bias                              # out-of-group -> -1e30
                sc = sc - jnp.max(sc, axis=-1, keepdims=True)
                p = jnp.exp(sc)
                p = p * pl.reciprocal(jnp.sum(p, axis=-1, keepdims=True), approx=True)
                # disjoint 8-lane slice per head: no accumulate chain
                ov_ref[:, h0:h1] = jnp.dot(p, v[:, h0:h1],
                                           preferred_element_type=jnp.float32)
            proj = jnp.dot(ov_ref[...], wo[...], preferred_element_type=jnp.float32)
            return xb + proj + bo[...]                      # fused residual

        xb = x_ref[...]
        # 1) temporal attention (RoPE over t); groups = rows with equal (n, a)
        xb = attention(xb, g1_ref, twin, tbin, two, tbo, tb_ref[...], True)
        # 2) social attention (no RoPE); groups = rows with equal (n, t)
        xb = attention(xb, g2_ref, swin, sbin, swo, sbo, sb_ref[...], False)
        # 3) SwiGLU MLP + residual (gate projections fused -> lane-dense (64,128))
        nx = rmsnorm(xb, g3_ref[...])
        hc = jnp.dot(nx, w1c[...], preferred_element_type=jnp.float32) + b1c[...]
        h1v = hc[:, :hidden]
        h2v = hc[:, hidden:]
        y = (h1v * jax.nn.sigmoid(h1v)) * h2v
        o_ref[...] = xb + jnp.dot(y, w2[...], preferred_element_type=jnp.float32) + b2[...]

    return kernel


# ----------------------- host-side (one-time) preparation ---------------------
def group_bias_masks(N, A, T):
    """Additive score masks over the flat (n, a, t) row order.
    temporal: attend within same (n, a);  social: within same (n, t)."""
    r = np.arange(N * A * T)
    n = r // (A * T)
    a = (r // T) % A
    t = r % T
    tg = n * A + a
    sg = n * T + t
    tb = np.where(tg[:, None] == tg[None, :], 0.0, NEG).astype(np.float32)
    sb = np.where(sg[:, None] == sg[None, :], 0.0, NEG).astype(np.float32)
    return jnp.asarray(tb), jnp.asarray(sb)


def prepare_kernel_inputs(params, N, A, T, D):
    """Hoisted constant prep: per-head rotate-half column permutation of the
    temporal Q/K weights (scores invariant: Q and K get the same within-head
    permutation), half-swapped Q/K columns appended so RoPE needs no in-kernel
    shuffles, 1/sqrt(hd) folded into Q, fused QKV / SwiGLU-gate weights, and
    full-width RoPE tables + group-bias masks."""
    H = params['num_head']
    hd = D // H
    hh = hd // 2
    scale = 1.0 / math.sqrt(hd)

    # per-head column permutations (interleaved pairs -> [x-half | y-half] per head)
    perm = np.empty(D, np.int64)
    swap = np.empty(D, np.int64)
    for h in range(H):
        for i in range(hh):
            perm[h * hd + i] = h * hd + 2 * i             # x_i of head h
            perm[h * hd + hh + i] = h * hd + 2 * i + 1    # y_i of head h
            swap[h * hd + i] = h * hd + hh + i            # within-head half swap
            swap[h * hd + hh + i] = h * hd + i

    # full-width (R, D) RoPE tables, rows in (n, a, t) order -> position = t
    base = 10000.0
    inv = base ** (-(np.arange(hh, dtype=np.float64) * 2.0) / hd)
    ang = np.arange(T, dtype=np.float64)[:, None] * inv[None, :]          # (T, hh)
    cos_head = np.concatenate([np.cos(ang), np.cos(ang)], axis=1)         # (T, hd)
    sin_head = np.concatenate([-np.sin(ang), np.sin(ang)], axis=1)        # signed
    cos_full = jnp.asarray(np.tile(cos_head, (N * A, H)), jnp.float32)    # (R, D)
    sin_full = jnp.asarray(np.tile(sin_head, (N * A, H)), jnp.float32)

    tbias, sbias = group_bias_masks(N, A, T)

    tp, sp, mp = params['temporal'], params['social'], params['mlp']
    # temporal: permute Q/K columns to the per-head rotate-half layout,
    # fold the softmax scale into Q (and its bias), append half-swapped copies.
    tq = tp['wqT'][:, perm] * scale
    tbq = tp['bq'][:, perm] * scale
    tk = tp['wkT'][:, perm]
    tbk = tp['bk'][:, perm]
    t_win = jnp.concatenate([tq, tq[:, swap], tk, tk[:, swap], tp['wvT']], axis=1)  # (D, 5D)
    t_bin = jnp.concatenate([tbq, tbq[:, swap], tbk, tbk[:, swap], tp['bv']], axis=1)
    # social: no RoPE; just fold the scale into Q and fuse QKV.
    s_win = jnp.concatenate([sp['wqT'] * scale, sp['wkT'], sp['wvT']], axis=1)      # (D, 3D)
    s_bin = jnp.concatenate([sp['bq'] * scale, sp['bk'], sp['bv']], axis=1)
    # SwiGLU gate fusion
    w1c = jnp.concatenate([mp['w1aT'], mp['w1bT']], axis=1)                          # (D, 2*hidden)
    b1c = jnp.concatenate([mp['b1a'], mp['b1b']], axis=1)

    hidden = mp['w2T'].shape[0]
    arrays = (
        tbias, sbias, cos_full, sin_full,
        params['g1'], t_win, t_bin, tp['woT'], tp['bo'],
        params['g2'], s_win, s_bin, sp['woT'], sp['bo'],
        params['g3'], w1c, b1c, mp['w2T'], mp['b2'],
    )
    return dict(arrays=arrays, N=N, A=A, T=T, D=D, H=H, hidden=hidden)


def transformer_layer(x, prep):
    N, A, T, D = prep['N'], prep['A'], prep['T'], prep['D']
    H, hidden = prep['H'], prep['hidden']
    R = N * A * T
    arrays = prep['arrays']
    vmem_spec = pl.BlockSpec(memory_space=pltpu.MemorySpace.VMEM)   # whole-array VMEM block
    out = pl.pallas_call(
        make_layer_kernel(N, A, T, D, H, hidden),
        out_shape=jax.ShapeDtypeStruct((R, D), jnp.float32),
        in_specs=[vmem_spec] * (1 + len(arrays)),
        out_specs=vmem_spec,
        scratch_shapes=[pltpu.VMEM((R, D), jnp.float32)],   # per-head attn-output assembly buffer
        # TODO(synk): when batching many sequences (R >= 256), add a leading
        # "parallel" grid axis over the batch so v7x's second TensorCore is used.
    )(x.reshape(R, D), *arrays)
    return out.reshape(N, A, T, D)


# ------------------------------ parameter init --------------------------------
def xavier_uniform(key, out_f, in_f):
    a = math.sqrt(6.0 / (in_f + out_f))
    return jax.random.uniform(key, (out_f, in_f), jnp.float32, -a, a)


def init_mha_params(key, D):
    k1, k2 = jax.random.split(key)
    in_proj = xavier_uniform(k1, 3 * D, D)                 # torch (3D, D) layout
    wq, wk, wv = in_proj[:D], in_proj[D:2 * D], in_proj[2 * D:]
    wo = xavier_uniform(k2, D, D)
    z = jnp.zeros((1, D), jnp.float32)                     # biases init to 0
    return dict(wqT=wq.T, wkT=wk.T, wvT=wv.T, bq=z, bk=z, bv=z, woT=wo.T, bo=z)


def init_mlp_params(key, D, hidden):
    k1, k2, k3, k4 = jax.random.split(key, 4)
    b1 = 1.0 / math.sqrt(D)
    w1 = jax.random.uniform(k1, (2 * hidden, D), jnp.float32, -b1, b1)
    bb1 = jax.random.uniform(k2, (1, 2 * hidden), jnp.float32, -b1, b1)
    b2 = 1.0 / math.sqrt(hidden)
    w2 = jax.random.uniform(k3, (D, hidden), jnp.float32, -b2, b2)
    bb2 = jax.random.uniform(k4, (1, D), jnp.float32, -b2, b2)
    return dict(w1aT=w1[:hidden].T, b1a=bb1[:, :hidden],
                w1bT=w1[hidden:].T, b1b=bb1[:, hidden:], w2T=w2.T, b2=bb2)


# ----------------------------- pure-JAX reference ------------------------------
def _ref_rmsnorm(x, g):
    return x * lax.rsqrt(jnp.mean(x * x, -1, keepdims=True) + EPS) * g


def _ref_rope(x, H, hd, base=10000.0):
    """torchtune interleaved-pair RoPE on the original (unpermuted) layout."""
    B, S, D = x.shape
    hh = hd // 2
    inv = base ** (-(np.arange(hh, dtype=np.float64) * 2.0) / hd)
    ang = np.arange(S, dtype=np.float64)[:, None] * inv[None, :]
    cos = jnp.asarray(np.cos(ang), jnp.float32)[None, :, None, :]
    sin = jnp.asarray(np.sin(ang), jnp.float32)[None, :, None, :]
    xr = x.reshape(B, S, H, hh, 2)
    x0, x1 = xr[..., 0], xr[..., 1]
    out = jnp.stack([x0 * cos - x1 * sin, x1 * cos + x0 * sin], axis=-1)
    return out.reshape(B, S, D)


def _ref_mha(x, prm, H, use_rope):
    B, S, D = x.shape
    hd = D // H
    q = x @ prm['wqT'] + prm['bq']
    k = x @ prm['wkT'] + prm['bk']
    v = x @ prm['wvT'] + prm['bv']
    if use_rope:
        q = _ref_rope(q, H, hd)
        k = _ref_rope(k, H, hd)
    qh = q.reshape(B, S, H, hd).transpose(0, 2, 1, 3)
    kh = k.reshape(B, S, H, hd).transpose(0, 2, 1, 3)
    vh = v.reshape(B, S, H, hd).transpose(0, 2, 1, 3)
    sc = jnp.einsum('bhqd,bhkd->bhqk', qh, kh) / math.sqrt(hd)
    p = jax.nn.softmax(sc, axis=-1)
    o = jnp.einsum('bhqk,bhkd->bhqd', p, vh).transpose(0, 2, 1, 3).reshape(B, S, D)
    return o @ prm['woT'] + prm['bo']


def _ref_layer(x, params):
    N, A, T, D = x.shape
    H = params['num_head']
    xt = x.reshape(N * A, T, D)
    xt = xt + _ref_mha(_ref_rmsnorm(xt, params['g1']), params['temporal'], H, True)
    xs = xt.reshape(N, A, T, D).transpose(0, 2, 1, 3).reshape(N * T, A, D)
    xs = xs + _ref_mha(_ref_rmsnorm(xs, params['g2']), params['social'], H, False)
    xm = xs.reshape(N, T, A, D).transpose(0, 2, 1, 3).reshape(N * A, T, D)
    nm = _ref_rmsnorm(xm, params['g3'])
    prm = params['mlp']
    h1 = nm @ prm['w1aT'] + prm['b1a']
    h2 = nm @ prm['w1bT'] + prm['b1b']
    xo = xm + (jax.nn.silu(h1) * h2) @ prm['w2T'] + prm['b2']
    return xo.reshape(N, A, T, D)


# ----------------------------------- main --------------------------------------
if __name__ == "__main__":
    N, A, T, D = 2, 4, 8, 32          # batch, agents, time, embed_dim
    H, hidden = 4, 64                 # num_head, hidden_dim
    key = jax.random.PRNGKey(0)
    kx, kt, ks, km = jax.random.split(key, 4)
    x = jax.random.normal(kx, (N, A, T, D), jnp.float32)

    params = dict(
        num_head=H,
        g1=jnp.ones((1, D), jnp.float32),   # RMSNorm weights (default init = 1)
        g2=jnp.ones((1, D), jnp.float32),
        g3=jnp.ones((1, D), jnp.float32),
        temporal=init_mha_params(kt, D),
        social=init_mha_params(ks, D),
        mlp=init_mlp_params(km, D, hidden),
    )

    prep = prepare_kernel_inputs(params, N, A, T, D)   # hoisted one-time prep
    out = jax.block_until_ready(transformer_layer(x, prep))
    ref = jax.block_until_ready(_ref_layer(x, params))
    assert out.shape == (N, A, T, D)
    assert bool(jnp.all(jnp.isfinite(out)))
    # tolerance covers TPU default-precision matmuls in the XLA reference path
    # and the approximate (EUP) softmax reciprocal in the kernel
    if not jnp.allclose(out, ref, rtol=2e-2, atol=2e-2):
        raise AssertionError("Pallas output mismatch vs JAX reference")
    # TODO(synk): dropout layers are modelled as identity (inference semantics).
    print("KERNEL_OK")
</pallas_src>

<mosaic_0001>
module attributes {stable_mosaic.version = 11 : i64} {
  func.func @kernel(%arg0: memref<64x32xf32, #tpu.memory_space<vmem>>, %arg1: memref<64x64xf32, #tpu.memory_space<vmem>>, %arg2: memref<64x64xf32, #tpu.memory_space<vmem>>, %arg3: memref<64x32xf32, #tpu.memory_space<vmem>>, %arg4: memref<64x32xf32, #tpu.memory_space<vmem>>, %arg5: memref<1x32xf32, #tpu.memory_space<vmem>>, %arg6: memref<32x160xf32, #tpu.memory_space<vmem>>, %arg7: memref<1x160xf32, #tpu.memory_space<vmem>>, %arg8: memref<32x32xf32, #tpu.memory_space<vmem>>, %arg9: memref<1x32xf32, #tpu.memory_space<vmem>>, %arg10: memref<1x32xf32, #tpu.memory_space<vmem>>, %arg11: memref<32x96xf32, #tpu.memory_space<vmem>>, %arg12: memref<1x96xf32, #tpu.memory_space<vmem>>, %arg13: memref<32x32xf32, #tpu.memory_space<vmem>>, %arg14: memref<1x32xf32, #tpu.memory_space<vmem>>, %arg15: memref<1x32xf32, #tpu.memory_space<vmem>>, %arg16: memref<32x128xf32, #tpu.memory_space<vmem>>, %arg17: memref<1x128xf32, #tpu.memory_space<vmem>>, %arg18: memref<64x32xf32, #tpu.memory_space<vmem>>, %arg19: memref<1x32xf32, #tpu.memory_space<vmem>>, %arg20: memref<64x32xf32, #tpu.memory_space<vmem>>, %arg21: memref<64x32xf32, #tpu.memory_space<vmem>>) attributes {dimension_semantics = [], scalar_prefetch = 0 : i64, scratch_operands = 1 : i64, tpu.core_type = #tpu.core_type<tc>} {
    %c0 = arith.constant 0 : index
    %c0_0 = arith.constant 0 : index
    %0 = vector.load %arg0[%c0, %c0_0] : memref<64x32xf32, #tpu.memory_space<vmem>>, vector<64x32xf32>
    %c0_1 = arith.constant 0 : index
    %c0_2 = arith.constant 0 : index
    %1 = vector.load %arg1[%c0_1, %c0_2] : memref<64x64xf32, #tpu.memory_space<vmem>>, vector<64x64xf32>
    %c0_3 = arith.constant 0 : index
    %c0_4 = arith.constant 0 : index
    %2 = vector.load %arg5[%c0_3, %c0_4] : memref<1x32xf32, #tpu.memory_space<vmem>>, vector<1x32xf32>
    %3 = arith.mulf %0, %0 : vector<64x32xf32>
    %cst = arith.constant dense<0.000000e+00> : vector<64xf32>
    %4 = vector.multi_reduction <add>, %3, %cst [1] : vector<64x32xf32> to vector<64xf32>
    %5 = vector.shape_cast %4 : vector<64xf32> to vector<64x1xf32>
    %cst_5 = arith.constant 3.200000e+01 : f32
    %6 = vector.broadcast %cst_5 : f32 to vector<64x1xf32>
    %7 = arith.divf %5, %6 : vector<64x1xf32>
    %cst_6 = arith.constant 1.1920929E-7 : f32
    %8 = vector.broadcast %cst_6 : f32 to vector<64x1xf32>
    %9 = arith.addf %7, %8 : vector<64x1xf32>
    %10 = math.rsqrt %9 : vector<64x1xf32>
    %11 = vector.broadcast %10 : vector<64x1xf32> to vector<64x32xf32>
    %12 = arith.mulf %0, %11 : vector<64x32xf32>
    %13 = vector.broadcast %2 : vector<1x32xf32> to vector<64x32xf32>
    %14 = arith.mulf %12, %13 : vector<64x32xf32>
    %c0_7 = arith.constant 0 : index
    %c0_8 = arith.constant 0 : index
    %15 = vector.load %arg6[%c0_7, %c0_8] : memref<32x160xf32, #tpu.memory_space<vmem>>, vector<32x160xf32>
    %cst_9 = arith.constant dense<0.000000e+00> : vector<64x160xf32>
    %16 = tpu.matmul %14, %15, %cst_9 {dimension_numbers = #tpu.dot_dimension_numbers<[1], [0], [0], [1], [0, 0, 1, 1], [], []>} : vector<64x32xf32>, vector<32x160xf32>, vector<64x160xf32> -> vector<64x160xf32>
    %c0_10 = arith.constant 0 : index
    %c0_11 = arith.constant 0 : index
    %17 = vector.load %arg7[%c0_10, %c0_11] : memref<1x160xf32, #tpu.memory_space<vmem>>, vector<1x160xf32>
    %18 = vector.broadcast %17 : vector<1x160xf32> to vector<64x160xf32>
    %19 = arith.addf %16, %18 : vector<64x160xf32>
    %c0_12 = arith.constant 0 : index
    %c0_13 = arith.constant 0 : index
    %20 = vector.load %arg3[%c0_12, %c0_13] : memref<64x32xf32, #tpu.memory_space<vmem>>, vector<64x32xf32>
    %c0_14 = arith.constant 0 : index
    %c0_15 = arith.constant 0 : index
    %21 = vector.load %arg4[%c0_14, %c0_15] : memref<64x32xf32, #tpu.memory_space<vmem>>, vector<64x32xf32>
    %22 = vector.extract_strided_slice %19 {offsets = [0, 0], sizes = [64, 32], strides = [1, 1]} : vector<64x160xf32> to vector<64x32xf32>
    %23 = arith.mulf %22, %20 : vector<64x32xf32>
    %24 = vector.extract_strided_slice %19 {offsets = [0, 32], sizes = [64, 32], strides = [1, 1]} : vector<64x160xf32> to vector<64x32xf32>
    %25 = arith.mulf %24, %21 : vector<64x32xf32>
    %26 = arith.addf %23, %25 : vector<64x32xf32>
    %27 = vector.extract_strided_slice %19 {offsets = [0, 64], sizes = [64, 32], strides = [1, 1]} : vector<64x160xf32> to vector<64x32xf32>
    %28 = arith.mulf %27, %20 : vector<64x32xf32>
    %29 = vector.extract_strided_slice %19 {offsets = [0, 96], sizes = [64, 32], strides = [1, 1]} : vector<64x160xf32> to vector<64x32xf32>
    %30 = arith.mulf %29, %21 : vector<64x32xf32>
    %31 = arith.addf %28, %30 : vector<64x32xf32>
    %32 = vector.extract_strided_slice %19 {offsets = [0, 128], sizes = [64, 32], strides = [1, 1]} : vector<64x160xf32> to vector<64x32xf32>
    %33 = vector.extract_strided_slice %26 {offsets = [0, 0], sizes = [64, 8], strides = [1, 1]} : vector<64x32xf32> to vector<64x8xf32>
    %34 = vector.extract_strided_slice %31 {offsets = [0, 0], sizes = [64, 8], strides = [1, 1]} : vector<64x32xf32> to vector<64x8xf32>
    %cst_16 = arith.constant dense<0.000000e+00> : vector<64x64xf32>
    %35 = tpu.matmul %33, %34, %cst_16 {dimension_numbers = #tpu.dot_dimension_numbers<[1], [1], [0], [0], [0, 0, 1, 0], [], []>} : vector<64x8xf32>, vector<64x8xf32>, vector<64x64xf32> -> vector<64x64xf32>
    %36 = arith.addf %35, %1 : vector<64x64xf32>
    %cst_17 = arith.constant dense<0xFF800000> : vector<64xf32>
    %37 = vector.multi_reduction <maximumf>, %36, %cst_17 [1] : vector<64x64xf32> to vector<64xf32>
    %38 = vector.shape_cast %37 : vector<64xf32> to vector<64x1xf32>
    %39 = vector.broadcast %38 : vector<64x1xf32> to vector<64x64xf32>
    %40 = arith.subf %36, %39 : vector<64x64xf32>
    %41 = math.exp %40 : vector<64x64xf32>
    %cst_18 = arith.constant dense<0.000000e+00> : vector<64xf32>
    %42 = vector.multi_reduction <add>, %41, %cst_18 [1] : vector<64x64xf32> to vector<64xf32>
    %43 = vector.shape_cast %42 : vector<64xf32> to vector<64x1xf32>
    %44 = tpu.reciprocal %43 {approx = true} : vector<64x1xf32> -> vector<64x1xf32>
    %45 = vector.broadcast %44 : vector<64x1xf32> to vector<64x64xf32>
    %46 = arith.mulf %41, %45 : vector<64x64xf32>
    %47 = vector.extract_strided_slice %32 {offsets = [0, 0], sizes = [64, 8], strides = [1, 1]} : vector<64x32xf32> to vector<64x8xf32>
    %cst_19 = arith.constant dense<0.000000e+00> : vector<64x8xf32>
    %48 = tpu.matmul %46, %47, %cst_19 {dimension_numbers = #tpu.dot_dimension_numbers<[1], [0], [0], [1], [0, 0, 1, 1], [], []>} : vector<64x64xf32>, vector<64x8xf32>, vector<64x8xf32> -> vector<64x8xf32>
    %c0_20 = arith.constant 0 : index
    %c0_21 = arith.constant 0 : index
    %49 = vector.load %arg21[%c0_20, %c0_21] : memref<64x32xf32, #tpu.memory_space<vmem>>, vector<64x8xf32>
    tpu.vector_store %arg21[%c0_20, %c0_21], %48 {strides = array<i32>} : memref<64x32xf32, #tpu.memory_space<vmem>>, vector<64x8xf32>,
    %50 = vector.extract_strided_slice %26 {offsets = [0, 8], sizes = [64, 8], strides = [1, 1]} : vector<64x32xf32> to vector<64x8xf32>
    %51 = vector.extract_strided_slice %31 {offsets = [0, 8], sizes = [64, 8], strides = [1, 1]} : vector<64x32xf32> to vector<64x8xf32>
    %cst_22 = arith.constant dense<0.000000e+00> : vector<64x64xf32>
    %52 = tpu.matmul %50, %51, %cst_22 {dimension_numbers = #tpu.dot_dimension_numbers<[1], [1], [0], [0], [0, 0, 1, 0], [], []>} : vector<64x8xf32>, vector<64x8xf32>, vector<64x64xf32> -> vector<64x64xf32>
    %53 = arith.addf %52, %1 : vector<64x64xf32>
    %cst_23 = arith.constant dense<0xFF800000> : vector<64xf32>
    %54 = vector.multi_reduction <maximumf>, %53, %cst_23 [1] : vector<64x64xf32> to vector<64xf32>
    %55 = vector.shape_cast %54 : vector<64xf32> to vector<64x1xf32>
    %56 = vector.broadcast %55 : vector<64x1xf32> to vector<64x64xf32>
    %57 = arith.subf %53, %56 : vector<64x64xf32>
    %58 = math.exp %57 : vector<64x64xf32>
    %cst_24 = arith.constant dense<0.000000e+00> : vector<64xf32>
    %59 = vector.multi_reduction <add>, %58, %cst_24 [1] : vector<64x64xf32> to vector<64xf32>
    %60 = vector.shape_cast %59 : vector<64xf32> to vector<64x1xf32>
    %61 = tpu.reciprocal %60 {approx = true} : vector<64x1xf32> -> vector<64x1xf32>
    %62 = vector.broadcast %61 : vector<64x1xf32> to vector<64x64xf32>
    %63 = arith.mulf %58, %62 : vector<64x64xf32>
    %64 = vector.extract_strided_slice %32 {offsets = [0, 8], sizes = [64, 8], strides = [1, 1]} : vector<64x32xf32> to vector<64x8xf32>
    %cst_25 = arith.constant dense<0.000000e+00> : vector<64x8xf32>
    %65 = tpu.matmul %63, %64, %cst_25 {dimension_numbers = #tpu.dot_dimension_numbers<[1], [0], [0], [1], [0, 0, 1, 1], [], []>} : vector<64x64xf32>, vector<64x8xf32>, vector<64x8xf32> -> vector<64x8xf32>
    %c0_26 = arith.constant 0 : index
    %c8 = arith.constant 8 : index
    %66 = vector.load %arg21[%c0_26, %c8] : memref<64x32xf32, #tpu.memory_space<vmem>>, vector<64x8xf32>
    tpu.vector_store %arg21[%c0_26, %c8], %65 {strides = array<i32>} : memref<64x32xf32, #tpu.memory_space<vmem>>, vector<64x8xf32>,
    %67 = vector.extract_strided_slice %26 {offsets = [0, 16], sizes = [64, 8], strides = [1, 1]} : vector<64x32xf32> to vector<64x8xf32>
    %68 = vector.extract_strided_slice %31 {offsets = [0, 16], sizes = [64, 8], strides = [1, 1]} : vector<64x32xf32> to vector<64x8xf32>
    %cst_27 = arith.constant dense<0.000000e+00> : vector<64x64xf32>
    %69 = tpu.matmul %67, %68, %cst_27 {dimension_numbers = #tpu.dot_dimension_numbers<[1], [1], [0], [0], [0, 0, 1, 0], [], []>} : vector<64x8xf32>, vector<64x8xf32>, vector<64x64xf32> -> vector<64x64xf32>
    %70 = arith.addf %69, %1 : vector<64x64xf32>
    %cst_28 = arith.constant dense<0xFF800000> : vector<64xf32>
    %71 = vector.multi_reduction <maximumf>, %70, %cst_28 [1] : vector<64x64xf32> to vector<64xf32>
    %72 = vector.shape_cast %71 : vector<64xf32> to vector<64x1xf32>
    %73 = vector.broadcast %72 : vector<64x1xf32> to vector<64x64xf32>
    %74 = arith.subf %70, %73 : vector<64x64xf32>
    %75 = math.exp %74 : vector<64x64xf32>
    %cst_29 = arith.constant dense<0.000000e+00> : vector<64xf32>
    %76 = vector.multi_reduction <add>, %75, %cst_29 [1] : vector<64x64xf32> to vector<64xf32>
    %77 = vector.shape_cast %76 : vector<64xf32> to vector<64x1xf32>
    %78 = tpu.reciprocal %77 {approx = true} : vector<64x1xf32> -> vector<64x1xf32>
    %79 = vector.broadcast %78 : vector<64x1xf32> to vector<64x64xf32>
    %80 = arith.mulf %75, %79 : vector<64x64xf32>
    %81 = vector.extract_strided_slice %32 {offsets = [0, 16], sizes = [64, 8], strides = [1, 1]} : vector<64x32xf32> to vector<64x8xf32>
    %cst_30 = arith.constant dense<0.000000e+00> : vector<64x8xf32>
    %82 = tpu.matmul %80, %81, %cst_30 {dimension_numbers = #tpu.dot_dimension_numbers<[1], [0], [0], [1], [0, 0, 1, 1], [], []>} : vector<64x64xf32>, vector<64x8xf32>, vector<64x8xf32> -> vector<64x8xf32>
    %c0_31 = arith.constant 0 : index
    %c16 = arith.constant 16 : index
    %83 = vector.load %arg21[%c0_31, %c16] : memref<64x32xf32, #tpu.memory_space<vmem>>, vector<64x8xf32>
    tpu.vector_store %arg21[%c0_31, %c16], %82 {strides = array<i32>} : memref<64x32xf32, #tpu.memory_space<vmem>>, vector<64x8xf32>,
    %84 = vector.extract_strided_slice %26 {offsets = [0, 24], sizes = [64, 8], strides = [1, 1]} : vector<64x32xf32> to vector<64x8xf32>
    %85 = vector.extract_strided_slice %31 {offsets = [0, 24], sizes = [64, 8], strides = [1, 1]} : vector<64x32xf32> to vector<64x8xf32>
    %cst_32 = arith.constant dense<0.000000e+00> : vector<64x64xf32>
    %86 = tpu.matmul %84, %85, %cst_32 {dimension_numbers = #tpu.dot_dimension_numbers<[1], [1], [0], [0], [0, 0, 1, 0], [], []>} : vector<64x8xf32>, vector<64x8xf32>, vector<64x64xf32> -> vector<64x64xf32>
    %87 = arith.addf %86, %1 : vector<64x64xf32>
    %cst_33 = arith.constant dense<0xFF800000> : vector<64xf32>
    %88 = vector.multi_reduction <maximumf>, %87, %cst_33 [1] : vector<64x64xf32> to vector<64xf32>
    %89 = vector.shape_cast %88 : vector<64xf32> to vector<64x1xf32>
    %90 = vector.broadcast %89 : vector<64x1xf32> to vector<64x64xf32>
    %91 = arith.subf %87, %90 : vector<64x64xf32>
    %92 = math.exp %91 : vector<64x64xf32>
    %cst_34 = arith.constant dense<0.000000e+00> : vector<64xf32>
    %93 = vector.multi_reduction <add>, %92, %cst_34 [1] : vector<64x64xf32> to vector<64xf32>
    %94 = vector.shape_cast %93 : vector<64xf32> to vector<64x1xf32>
    %95 = tpu.reciprocal %94 {approx = true} : vector<64x1xf32> -> vector<64x1xf32>
    %96 = vector.broadcast %95 : vector<64x1xf32> to vector<64x64xf32>
    %97 = arith.mulf %92, %96 : vector<64x64xf32>
    %98 = vector.extract_strided_slice %32 {offsets = [0, 24], sizes = [64, 8], strides = [1, 1]} : vector<64x32xf32> to vector<64x8xf32>
    %cst_35 = arith.constant dense<0.000000e+00> : vector<64x8xf32>
    %99 = tpu.matmul %97, %98, %cst_35 {dimension_numbers = #tpu.dot_dimension_numbers<[1], [0], [0], [1], [0, 0, 1, 1], [], []>} : vector<64x64xf32>, vector<64x8xf32>, vector<64x8xf32> -> vector<64x8xf32>
    %c0_36 = arith.constant 0 : index
    %c24 = arith.constant 24 : index
    %100 = vector.load %arg21[%c0_36, %c24] : memref<64x32xf32, #tpu.memory_space<vmem>>, vector<64x8xf32>
    tpu.vector_store %arg21[%c0_36, %c24], %99 {strides = array<i32>} : memref<64x32xf32, #tpu.memory_space<vmem>>, vector<64x8xf32>,
    %c0_37 = arith.constant 0 : index
    %c0_38 = arith.constant 0 : index
    %101 = vector.load %arg21[%c0_37, %c0_38] : memref<64x32xf32, #tpu.memory_space<vmem>>, vector<64x32xf32>
    %c0_39 = arith.constant 0 : index
    %c0_40 = arith.constant 0 : index
    %102 = vector.load %arg8[%c0_39, %c0_40] : memref<32x32xf32, #tpu.memory_space<vmem>>, vector<32x32xf32>
    %cst_41 = arith.constant dense<0.000000e+00> : vector<64x32xf32>
    %103 = tpu.matmul %101, %102, %cst_41 {dimension_numbers = #tpu.dot_dimension_numbers<[1], [0], [0], [1], [0, 0, 1, 1], [], []>} : vector<64x32xf32>, vector<32x32xf32>, vector<64x32xf32> -> vector<64x32xf32>
    %104 = arith.addf %0, %103 : vector<64x32xf32>
    %c0_42 = arith.constant 0 : index
    %c0_43 = arith.constant 0 : index
    %105 = vector.load %arg9[%c0_42, %c0_43] : memref<1x32xf32, #tpu.memory_space<vmem>>, vector<1x32xf32>
    %106 = vector.broadcast %105 : vector<1x32xf32> to vector<64x32xf32>
    %107 = arith.addf %104, %106 : vector<64x32xf32>
    %c0_44 = arith.constant 0 : index
    %c0_45 = arith.constant 0 : index
    %108 = vector.load %arg2[%c0_44, %c0_45] : memref<64x64xf32, #tpu.memory_space<vmem>>, vector<64x64xf32>
    %c0_46 = arith.constant 0 : index
    %c0_47 = arith.constant 0 : index
    %109 = vector.load %arg10[%c0_46, %c0_47] : memref<1x32xf32, #tpu.memory_space<vmem>>, vector<1x32xf32>
    %110 = arith.mulf %107, %107 : vector<64x32xf32>
    %cst_48 = arith.constant dense<0.000000e+00> : vector<64xf32>
    %111 = vector.multi_reduction <add>, %110, %cst_48 [1] : vector<64x32xf32> to vector<64xf32>
    %112 = vector.shape_cast %111 : vector<64xf32> to vector<64x1xf32>
    %cst_49 = arith.constant 3.200000e+01 : f32
    %113 = vector.broadcast %cst_49 : f32 to vector<64x1xf32>
    %114 = arith.divf %112, %113 : vector<64x1xf32>
    %cst_50 = arith.constant 1.1920929E-7 : f32
    %115 = vector.broadcast %cst_50 : f32 to vector<64x1xf32>
    %116 = arith.addf %114, %115 : vector<64x1xf32>
    %117 = math.rsqrt %116 : vector<64x1xf32>
    %118 = vector.broadcast %117 : vector<64x1xf32> to vector<64x32xf32>
    %119 = arith.mulf %107, %118 : vector<64x32xf32>
    %120 = vector.broadcast %109 : vector<1x32xf32> to vector<64x32xf32>
    %121 = arith.mulf %119, %120 : vector<64x32xf32>
    %c0_51 = arith.constant 0 : index
    %c0_52 = arith.constant 0 : index
    %122 = vector.load %arg11[%c0_51, %c0_52] : memref<32x96xf32, #tpu.memory_space<vmem>>, vector<32x96xf32>
    %cst_53 = arith.constant dense<0.000000e+00> : vector<64x96xf32>
    %123 = tpu.matmul %121, %122, %cst_53 {dimension_numbers = #tpu.dot_dimension_numbers<[1], [0], [0], [1], [0, 0, 1, 1], [], []>} : vector<64x32xf32>, vector<32x96xf32>, vector<64x96xf32> -> vector<64x96xf32>
    %c0_54 = arith.constant 0 : index
    %c0_55 = arith.constant 0 : index
    %124 = vector.load %arg12[%c0_54, %c0_55] : memref<1x96xf32, #tpu.memory_space<vmem>>, vector<1x96xf32>
    %125 = vector.broadcast %124 : vector<1x96xf32> to vector<64x96xf32>
    %126 = arith.addf %123, %125 : vector<64x96xf32>
    %127 = vector.extract_strided_slice %126 {offsets = [0, 0], sizes = [64, 32], strides = [1, 1]} : vector<64x96xf32> to vector<64x32xf32>
    %128 = vector.extract_strided_slice %126 {offsets = [0, 32], sizes = [64, 32], strides = [1, 1]} : vector<64x96xf32> to vector<64x32xf32>
    %129 = vector.extract_strided_slice %126 {offsets = [0, 64], sizes = [64, 32], strides = [1, 1]} : vector<64x96xf32> to vector<64x32xf32>
    %130 = vector.extract_strided_slice %127 {offsets = [0, 0], sizes = [64, 8], strides = [1, 1]} : vector<64x32xf32> to vector<64x8xf32>
    %131 = vector.extract_strided_slice %128 {offsets = [0, 0], sizes = [64, 8], strides = [1, 1]} : vector<64x32xf32> to vector<64x8xf32>
    %cst_56 = arith.constant dense<0.000000e+00> : vector<64x64xf32>
    %132 = tpu.matmul %130, %131, %cst_56 {dimension_numbers = #tpu.dot_dimension_numbers<[1], [1], [0], [0], [0, 0, 1, 0], [], []>} : vector<64x8xf32>, vector<64x8xf32>, vector<64x64xf32> -> vector<64x64xf32>
    %133 = arith.addf %132, %108 : vector<64x64xf32>
    %cst_57 = arith.constant dense<0xFF800000> : vector<64xf32>
    %134 = vector.multi_reduction <maximumf>, %133, %cst_57 [1] : vector<64x64xf32> to vector<64xf32>
    %135 = vector.shape_cast %134 : vector<64xf32> to vector<64x1xf32>
    %136 = vector.broadcast %135 : vector<64x1xf32> to vector<64x64xf32>
    %137 = arith.subf %133, %136 : vector<64x64xf32>
    %138 = math.exp %137 : vector<64x64xf32>
    %cst_58 = arith.constant dense<0.000000e+00> : vector<64xf32>
    %139 = vector.multi_reduction <add>, %138, %cst_58 [1] : vector<64x64xf32> to vector<64xf32>
    %140 = vector.shape_cast %139 : vector<64xf32> to vector<64x1xf32>
    %141 = tpu.reciprocal %140 {approx = true} : vector<64x1xf32> -> vector<64x1xf32>
    %142 = vector.broadcast %141 : vector<64x1xf32> to vector<64x64xf32>
    %143 = arith.mulf %138, %142 : vector<64x64xf32>
    %144 = vector.extract_strided_slice %129 {offsets = [0, 0], sizes = [64, 8], strides = [1, 1]} : vector<64x32xf32> to vector<64x8xf32>
    %cst_59 = arith.constant dense<0.000000e+00> : vector<64x8xf32>
    %145 = tpu.matmul %143, %144, %cst_59 {dimension_numbers = #tpu.dot_dimension_numbers<[1], [0], [0], [1], [0, 0, 1, 1], [], []>} : vector<64x64xf32>, vector<64x8xf32>, vector<64x8xf32> -> vector<64x8xf32>
    %c0_60 = arith.constant 0 : index
    %c0_61 = arith.constant 0 : index
    %146 = vector.load %arg21[%c0_60, %c0_61] : memref<64x32xf32, #tpu.memory_space<vmem>>, vector<64x8xf32>
    tpu.vector_store %arg21[%c0_60, %c0_61], %145 {strides = array<i32>} : memref<64x32xf32, #tpu.memory_space<vmem>>, vector<64x8xf32>,
    %147 = vector.extract_strided_slice %127 {offsets = [0, 8], sizes = [64, 8], strides = [1, 1]} : vector<64x32xf32> to vector<64x8xf32>
    %148 = vector.extract_strided_slice %128 {offsets = [0, 8], sizes = [64, 8], strides = [1, 1]} : vector<64x32xf32> to vector<64x8xf32>
    %cst_62 = arith.constant dense<0.000000e+00> : vector<64x64xf32>
    %149 = tpu.matmul %147, %148, %cst_62 {dimension_numbers = #tpu.dot_dimension_numbers<[1], [1], [0], [0], [0, 0, 1, 0], [], []>} : vector<64x8xf32>, vector<64x8xf32>, vector<64x64xf32> -> vector<64x64xf32>
    %150 = arith.addf %149, %108 : vector<64x64xf32>
    %cst_63 = arith.constant dense<0xFF800000> : vector<64xf32>
    %151 = vector.multi_reduction <maximumf>, %150, %cst_63 [1] : vector<64x64xf32> to vector<64xf32>
    %152 = vector.shape_cast %151 : vector<64xf32> to vector<64x1xf32>
    %153 = vector.broadcast %152 : vector<64x1xf32> to vector<64x64xf32>
    %154 = arith.subf %150, %153 : vector<64x64xf32>
    %155 = math.exp %154 : vector<64x64xf32>
    %cst_64 = arith.constant dense<0.000000e+00> : vector<64xf32>
    %156 = vector.multi_reduction <add>, %155, %cst_64 [1] : vector<64x64xf32> to vector<64xf32>
    %157 = vector.shape_cast %156 : vector<64xf32> to vector<64x1xf32>
    %158 = tpu.reciprocal %157 {approx = true} : vector<64x1xf32> -> vector<64x1xf32>
    %159 = vector.broadcast %158 : vector<64x1xf32> to vector<64x64xf32>
    %160 = arith.mulf %155, %159 : vector<64x64xf32>
    %161 = vector.extract_strided_slice %129 {offsets = [0, 8], sizes = [64, 8], strides = [1, 1]} : vector<64x32xf32> to vector<64x8xf32>
    %cst_65 = arith.constant dense<0.000000e+00> : vector<64x8xf32>
    %162 = tpu.matmul %160, %161, %cst_65 {dimension_numbers = #tpu.dot_dimension_numbers<[1], [0], [0], [1], [0, 0, 1, 1], [], []>} : vector<64x64xf32>, vector<64x8xf32>, vector<64x8xf32> -> vector<64x8xf32>
    %c0_66 = arith.constant 0 : index
    %c8_67 = arith.constant 8 : index
    %163 = vector.load %arg21[%c0_66, %c8_67] : memref<64x32xf32, #tpu.memory_space<vmem>>, vector<64x8xf32>
    tpu.vector_store %arg21[%c0_66, %c8_67], %162 {strides = array<i32>} : memref<64x32xf32, #tpu.memory_space<vmem>>, vector<64x8xf32>,
    %164 = vector.extract_strided_slice %127 {offsets = [0, 16], sizes = [64, 8], strides = [1, 1]} : vector<64x32xf32> to vector<64x8xf32>
    %165 = vector.extract_strided_slice %128 {offsets = [0, 16], sizes = [64, 8], strides = [1, 1]} : vector<64x32xf32> to vector<64x8xf32>
    %cst_68 = arith.constant dense<0.000000e+00> : vector<64x64xf32>
    %166 = tpu.matmul %164, %165, %cst_68 {dimension_numbers = #tpu.dot_dimension_numbers<[1], [1], [0], [0], [0, 0, 1, 0], [], []>} : vector<64x8xf32>, vector<64x8xf32>, vector<64x64xf32> -> vector<64x64xf32>
    %167 = arith.addf %166, %108 : vector<64x64xf32>
    %cst_69 = arith.constant dense<0xFF800000> : vector<64xf32>
    %168 = vector.multi_reduction <maximumf>, %167, %cst_69 [1] : vector<64x64xf32> to vector<64xf32>
    %169 = vector.shape_cast %168 : vector<64xf32> to vector<64x1xf32>
    %170 = vector.broadcast %169 : vector<64x1xf32> to vector<64x64xf32>
    %171 = arith.subf %167, %170 : vector<64x64xf32>
    %172 = math.exp %171 : vector<64x64xf32>
    %cst_70 = arith.constant dense<0.000000e+00> : vector<64xf32>
    %173 = vector.multi_reduction <add>, %172, %cst_70 [1] : vector<64x64xf32> to vector<64xf32>
    %174 = vector.shape_cast %173 : vector<64xf32> to vector<64x1xf32>
    %175 = tpu.reciprocal %174 {approx = true} : vector<64x1xf32> -> vector<64x1xf32>
    %176 = vector.broadcast %175 : vector<64x1xf32> to vector<64x64xf32>
    %177 = arith.mulf %172, %176 : vector<64x64xf32>
    %178 = vector.extract_strided_slice %129 {offsets = [0, 16], sizes = [64, 8], strides = [1, 1]} : vector<64x32xf32> to vector<64x8xf32>
    %cst_71 = arith.constant dense<0.000000e+00> : vector<64x8xf32>
    %179 = tpu.matmul %177, %178, %cst_71 {dimension_numbers = #tpu.dot_dimension_numbers<[1], [0], [0], [1], [0, 0, 1, 1], [], []>} : vector<64x64xf32>, vector<64x8xf32>, vector<64x8xf32> -> vector<64x8xf32>
    %c0_72 = arith.constant 0 : index
    %c16_73 = arith.constant 16 : index
    %180 = vector.load %arg21[%c0_72, %c16_73] : memref<64x32xf32, #tpu.memory_space<vmem>>, vector<64x8xf32>
    tpu.vector_store %arg21[%c0_72, %c16_73], %179 {strides = array<i32>} : memref<64x32xf32, #tpu.memory_space<vmem>>, vector<64x8xf32>,
    %181 = vector.extract_strided_slice %127 {offsets = [0, 24], sizes = [64, 8], strides = [1, 1]} : vector<64x32xf32> to vector<64x8xf32>
    %182 = vector.extract_strided_slice %128 {offsets = [0, 24], sizes = [64, 8], strides = [1, 1]} : vector<64x32xf32> to vector<64x8xf32>
    %cst_74 = arith.constant dense<0.000000e+00> : vector<64x64xf32>
    %183 = tpu.matmul %181, %182, %cst_74 {dimension_numbers = #tpu.dot_dimension_numbers<[1], [1], [0], [0], [0, 0, 1, 0], [], []>} : vector<64x8xf32>, vector<64x8xf32>, vector<64x64xf32> -> vector<64x64xf32>
    %184 = arith.addf %183, %108 : vector<64x64xf32>
    %cst_75 = arith.constant dense<0xFF800000> : vector<64xf32>
    %185 = vector.multi_reduction <maximumf>, %184, %cst_75 [1] : vector<64x64xf32> to vector<64xf32>
    %186 = vector.shape_cast %185 : vector<64xf32> to vector<64x1xf32>
    %187 = vector.broadcast %186 : vector<64x1xf32> to vector<64x64xf32>
    %188 = arith.subf %184, %187 : vector<64x64xf32>
    %189 = math.exp %188 : vector<64x64xf32>
    %cst_76 = arith.constant dense<0.000000e+00> : vector<64xf32>
    %190 = vector.multi_reduction <add>, %189, %cst_76 [1] : vector<64x64xf32> to vector<64xf32>
    %191 = vector.shape_cast %190 : vector<64xf32> to vector<64x1xf32>
    %192 = tpu.reciprocal %191 {approx = true} : vector<64x1xf32> -> vector<64x1xf32>
    %193 = vector.broadcast %192 : vector<64x1xf32> to vector<64x64xf32>
    %194 = arith.mulf %189, %193 : vector<64x64xf32>
    %195 = vector.extract_strided_slice %129 {offsets = [0, 24], sizes = [64, 8], strides = [1, 1]} : vector<64x32xf32> to vector<64x8xf32>
    %cst_77 = arith.constant dense<0.000000e+00> : vector<64x8xf32>
    %196 = tpu.matmul %194, %195, %cst_77 {dimension_numbers = #tpu.dot_dimension_numbers<[1], [0], [0], [1], [0, 0, 1, 1], [], []>} : vector<64x64xf32>, vector<64x8xf32>, vector<64x8xf32> -> vector<64x8xf32>
    %c0_78 = arith.constant 0 : index
    %c24_79 = arith.constant 24 : index
    %197 = vector.load %arg21[%c0_78, %c24_79] : memref<64x32xf32, #tpu.memory_space<vmem>>, vector<64x8xf32>
    tpu.vector_store %arg21[%c0_78, %c24_79], %196 {strides = array<i32>} : memref<64x32xf32, #tpu.memory_space<vmem>>, vector<64x8xf32>,
    %c0_80 = arith.constant 0 : index
    %c0_81 = arith.constant 0 : index
    %198 = vector.load %arg21[%c0_80, %c0_81] : memref<64x32xf32, #tpu.memory_space<vmem>>, vector<64x32xf32>
    %c0_82 = arith.constant 0 : index
    %c0_83 = arith.constant 0 : index
    %199 = vector.load %arg13[%c0_82, %c0_83] : memref<32x32xf32, #tpu.memory_space<vmem>>, vector<32x32xf32>
    %cst_84 = arith.constant dense<0.000000e+00> : vector<64x32xf32>
    %200 = tpu.matmul %198, %199, %cst_84 {dimension_numbers = #tpu.dot_dimension_numbers<[1], [0], [0], [1], [0, 0, 1, 1], [], []>} : vector<64x32xf32>, vector<32x32xf32>, vector<64x32xf32> -> vector<64x32xf32>
    %201 = arith.addf %107, %200 : vector<64x32xf32>
    %c0_85 = arith.constant 0 : index
    %c0_86 = arith.constant 0 : index
    %202 = vector.load %arg14[%c0_85, %c0_86] : memref<1x32xf32, #tpu.memory_space<vmem>>, vector<1x32xf32>
    %203 = vector.broadcast %202 : vector<1x32xf32> to vector<64x32xf32>
    %204 = arith.addf %201, %203 : vector<64x32xf32>
    %c0_87 = arith.constant 0 : index
    %c0_88 = arith.constant 0 : index
    %205 = vector.load %arg15[%c0_87, %c0_88] : memref<1x32xf32, #tpu.memory_space<vmem>>, vector<1x32xf32>
    %206 = arith.mulf %204, %204 : vector<64x32xf32>
    %cst_89 = arith.constant dense<0.000000e+00> : vector<64xf32>
    %207 = vector.multi_reduction <add>, %206, %cst_89 [1] : vector<64x32xf32> to vector<64xf32>
    %208 = vector.shape_cast %207 : vector<64xf32> to vector<64x1xf32>
    %cst_90 = arith.constant 3.200000e+01 : f32
    %209 = vector.broadcast %cst_90 : f32 to vector<64x1xf32>
    %210 = arith.divf %208, %209 : vector<64x1xf32>
    %cst_91 = arith.constant 1.1920929E-7 : f32
    %211 = vector.broadcast %cst_91 : f32 to vector<64x1xf32>
    %212 = arith.addf %210, %211 : vector<64x1xf32>
    %213 = math.rsqrt %212 : vector<64x1xf32>
    %214 = vector.broadcast %213 : vector<64x1xf32> to vector<64x32xf32>
    %215 = arith.mulf %204, %214 : vector<64x32xf32>
    %216 = vector.broadcast %205 : vector<1x32xf32> to vector<64x32xf32>
    %217 = arith.mulf %215, %216 : vector<64x32xf32>
    %c0_92 = arith.constant 0 : index
    %c0_93 = arith.constant 0 : index
    %218 = vector.load %arg16[%c0_92, %c0_93] : memref<32x128xf32, #tpu.memory_space<vmem>>, vector<32x128xf32>
    %cst_94 = arith.constant dense<0.000000e+00> : vector<64x128xf32>
    %219 = tpu.matmul %217, %218, %cst_94 {dimension_numbers = #tpu.dot_dimension_numbers<[1], [0], [0], [1], [0, 0, 1, 1], [], []>} : vector<64x32xf32>, vector<32x128xf32>, vector<64x128xf32> -> vector<64x128xf32>
    %c0_95 = arith.constant 0 : index
    %c0_96 = arith.constant 0 : index
    %220 = vector.load %arg17[%c0_95, %c0_96] : memref<1x128xf32, #tpu.memory_space<vmem>>, vector<1x128xf32>
    %221 = vector.broadcast %220 : vector<1x128xf32> to vector<64x128xf32>
    %222 = arith.addf %219, %221 : vector<64x128xf32>
    %223 = vector.extract_strided_slice %222 {offsets = [0, 0], sizes = [64, 64], strides = [1, 1]} : vector<64x128xf32> to vector<64x64xf32>
    %224 = vector.extract_strided_slice %222 {offsets = [0, 64], sizes = [64, 64], strides = [1, 1]} : vector<64x128xf32> to vector<64x64xf32>
    %225 = arith.negf %223 : vector<64x64xf32>
    %226 = math.exp %225 : vector<64x64xf32>
    %cst_97 = arith.constant 1.000000e+00 : f32
    %227 = vector.broadcast %cst_97 : f32 to vector<64x64xf32>
    %228 = arith.addf %227, %226 : vector<64x64xf32>
    %229 = arith.divf %227, %228 : vector<64x64xf32>
    %230 = arith.mulf %223, %229 : vector<64x64xf32>
    %231 = arith.mulf %230, %224 : vector<64x64xf32>
    %c0_98 = arith.constant 0 : index
    %c0_99 = arith.constant 0 : index
    %232 = vector.load %arg18[%c0_98, %c0_99] : memref<64x32xf32, #tpu.memory_space<vmem>>, vector<64x32xf32>
    %cst_100 = arith.constant dense<0.000000e+00> : vector<64x32xf32>
    %233 = tpu.matmul %231, %232, %cst_100 {dimension_numbers = #tpu.dot_dimension_numbers<[1], [0], [0], [1], [0, 0, 1, 1], [], []>} : vector<64x64xf32>, vector<64x32xf32>, vector<64x32xf32> -> vector<64x32xf32>
    %234 = arith.addf %204, %233 : vector<64x32xf32>
    %c0_101 = arith.constant 0 : index
    %c0_102 = arith.constant 0 : index
    %235 = vector.load %arg19[%c0_101, %c0_102] : memref<1x32xf32, #tpu.memory_space<vmem>>, vector<1x32xf32>
    %236 = vector.broadcast %235 : vector<1x32xf32> to vector<64x32xf32>
    %237 = arith.addf %234, %236 : vector<64x32xf32>
    %c0_103 = arith.constant 0 : index
    %c0_104 = arith.constant 0 : index
    %238 = vector.load %arg20[%c0_103, %c0_104] : memref<64x32xf32, #tpu.memory_space<vmem>>, vector<64x32xf32>
    tpu.vector_store %arg20[%c0_103, %c0_104], %237 {strides = array<i32>} : memref<64x32xf32, #tpu.memory_space<vmem>>, vector<64x32xf32>,
    return
  }
}

</mosaic_0001>

<bundles_post_ra>
// kernel: tpu_custom_call.1
= control target key start
LH: loop header
LB: loop body
LE: loop exit
PB: predicated region body
PF: predicated region fallthrough
CT: control target
= control target key end

     0   :  { %vm90_vm0 = vcmask 261120   ;;  %v7286_v36 = vmov 0.0   ;;  %s7287_s30 = smov 96   ;;  %s7289_s22 = smov 32   ;;  %vm559_vm1 = vcmask 64512   ;;  %vm705_vm3 = vcmask 523264   ;;  %s9515_s0 = inlined_call_operand.vmem [shape: f32[64,32], index: 0, kind: input, shape index: {}]   ;;  %s9516_s6 = inlined_call_operand.vmem [shape: f32[32,160], index: 6, kind: input, shape index: {}]   ;;  %s9517_s4 = inlined_call_operand.vmem [shape: f32[64,32], index: 4, kind: input, shape index: {}]   ;;  %s9518_s3 = inlined_call_operand.vmem [shape: f32[64,32], index: 3, kind: input, shape index: {}]   ;;  %s9519_s5 = inlined_call_operand.vmem [shape: f32[1,32], index: 5, kind: input, shape index: {}]   ;;  %s9520_s7 = inlined_call_operand.vmem [shape: f32[1,160], index: 7, kind: input, shape index: {}]   ;;  %s9521_s1 = inlined_call_operand.vmem [shape: f32[64,64], index: 1, kind: input, shape index: {}]   ;;  %s9522_s8 = inlined_call_operand.vmem [shape: f32[32,32], index: 8, kind: input, shape index: {}]   ;;  %s9523_s9 = inlined_call_operand.vmem [shape: f32[1,32], index: 9, kind: input, shape index: {}]   ;;  %s9524_s11 = inlined_call_operand.vmem [shape: f32[32,96], index: 11, kind: input, shape index: {}]   ;;  %s9525_s10 = inlined_call_operand.vmem [shape: f32[1,32], index: 10, kind: input, shape index: {}]   ;;  %s9526_s12 = inlined_call_operand.vmem [shape: f32[1,96], index: 12, kind: input, shape index: {}]   ;;  %s9527_s2 = inlined_call_operand.vmem [shape: f32[64,64], index: 2, kind: input, shape index: {}]   ;;  %s9528_s13 = inlined_call_operand.vmem [shape: f32[32,32], index: 13, kind: input, shape index: {}]   ;;  %s9529_s14 = inlined_call_operand.vmem [shape: f32[1,32], index: 14, kind: input, shape index: {}]   ;;  %s9530_s16 = inlined_call_operand.vmem [shape: f32[32,128], index: 16, kind: input, shape index: {}]   ;;  %s9531_s15 = inlined_call_operand.vmem [shape: f32[1,32], index: 15, kind: input, shape index: {}]   ;;  %s9532_s18 = inlined_call_operand.vmem [shape: f32[64,32], index: 18, kind: input, shape index: {}]   ;;  %s9533_s17 = inlined_call_operand.vmem [shape: f32[1,128], index: 17, kind: input, shape index: {}]   ;;  %s9534_s19 = inlined_call_operand.vmem [shape: f32[1,32], index: 19, kind: input, shape index: {}]   ;;  %s9535_s20 = inlined_call_operand.vmem [shape: f32[64,32], index: 20, kind: output, shape index: {}]  }
   0x1   :  { %9544 = sst [smem:[#allocation3_spill]] %s9515_s0  ;;  %270 = vmatprep.mubr.f32.mxu0 %v7286_v36  ;;  %s7288_s0 = smov 64   ;;  %vm7763_vm2 = vmpackc.low %vm559_vm1, %vm559_vm1  ;;  %vm1381_vm4 = vcmask 130112   ;;  %vm1832_vm5 = vcmask 195712   ;;  %vm2283_vm6 = vcmask 261312  }
   0x2   :  { %9545 = sst [smem:[#allocation4_spill]] %s9516_s6  ;;  %s9549_s23 = sld [smem:[#allocation3_spill]] }
   0x3   :  { %9546 = sst [smem:[#allocation5_spill]] %s9517_s4  ;;  %s9550_s25 = sld [smem:[#allocation4_spill]] }
   0x4   :  { %9547 = sst [smem:[#allocation6_spill]] %s9518_s3  ;;  %s9551_s28 = sld [smem:[#allocation5_spill]] }
   0x5   :  { %9548 = sst [smem:[#allocation7_spill]] %s9519_s5  ;;  %s7292_s3 = smov 48  }
   0x6   :  { %s9553_s5 = sld [smem:[#allocation7_spill]]  ;;  %s7293_s26 = smov 112  }
   0x7   :  { %s9542_s27 = smov 104   ;;  %s7297_s21 = smov 16  }
   0x8   :  { %v7410_v0 = vld [vmem:[%s9549_s23] sm:$0xff]  ;;  %v7415_v1 = vld [vmem:[%s9549_s23 + $0x8] sm:$0xff]  ;;  %v7420_v2 = vld [vmem:[%s9549_s23 + $0x10] sm:$0xff] }
   0x9   :  { %v82_v3 = vmul.f32 %v7410_v0, %v7410_v0  ;;  %v83_v4 = vmul.f32 %v7415_v1, %v7415_v1  ;;  %v84_v5 = vmul.f32 %v7420_v2, %v7420_v2  ;;  %v7431_v6 = vld [vmem:[%s9549_s23 + $0x18] sm:$0xff]  ;;  %v7438_v8 = vld [vmem:[%s9549_s23 + $0x20] sm:$0xff]  ;;  %v7443_v9 = vld [vmem:[%s9549_s23 + $0x28] sm:$0xff] }
   0xa   :  { %v85_v7 = vmul.f32 %v7431_v6, %v7431_v6  ;;  %v86_v14 = vmul.f32 %v7438_v8, %v7438_v8  ;;  %v87_v15 = vmul.f32 %v7443_v9, %v7443_v9  ;;  %v7456_v16 = vld [vmem:[%s9549_s23 + $0x30] sm:$0xff]  ;;  %v7461_v17 = vld [vmem:[%s9549_s23 + $0x38] sm:$0xff]  ;;  %v163_v24 = vld [vmem:[%s9550_s25 + $0x8] sm:$0xff] }
   0xb   :  { %v91_v10 = vsel %vm90_vm0, %v82_v3, 0.0  ;;  %v97_v11 = vsel %vm90_vm0, %v84_v5, 0.0  ;;  %v94_v12 = vsel %vm90_vm0, %v83_v4, 0.0  ;;  %v88_v20 = vmul.f32 %v7456_v16, %v7456_v16  ;;  %v165_v25 = vld [vmem:[%s9550_s25 + $0x18] sm:$0xff]  ;;  %v162_v27 = vld [vmem:[%s9550_s25] sm:$0xff]  ;;  %v164_v28 = vld [vmem:[%s9550_s25 + $0x10] sm:$0xff] }
   0xc   :  { %92 = vadd.xlane.f32.xlu0 %v91_v10  ;;  %98 = vadd.xlane.f32.xlu1 %v97_v11  ;;  %v100_v13 = vsel %vm90_vm0, %v85_v7, 0.0  ;;  %v103_v18 = vsel %vm90_vm0, %v86_v14, 0.0  ;;  %v106_v19 = vsel %vm90_vm0, %v87_v15, 0.0  ;;  %v89_v21 = vmul.f32 %v7461_v17, %v7461_v17  ;;  %v167_v29 = vld [vmem:[%s9550_s25 + $0x28] sm:$0xff]  ;;  %v169_v31 = vld [vmem:[%s9550_s25 + $0x38] sm:$0xff]  ;;  %v166_v33 = vld [vmem:[%s9550_s25 + $0x20] sm:$0xff] }
   0xd   :  { %v109_v22 = vsel %vm90_vm0, %v88_v20, 0.0  ;;  %v6226_v26 = vpack.c.bf16 %v165_v25, %v163_v24  ;;  %v6228_v30 = vpack.c.bf16 %v164_v28, %v162_v27  ;;  %v6230_v32 = vpack.c.bf16 %v169_v31, %v167_v29  ;;  %v168_v34 = vld [vmem:[%s9550_s25 + $0x30] sm:$0xff]  ;;  %v328_v37 = vld [vmem:[%s9551_s28 + $0x8] sm:$0xff]  ;;  %v327_v38 = vld [vmem:[%s9551_s28] sm:$0xff]  ;;  %s9552_s25 = sld [smem:[#allocation6_spill]] }
   0xe   :  { %v112_v23 = vsel %vm90_vm0, %v89_v21, 0.0  ;;  %v6232_v35 = vpack.c.bf16 %v168_v34, %v166_v33  ;;  %v7507_v39 = vld [vmem:[%s9551_s28 + $0x10] sm:$0xff]  ;;  %v7512_v40 = vld [vmem:[%s9551_s28 + $0x20] sm:$0xff]  ;;  %v7521_v41 = vld [vmem:[%s9551_s28 + $0x18] sm:$0xff] }
   0xf   :  { %6227 = vmatprep.subr.bf16.mxu0 %v6226_v26  ;;  %v7526_v42 = vld [vmem:[%s9551_s28 + $0x30] sm:$0xff]  ;;  %v7535_v43 = vld [vmem:[%s9551_s28 + $0x28] sm:$0xff]  ;;  %v7549_v45 = vld [vmem:[%s9551_s28 + $0x38] sm:$0xff]  ;;  %s9540_s28 = smov 40  }
  0x10   :  { %95 = vadd.xlane.f32.xlu0 %v94_v12  ;;  %101 = vadd.xlane.f32.xlu1 %v100_v13  ;;  %v5094_v10 = vld [vmem:[%s9553_s5] ss:$0 sm:$0xff] }
  0x11   :  { %6229 = vmatpush1.bf16.msra.mxu0 %v6228_v30 }
  0x12   :  { %6231 = vmatprep.subr.bf16.mxu0 %v6230_v32 }
  0x13   :  { %v7540_v44 = vld [vmem:[%s9552_s25] sm:$0xff]  ;;  %v7557_v46 = vld [vmem:[%s9552_s25 + $0x8] sm:$0xff]  ;;  %v7562_v47 = vld [vmem:[%s9552_s25 + $0x10] sm:$0xff] }
  0x14   :  { %104 = vadd.xlane.f32.xlu0 %v103_v18  ;;  %107 = vadd.xlane.f32.xlu1 %v106_v19 }
  0x15   :  { %6233 = vmatpush1.bf16.msra.mxu0 %v6232_v35  ;;  %v172_v35 = vlaneseq }
  0x18   :  { %110 = vadd.xlane.f32.xlu0 %v109_v22  ;;  %113 = vadd.xlane.f32.xlu1 %v112_v23 }
  0x29   :  { %465 = vrot.lane.b32.xlu1 %v328_v37, %s7287_s30 }
  0x2d   :  { %467 = vrot.lane.b32.xlu1 %v7507_v39, %s7287_s30 }
  0x2e   :  { %463 = vrot.lane.b32.xlu0 %v327_v38, %s7287_s30 }
  0x31   :  { %469 = vrot.lane.b32.xlu1 %v7521_v41, %s7287_s30 }
  0x32   :  { %471 = vrot.lane.b32.xlu0 %v7512_v40, %s7287_s30 }
  0x35   :  { %473 = vrot.lane.b32.xlu1 %v7535_v43, %s7287_s30 }
  0x36   :  { %475 = vrot.lane.b32.xlu0 %v7526_v42, %s7287_s30 }
  0x39   :  { %477 = vrot.lane.b32.xlu1 %v7549_v45, %s7287_s30 }
  0x3a   :  { %431 = vrot.lane.b32.xlu0 %v7540_v44, %s7288_s0 }
  0x3d   :  { %433 = vrot.lane.b32.xlu1 %v7557_v46, %s7288_s0 }
  0x3e   :  { %351 = vrot.lane.b32.xlu0 %v327_v38, %s7289_s22  ;;  %v170_v38 = vld [vmem:[%s9520_s7] sm:$0x3]  ;;  %s7298_s7 = smov 24  }
  0x41   :  { %353 = vrot.lane.b32.xlu1 %v328_v37, %s7289_s22  ;;  %v173_v37 = vshrl.u32 %v172_v35, 7 }
  0x42   :  { %435 = vrot.lane.b32.xlu0 %v7562_v47, %s7288_s0 }
  0x99   :  { %v93_v48 = vpop.xlane.xlu0 %92  ;;  %v99_v49 = vpop.xlane.xlu1 %98 }
  0x9a   :  { %v116_v50 = vmul.f32 0.03125, %v93_v48  ;;  %v118_v51 = vmul.f32 0.03125, %v99_v49  ;;  %v178_v49 = vsub.s32 1, %v173_v37 }
  0x9c   :  { %v124_v52 = vadd.f32 1.1920929e-07, %v116_v50  ;;  %v126_v53 = vadd.f32 1.1920929e-07, %v118_v51 }
  0x9d   :  { %v96_v54 = vpop.xlane.xlu0 %95  ;;  %v102_v55 = vpop.xlane.xlu1 %101 }
  0x9e   :  { %6926 = vrsqrt.f32 %v124_v52  ;;  %v117_v56 = vmul.f32 0.03125, %v96_v54  ;;  %v119_v57 = vmul.f32 0.03125, %v102_v55 }
  0x9f   :  { %6928 = vrsqrt.f32 %v126_v53 }
  0xa0   :  { %v125_v58 = vadd.f32 1.1920929e-07, %v117_v56  ;;  %v127_v59 = vadd.f32 1.1920929e-07, %v119_v57 }
  0xa1   :  { %v105_v60 = vpop.xlane.xlu0 %104  ;;  %v108_v61 = vpop.xlane.xlu1 %107 }
  0xa2   :  { %6930 = vrsqrt.f32 %v125_v58  ;;  %v120_v62 = vmul.f32 0.03125, %v105_v60  ;;  %v121_v3 = vmul.f32 0.03125, %v108_v61  ;;  %v7615_v60 = vld [vmem:[%s9552_s25 + $0x20] sm:$0xff] }
  0xa3   :  { %6932 = vrsqrt.f32 %v127_v59 }
  0xa4   :  { %v128_v63 = vadd.f32 1.1920929e-07, %v120_v62  ;;  %v129_v7 = vadd.f32 1.1920929e-07, %v121_v3 }
  0xa5   :  { %v111_v4 = vpop.xlane.xlu0 %110  ;;  %v114_v13 = vpop.xlane.xlu1 %113 }
  0xa6   :  { %6934 = vrsqrt.f32 %v128_v63  ;;  %v122_v11 = vmul.f32 0.03125, %v111_v4  ;;  %v123_v20 = vmul.f32 0.03125, %v114_v13 }
  0xa7   :  { %6936 = vrsqrt.f32 %v129_v7 }
  0xa8   :  { %v6927_v5 = vpop.eup %6926  ;;  %v130_v19 = vadd.f32 1.1920929e-07, %v122_v11  ;;  %v131_v25 = vadd.f32 1.1920929e-07, %v123_v20  ;;  %v7643_v20 = vld [vmem:[%s9552_s25 + $0x30] sm:$0xff] }
  0xa9   :  { %v140_v12 = vmul.f32 %v6927_v5, %v7410_v0  ;;  %v6929_v14 = vpop.eup %6928  ;;  %v466_v52 = vpop.permute.xlu1 %465 }
  0xaa   :  { %v142_v22 = vmul.f32 %v6929_v14, %v7420_v2  ;;  %6938 = vrsqrt.f32 %v130_v19  ;;  %v464_v53 = vpop.permute.xlu0 %463 }
  0xab   :  { %v154_v15 = vmul.f32 %v5094_v10, %v140_v12  ;;  %6940 = vrsqrt.f32 %v131_v25 }
  0xac   :  { %v6931_v18 = vpop.eup %6930  ;;  %v156_v0 = vmul.f32 %v5094_v10, %v142_v22 }
  0xad   :  { %5095 = vmatmul.mubr.msk.f32.vlgmr.msra.gmra.mrb[0].mxu0 %vm90_vm0, %v154_v15  ;;  %v141_v21 = vmul.f32 %v6931_v18, %v7415_v1  ;;  %v6933_v23 = vpop.eup %6932  ;;  %v468_v62 = vpop.permute.xlu1 %467 }
  0xae   :  { %276 = vmatprep.mubr.f32.mxu0 %v7286_v36  ;;  %v143_v26 = vmul.f32 %v6933_v23, %v7431_v6 }
  0xaf   :  { %v155_v24 = vmul.f32 %v5094_v10, %v141_v21 }
  0xb0   :  { %v6935_v27 = vpop.eup %6934  ;;  %v157_v1 = vmul.f32 %v5094_v10, %v143_v26  ;;  %v472_v26 = vpop.permute.xlu0 %471 }
  0xb1   :  { %5096 = vmatmul.mubr.msk.f32.gmra.mrb[2].mxu0 %vm90_vm0, %v155_v24  ;;  %v144_v2 = vmul.f32 %v6935_v27, %v7438_v8  ;;  %v6937_v28 = vpop.eup %6936  ;;  %v470_v18 = vpop.permute.xlu1 %469  ;;  %v7657_v27 = vld [vmem:[%s9552_s25 + $0x28] sm:$0xff] }
  0xb2   :  { %282 = vmatprep.mubr.f32.mxu0 %v7286_v36  ;;  %v145_v30 = vmul.f32 %v6937_v28, %v7443_v9 }
  0xb3   :  { %v158_v29 = vmul.f32 %v5094_v10, %v144_v2 }
  0xb4   :  { %v6939_v31 = vpop.eup %6938  ;;  %v159_v6 = vmul.f32 %v5094_v10, %v145_v30 }
  0xb5   :  { %5097 = vmatmul.mubr.msk.f32.gmra.mrb[4].mxu0 %vm90_vm0, %v156_v0  ;;  %v146_v32 = vmul.f32 %v6939_v31, %v7456_v16  ;;  %v6941_v33 = vpop.eup %6940  ;;  %v174_v16 = vsub.s32 0, %v173_v37  ;;  %v474_v31 = vpop.permute.xlu1 %473  ;;  %v7680_v37 = vld [vmem:[%s9552_s25 + $0x38] sm:$0xff] }
  0xb6   :  { %288 = vmatprep.mubr.f32.mxu0 %v7286_v36  ;;  %v147_v34 = vmul.f32 %v6941_v33, %v7461_v17 }
  0xb7   :  { %v160_v8 = vmul.f32 %v5094_v10, %v146_v32  ;;  %v7598_v48 = vrot.slane %v170_v38, %v174_v16  ;;  %v476_v16 = vpop.permute.xlu0 %475 }
  0xb8   :  { %v161_v9 = vmul.f32 %v5094_v10, %v147_v34  ;;  %v7629_v10 = vld [vmem:[%s9552_s25 + $0x18] sm:$0xff]  ;;  %s7290_s25 = smov 56  }
  0xb9   :  { %5098 = vmatmul.mubr.msk.f32.gmra.mrb[6].mxu0 %vm90_vm0, %v157_v1 }
  0xba   :  { %294 = vmatprep.mubr.f32.mxu0 %v7286_v36 }
  0xbd   :  { %5099 = vmatmul.mubr.msk.f32.gmra.mrb[8].mxu0 %vm90_vm0, %v158_v29 }
  0xbe   :  { %300 = vmatprep.mubr.f32.mxu0 %v7286_v36 }
  0xc1   :  { %5100 = vmatmul.mubr.msk.f32.gmra.mrb[10].mxu0 %vm90_vm0, %v159_v6 }
  0xc2   :  { %306 = vmatprep.mubr.f32.mxu0 %v7286_v36 }
  0xc5   :  { %5101 = vmatmul.mubr.msk.f32.gmra.mrb[12].mxu0 %vm90_vm0, %v160_v8 }
  0xc6   :  { %312 = vmatprep.mubr.f32.mxu0 %v7286_v36  ;;  %v7603_v36 = vrot.slane %v170_v38, %v178_v49 }
  0xc9   :  { %5102 = vmatmul.mubr.msk.f32.gmra.mrb[14].mxu0 %vm90_vm0, %v161_v9 }
 0x180   :  { %v272_v17 = vpop.f32.mrb[0].mxu0 }
 0x181   :  { %v7601_v50 = vadd.f32 %v272_v17, %v7598_v48  ;;  %v274_v51 = vpop.f32.mrb[1].mxu0 }
 0x182   :  { %v275_v58 = vadd.f32 %v274_v51, %v7603_v36 }
 0x183   :  { %v487_v54 = vmul.f32 %v464_v53, %v7601_v50 }
 0x184   :  { %v278_v55 = vpop.f32.mrb[2].mxu0 }
 0x185   :  { %v7607_v56 = vadd.f32 %v278_v55, %v7598_v48  ;;  %v280_v57 = vpop.f32.mrb[3].mxu0  ;;  %503 = vrot.lane.b32.xlu0 %v487_v54, %s7287_s30 }
 0x186   :  { %v281_v59 = vadd.f32 %v280_v57, %v7603_v36 }
 0x187   :  { %v488_v61 = vmul.f32 %v466_v52, %v7607_v56  ;;  %v478_v52 = vpop.permute.xlu1 %477 }
 0x188   :  { %v284_v63 = vpop.f32.mrb[4].mxu0  ;;  %v6258_v3 = vpack.c.bf16 %v281_v59, %v275_v58  ;;  %v7618_v4 = vpack.i.bf16 %v281_v59, %v275_v58 }
 0x189   :  { %v7621_v5 = vadd.f32 %v284_v63, %v7598_v48  ;;  %505 = vrot.lane.b32.xlu1 %v488_v61, %s7287_s30  ;;  %439 = vrot.lane.b32.xlu0 %v7615_v60, %s7288_s0  ;;  %v286_v7 = vpop.f32.mrb[5].mxu0 }
 0x18a   :  { %6259 = vmatprep.subr.bf16.mxu0 %v6258_v3  ;;  %v287_v12 = vadd.f32 %v286_v7, %v7603_v36 }
 0x18b   :  { %6261 = vmatpush3.bf16.msra.mxu0 %v6258_v3  ;;  %v489_v11 = vmul.f32 %v468_v62, %v7621_v5  ;;  %v434_v59 = vpop.permute.xlu1 %433 }
 0x18c   :  { %v290_v13 = vpop.f32.mrb[6].mxu0  ;;  %v456_v63 = vmul.f32 %v434_v59, %v7607_v56 }
 0x18d   :  { %v7634_v14 = vadd.f32 %v290_v13, %v7598_v48  ;;  %437 = vrot.lane.b32.xlu1 %v7629_v10, %s7288_s0  ;;  %507 = vrot.lane.b32.xlu0 %v489_v11, %s7287_s30  ;;  %v292_v15 = vpop.f32.mrb[7].mxu0 }
 0x18e   :  { %v293_v19 = vadd.f32 %v292_v15, %v7603_v36 }
 0x18f   :  { %v490_v21 = vmul.f32 %v470_v18, %v7634_v14  ;;  %v354_v61 = vpop.permute.xlu1 %353 }
 0x190   :  { %v296_v22 = vpop.f32.mrb[8].mxu0  ;;  %v6262_v23 = vpack.c.bf16 %v293_v19, %v287_v12  ;;  %v7646_v24 = vpack.i.bf16 %v293_v19, %v287_v12  ;;  %v376_v13 = vmul.f32 %v354_v61, %v7607_v56 }
 0x191   :  { %v7649_v25 = vadd.f32 %v296_v22, %v7598_v48  ;;  %509 = vrot.lane.b32.xlu1 %v490_v21, %s7287_s30  ;;  %443 = vrot.lane.b32.xlu0 %v7643_v20, %s7288_s0  ;;  %v298_v0 = vpop.f32.mrb[9].mxu0 }
 0x192   :  { %6263 = vmatprep.subr.bf16.mxu0 %v6262_v23  ;;  %v299_v2 = vadd.f32 %v298_v0, %v7603_v36 }
 0x193   :  { %v491_v1 = vmul.f32 %v472_v26, %v7649_v25  ;;  %6265 = vmatpush3.bf16.msra.mxu0 %v6262_v23 }
 0x194   :  { %v302_v28 = vpop.f32.mrb[10].mxu0 }
 0x195   :  { %v7662_v29 = vadd.f32 %v302_v28, %v7598_v48  ;;  %441 = vrot.lane.b32.xlu1 %v7657_v27, %s7288_s0  ;;  %511 = vrot.lane.b32.xlu0 %v491_v1, %s7287_s30  ;;  %v304_v30 = vpop.f32.mrb[11].mxu0 }
 0x196   :  { %v305_v6 = vadd.f32 %v304_v30, %v7603_v36 }
 0x197   :  { %v492_v32 = vmul.f32 %v474_v31, %v7662_v29 }
 0x198   :  { %v308_v33 = vpop.f32.mrb[12].mxu0  ;;  %v6266_v8 = vpack.c.bf16 %v305_v6, %v299_v2  ;;  %v7669_v34 = vpack.i.bf16 %v305_v6, %v299_v2 }
 0x199   :  { %513 = vrot.lane.b32.xlu1 %v492_v32, %s7287_s30  ;;  %355 = vrot.lane.b32.xlu0 %v7507_v39, %s7289_s22  ;;  %v7675_v9 = vadd.f32 %v308_v33, %v7598_v48  ;;  %v310_v35 = vpop.f32.mrb[13].mxu0 }
 0x19a   :  { %6267 = vmatprep.subr.bf16.mxu0 %v6266_v8  ;;  %v311_v38 = vadd.f32 %v310_v35, %v7603_v36 }
 0x19b   :  { %6269 = vmatpush3.bf16.msra.mxu0 %v6266_v8  ;;  %v493_v39 = vmul.f32 %v476_v16, %v7675_v9 }
 0x19c   :  { %v314_v49 = vpop.f32.mrb[14].mxu0 }
 0x19d   :  { %v7684_v17 = vadd.f32 %v314_v49, %v7598_v48  ;;  %445 = vrot.lane.b32.xlu1 %v7680_v37, %s7288_s0  ;;  %v316_v51 = vpop.f32.mrb[15].mxu0  ;;  %v432_v48 = vpop.permute.xlu0 %431 }
 0x19e   :  { %v317_v53 = vadd.f32 %v316_v51, %v7603_v36 }
 0x19f   :  { %v494_v54 = vmul.f32 %v478_v52, %v7684_v17 }
 0x1a0   :  { %v6270_v55 = vpack.c.bf16 %v317_v53, %v311_v38  ;;  %v7691_v57 = vpack.i.bf16 %v317_v53, %v311_v38 }
 0x1a1   :  { %517 = vrot.lane.b32.xlu0 %v494_v54, %s7287_s30  ;;  %515 = vrot.lane.b32.xlu1 %v493_v39, %s7287_s30  ;;  %v352_v36 = vpop.permute.xlu0 %351 }
 0x1a2   :  { %6271 = vmatprep.subr.bf16.mxu0 %v6270_v55  ;;  %v375_v58 = vmul.f32 %v352_v36, %v7601_v50 }
 0x1a3   :  { %6273 = vmatpush3.bf16.msra.mxu0 %v6270_v55 }
 0x1a5   :  { %359 = vrot.lane.b32.xlu0 %v7512_v40, %s7289_s22  ;;  %357 = vrot.lane.b32.xlu1 %v7521_v41, %s7289_s22  ;;  %v436_v40 = vpop.permute.xlu0 %435  ;;  %v455_v41 = vmul.f32 %v432_v48, %v7601_v50 }
 0x1a6   :  { %v457_v15 = vmul.f32 %v436_v40, %v7621_v5 }
 0x1a9   :  { %363 = vrot.lane.b32.xlu0 %v7526_v42, %s7289_s22  ;;  %361 = vrot.lane.b32.xlu1 %v7535_v43, %s7289_s22 }
 0x1ad   :  { %365 = vrot.lane.b32.xlu1 %v7549_v45, %s7289_s22  ;;  %s7291_s22 = smov 120  }
 0x1b1   :  { %391 = vrot.lane.b32.xlu1 %v375_v58, %s7287_s30 }
 0x1f7   :  { %v504_v62 = vpop.permute.xlu0 %503 }
 0x1f8   :  { %v527_v7 = vadd.f32 %v504_v62, %v455_v41 }
 0x1fb   :  { %v506_v42 = vpop.permute.xlu1 %505  ;;  %v440_v3 = vpop.permute.xlu0 %439 }
 0x1fc   :  { %v528_v43 = vadd.f32 %v506_v42, %v456_v63  ;;  %v459_v2 = vmul.f32 %v440_v3, %v7649_v25  ;;  %v335_v63 = vmul.f32 %v7540_v44, %v7601_v50 }
 0x1fe   :  { %v7709_v11 = vpack.i.bf16 %v528_v43, %v527_v7 }
 0x1ff   :  { %v438_v12 = vpop.permute.xlu1 %437  ;;  %v508_v45 = vpop.permute.xlu0 %507 }
 0x200   :  { %6627 = vrot.lane.b32.xlu0 %v7709_v11, %s7288_s0  ;;  %v458_v18 = vmul.f32 %v438_v12, %v7634_v14  ;;  %v529_v22 = vadd.f32 %v508_v45, %v457_v15  ;;  %v336_v12 = vmul.f32 %v7557_v46, %v7607_v56  ;;  %v337_v46 = vmul.f32 %v7562_v47, %v7621_v5 }
 0x203   :  { %v510_v19 = vpop.permute.xlu1 %509  ;;  %v444_v21 = vpop.permute.xlu0 %443 }
 0x204   :  { %v530_v23 = vadd.f32 %v510_v19, %v458_v18  ;;  %393 = vrot.lane.b32.xlu0 %v376_v13, %s7287_s30  ;;  %v461_v16 = vmul.f32 %v444_v21, %v7675_v9 }
 0x206   :  { %v7717_v0 = vpack.i.bf16 %v530_v23, %v529_v22 }
 0x207   :  { %v442_v26 = vpop.permute.xlu1 %441  ;;  %v512_v1 = vpop.permute.xlu0 %511 }
 0x208   :  { %6632 = vrot.lane.b32.xlu1 %v7717_v0, %s7288_s0  ;;  %v460_v28 = vmul.f32 %v442_v26, %v7662_v29  ;;  %v531_v6 = vadd.f32 %v512_v1, %v459_v2 }
 0x20b   :  { %v514_v30 = vpop.permute.xlu1 %513  ;;  %v356_v31 = vpop.permute.xlu0 %355 }
 0x20c   :  { %v532_v32 = vadd.f32 %v514_v30, %v460_v28  ;;  %v377_v33 = vmul.f32 %v356_v31, %v7621_v5  ;;  %v338_v5 = vmul.f32 %v7629_v10, %v7634_v14 }
 0x20e   :  { %395 = vrot.lane.b32.xlu1 %v377_v33, %s7287_s30  ;;  %v7725_v8 = vpack.i.bf16 %v532_v32, %v531_v6 }
 0x20f   :  { %v446_v35 = vpop.permute.xlu1 %445 }
 0x210   :  { %6637 = vrot.lane.b32.xlu0 %v7725_v8, %s7288_s0  ;;  %v462_v38 = vmul.f32 %v446_v35, %v7684_v17  ;;  %v339_v35 = vmul.f32 %v7615_v60, %v7649_v25  ;;  %v341_v60 = vmul.f32 %v7643_v20, %v7675_v9 }
 0x213   :  { %v516_v49 = vpop.permute.xlu1 %515  ;;  %v518_v39 = vpop.permute.xlu0 %517 }
 0x214   :  { %v533_v51 = vadd.f32 %v516_v49, %v461_v16  ;;  %v534_v52 = vadd.f32 %v518_v39, %v462_v38  ;;  %v340_v38 = vmul.f32 %v7657_v27, %v7662_v29  ;;  %v342_v39 = vmul.f32 %v7680_v37, %v7684_v17 }
 0x216   :  { %v7731_v53 = vpack.i.bf16 %v534_v52, %v533_v51 }
 0x217   :  { %v358_v54 = vpop.permute.xlu1 %357  ;;  %v360_v55 = vpop.permute.xlu0 %359 }
 0x218   :  { %v378_v48 = vmul.f32 %v358_v54, %v7634_v14  ;;  %6642 = vrot.lane.b32.xlu0 %v7731_v53, %s7288_s0  ;;  %v379_v36 = vmul.f32 %v360_v55, %v7649_v25 }
 0x21a   :  { %397 = vrot.lane.b32.xlu1 %v378_v48, %s7287_s30 }
 0x21b   :  { %v362_v58 = vpop.permute.xlu1 %361  ;;  %v364_v59 = vpop.permute.xlu0 %363 }
 0x21c   :  { %v380_v40 = vmul.f32 %v362_v58, %v7662_v29  ;;  %399 = vrot.lane.b32.xlu0 %v379_v36, %s7287_s30  ;;  %v381_v61 = vmul.f32 %v364_v59, %v7675_v9 }
 0x21e   :  { %401 = vrot.lane.b32.xlu1 %v380_v40, %s7287_s30 }
 0x21f   :  { %v366_v62 = vpop.permute.xlu1 %365 }
 0x220   :  { %403 = vrot.lane.b32.xlu0 %v381_v61, %s7287_s30  ;;  %v382_v41 = vmul.f32 %v366_v62, %v7684_v17 }
 0x222   :  { %6647 = vrot.lane.b32.xlu1 %v7709_v11, %s7290_s25 }
 0x223   :  { %v392_v42 = vpop.permute.xlu1 %391 }
 0x224   :  { %v7748_v3 = vadd.f32 %v392_v42, %v335_v63  ;;  %405 = vrot.lane.b32.xlu0 %v382_v41, %s7287_s30 }
 0x226   :  { %5686 = vmatprep.mubr.msk.f32.mxu1 %vm559_vm1, %v7748_v3  ;;  %6652 = vrot.lane.b32.xlu1 %v7717_v0, %s7290_s25 }
 0x228   :  { %6657 = vrot.lane.b32.xlu0 %v7725_v8, %s7290_s25 }
 0x22a   :  { %6662 = vrot.lane.b32.xlu1 %v7731_v53, %s7290_s25 }
 0x22c   :  { %931 = vrot.lane.b32.xlu0 %v7748_v3, %s7291_s22 }
 0x272   :  { %v6628_v44 = vpop.permute.xlu0 %6627 }
 0x273   :  { %v6630_v50 = vunpack.i.h.bf16 %v6628_v44  ;;  %v6629_v7 = vunpack.i.l.bf16 %v6628_v44 }
 0x275   :  { %v6234_v45 = vpack.c.bf16 %v6630_v50, %v6629_v7 }
 0x276   :  { %v394_v13 = vpop.permute.xlu0 %393 }
 0x277   :  { %v7769_v15 = vadd.f32 %v394_v13, %v336_v12  ;;  %6236 = vmatprep.subr.msk.bf16.mxu1 %vm7763_vm2, %v6234_v45 }
 0x278   :  { %6239 = vmatpush3.bf16.xpose.msk.msra.mxu1 %vm7763_vm2, %v6234_v45 }
 0x279   :  { %933 = vrot.lane.b32.xlu1 %v7769_v15, %s7291_s22 }
 0x27a   :  { %v6633_v18 = vpop.permute.xlu1 %6632 }
 0x27b   :  { %v6635_v19 = vunpack.i.h.bf16 %v6633_v18  ;;  %v6634_v21 = vunpack.i.l.bf16 %v6633_v18 }
 0x27d   :  { %v6240_v22 = vpack.c.bf16 %v6635_v19, %v6634_v21  ;;  %v7866_v19 = vld [vmem:[%s9521_s1 + $0x8] sm:$0xff]  ;;  %v7871_v21 = vld [vmem:[%s9521_s1] sm:$0xff] }
 0x27f   :  { %6242 = vmatprep.subr.msk.bf16.mxu1 %vm7763_vm2, %v6240_v22 }
 0x280   :  { %v396_v56 = vpop.permute.xlu1 %395  ;;  %6245 = vmatpush3.bf16.xpose.msk.msra.mxu1 %vm7763_vm2, %v6240_v22 }
 0x281   :  { %v7783_v23 = vadd.f32 %v396_v56, %v337_v46 }
 0x282   :  { %v6638_v26 = vpop.permute.xlu0 %6637 }
 0x283   :  { %v6640_v1 = vunpack.i.h.bf16 %v6638_v26  ;;  %v6639_v2 = vunpack.i.l.bf16 %v6638_v26  ;;  %935 = vrot.lane.b32.xlu0 %v7783_v23, %s7291_s22 }
 0x285   :  { %v6246_v28 = vpack.c.bf16 %v6640_v1, %v6639_v2  ;;  %v7882_v1 = vld [vmem:[%s9521_s1 + $0x18] sm:$0xff] }
 0x287   :  { %6248 = vmatprep.subr.msk.bf16.mxu1 %vm7763_vm2, %v6246_v28 }
 0x288   :  { %6251 = vmatpush3.bf16.xpose.msk.msra.mxu1 %vm7763_vm2, %v6246_v28 }
 0x28a   :  { %v6643_v47 = vpop.permute.xlu0 %6642 }
 0x28b   :  { %v6645_v30 = vunpack.i.h.bf16 %v6643_v47  ;;  %v6644_v31 = vunpack.i.l.bf16 %v6643_v47 }
 0x28c   :  { %v398_v6 = vpop.permute.xlu1 %397 }
 0x28d   :  { %v6252_v32 = vpack.c.bf16 %v6645_v30, %v6644_v31  ;;  %v7793_v33 = vadd.f32 %v398_v6, %v338_v5  ;;  %v7894_v31 = vld [vmem:[%s9521_s1 + $0x10] sm:$0xff]  ;;  %v7899_v6 = vld [vmem:[%s9521_s1 + $0x28] sm:$0xff] }
 0x28e   :  { %v400_v16 = vpop.permute.xlu0 %399 }
 0x28f   :  { %v7799_v49 = vadd.f32 %v400_v16, %v339_v35  ;;  %937 = vrot.lane.b32.xlu1 %v7793_v33, %s7291_s22  ;;  %6254 = vmatprep.subr.msk.bf16.mxu1 %vm7763_vm2, %v6252_v32 }
 0x290   :  { %v402_v10 = vpop.permute.xlu1 %401  ;;  %6257 = vmatpush3.bf16.xpose.msk.msra.mxu1 %vm7763_vm2, %v6252_v32 }
 0x291   :  { %v7807_v14 = vadd.f32 %v402_v10, %v340_v38  ;;  %939 = vrot.lane.b32.xlu0 %v7799_v49, %s7291_s22 }
 0x292   :  { %v404_v25 = vpop.permute.xlu0 %403 }
 0x293   :  { %v7813_v27 = vadd.f32 %v404_v25, %v341_v60  ;;  %941 = vrot.lane.b32.xlu1 %v7807_v14, %s7291_s22  ;;  %v7912_v60 = vld [vmem:[%s9521_s1 + $0x20] sm:$0xff]  ;;  %v7917_v25 = vld [vmem:[%s9521_s1 + $0x38] sm:$0xff] }
 0x294   :  { %v6648_v29 = vpop.permute.xlu1 %6647 }
 0x295   :  { %v6650_v51 = vunpack.i.h.bf16 %v6648_v29  ;;  %v6649_v52 = vunpack.i.l.bf16 %v6648_v29  ;;  %943 = vrot.lane.b32.xlu0 %v7813_v27, %s7291_s22 }
 0x296   :  { %v406_v54 = vpop.permute.xlu0 %405 }
 0x297   :  { %v6274_v55 = vpack.c.bf16 %v6650_v51, %v6649_v52  ;;  %v7821_v48 = vadd.f32 %v406_v54, %v342_v39  ;;  %5687 = vmatmul.mubr.msk.f32.vlgmr.msra.gmra.mrb[0].mxu1 %vm559_vm1, %v7769_v15 }
 0x298   :  { %v6653_v20 = vpop.permute.xlu1 %6652  ;;  %5689 = vmatprep.mubr.msk.f32.mxu1 %vm559_vm1, %v7783_v23 }
 0x299   :  { %v6655_v9 = vunpack.i.h.bf16 %v6653_v20  ;;  %v6654_v36 = vunpack.i.l.bf16 %v6653_v20  ;;  %945 = vrot.lane.b32.xlu1 %v7821_v48, %s7291_s22  ;;  %6276 = vmatprep.subr.msk.bf16.mxu1 %vm7763_vm2, %v6274_v55  ;;  %v7932_v20 = vld [vmem:[%s9521_s1 + $0x30] sm:$0xff] }
 0x29a   :  { %v6658_v37 = vpop.permute.xlu0 %6657  ;;  %6279 = vmatpush3.bf16.xpose.msk.msra.mxu1 %vm7763_vm2, %v6274_v55 }
 0x29b   :  { %v6280_v17 = vpack.c.bf16 %v6655_v9, %v6654_v36  ;;  %5690 = vmatmul.mubr.msk.f32.gmra.mrb[2].mxu1 %vm559_vm1, %v7793_v33  ;;  %v6660_v58 = vunpack.i.h.bf16 %v6658_v37  ;;  %v6659_v59 = vunpack.i.l.bf16 %v6658_v37 }
 0x29c   :  { %5692 = vmatprep.mubr.msk.f32.mxu1 %vm559_vm1, %v7799_v49  ;;  %v6663_v61 = vpop.permute.xlu1 %6662 }
 0x29d   :  { %6282 = vmatprep.subr.msk.bf16.mxu1 %vm7763_vm2, %v6280_v17  ;;  %v6286_v40 = vpack.c.bf16 %v6660_v58, %v6659_v59  ;;  %v6665_v41 = vunpack.i.h.bf16 %v6663_v61  ;;  %v6664_v63 = vunpack.i.l.bf16 %v6663_v61 }
 0x29e   :  { %v932_v62 = vpop.permute.xlu0 %931 }
 0x29f   :  { %5693 = vmatmul.mubr.msk.f32.gmra.mrb[4].mxu1 %vm559_vm1, %v7807_v14  ;;  %v6292_v42 = vpack.c.bf16 %v6665_v41, %v6664_v63 }
 0x2a0   :  { %5695 = vmatprep.mubr.msk.f32.mxu1 %vm559_vm1, %v7813_v27 }
 0x2a2   :  { %6285 = vmatpush3.bf16.xpose.msk.msra.mxu1 %vm7763_vm2, %v6280_v17 }
 0x2a3   :  { %5696 = vmatmul.mubr.msk.f32.gmra.mrb[6].mxu1 %vm559_vm1, %v7821_v48  ;;  %6288 = vmatprep.subr.msk.bf16.mxu1 %vm7763_vm2, %v6286_v40 }
 0x2a4   :  { %5742 = vmatprep.mubr.msk.f32.mxu1 %vm559_vm1, %v932_v62 }
 0x2aa   :  { %6291 = vmatpush3.bf16.xpose.msk.msra.mxu1 %vm7763_vm2, %v6286_v40 }
 0x2ab   :  { %6294 = vmatprep.subr.msk.bf16.mxu1 %vm7763_vm2, %v6292_v42 }
 0x2b2   :  { %6297 = vmatpush3.bf16.xpose.msk.msra.mxu1 %vm7763_vm2, %v6292_v42 }
 0x2eb   :  { %v934_v44 = vpop.permute.xlu1 %933 }
 0x2ec   :  { %5743 = vmatmul.mubr.msk.f32.vlgmr.msra.gmra.mrb[8].mxu1 %vm559_vm1, %v934_v44 }
 0x2f5   :  { %v936_v50 = vpop.permute.xlu0 %935 }
 0x2f6   :  { %5745 = vmatprep.mubr.msk.f32.mxu1 %vm559_vm1, %v936_v50 }
 0x301   :  { %v938_v7 = vpop.permute.xlu1 %937 }
 0x302   :  { %5746 = vmatmul.mubr.msk.f32.gmra.mrb[10].mxu1 %vm559_vm1, %v938_v7 }
 0x303   :  { %v940_v12 = vpop.permute.xlu0 %939 }
 0x304   :  { %5748 = vmatprep.mubr.msk.f32.mxu1 %vm559_vm1, %v940_v12 }
 0x305   :  { %v942_v45 = vpop.permute.xlu1 %941 }
 0x306   :  { %5749 = vmatmul.mubr.msk.f32.gmra.mrb[12].mxu1 %vm559_vm1, %v942_v45 }
 0x307   :  { %v944_v13 = vpop.permute.xlu0 %943 }
 0x308   :  { %5751 = vmatprep.mubr.msk.f32.mxu1 %vm559_vm1, %v944_v13 }
 0x30b   :  { %v946_v18 = vpop.permute.xlu1 %945 }
 0x30c   :  { %5752 = vmatmul.mubr.msk.f32.gmra.mrb[14].mxu1 %vm559_vm1, %v946_v18 }
 0x36a   :  { %v5688_v22 = vpop.f32.mrb[0].mxu1 }
 0x36b   :  { %v7874_v46 = vadd.f32 %v5688_v22, %v7866_v19  ;;  %v666_v56 = vpop.f32.mrb[1].mxu1 }
 0x36c   :  { %v7877_v26 = vadd.f32 %v666_v56, %v7871_v21 }
 0x36d   :  { %v709_v2 = vsel %vm705_vm3, %v7874_v46, -inf }
 0x36e   :  { %710 = vmax.xlane.f32.xlu1 %v709_v2  ;;  %v5691_v28 = vpop.f32.mrb[2].mxu1  ;;  %v706_v47 = vsel %vm705_vm3, %v7877_v26, -inf }
 0x36f   :  { %v7889_v5 = vadd.f32 %v5691_v28, %v7882_v1  ;;  %v676_v30 = vpop.f32.mrb[3].mxu1  ;;  %707 = vmax.xlane.f32.xlu0 %v706_v47 }
 0x370   :  { %v7904_v35 = vadd.f32 %v676_v30, %v7894_v31 }
 0x371   :  { %v715_v32 = vsel %vm705_vm3, %v7889_v5, -inf }
 0x372   :  { %v5694_v16 = vpop.f32.mrb[4].mxu1  ;;  %v712_v52 = vsel %vm705_vm3, %v7904_v35, -inf }
 0x373   :  { %v7907_v38 = vadd.f32 %v5694_v16, %v7899_v6  ;;  %v686_v10 = vpop.f32.mrb[5].mxu1  ;;  %716 = vmax.xlane.f32.xlu0 %v715_v32 }
 0x374   :  { %v7922_v39 = vadd.f32 %v686_v10, %v7912_v60 }
 0x375   :  { %v721_v29 = vsel %vm705_vm3, %v7907_v38, -inf }
 0x376   :  { %722 = vmax.xlane.f32.xlu1 %v721_v29  ;;  %v5697_v51 = vpop.f32.mrb[6].mxu1  ;;  %v718_v37 = vsel %vm705_vm3, %v7922_v39, -inf }
 0x377   :  { %v7927_v54 = vadd.f32 %v5697_v51, %v7917_v25  ;;  %v696_v55 = vpop.f32.mrb[7].mxu1  ;;  %713 = vmax.xlane.f32.xlu0 %v712_v52 }
 0x378   :  { %v7937_v36 = vadd.f32 %v696_v55, %v7932_v20 }
 0x379   :  { %v727_v9 = vsel %vm705_vm3, %v7927_v54, -inf }
 0x37a   :  { %728 = vmax.xlane.f32.xlu1 %v727_v9  ;;  %v724_v17 = vsel %vm705_vm3, %v7937_v36, -inf }
 0x37b   :  { %719 = vmax.xlane.f32.xlu0 %v718_v37 }
 0x37f   :  { %725 = vmax.xlane.f32.xlu0 %v724_v17 }
 0x3bf   :  { %v5744_v58 = vpop.f32.mrb[8].mxu1 }
 0x3c0   :  { %v7944_v59 = vadd.f32 %v5744_v58, %v7866_v19  ;;  %v1061_v40 = vpop.f32.mrb[9].mxu1 }
 0x3c1   :  { %v7947_v61 = vadd.f32 %v1061_v40, %v7871_v21 }
 0x3c2   :  { %v1103_v62 = vsel %vm705_vm3, %v7944_v59, -inf }
 0x3c3   :  { %1104 = vmax.xlane.f32.xlu1 %v1103_v62  ;;  %v1100_v41 = vsel %vm705_vm3, %v7947_v61, -inf }
 0x3c4   :  { %1101 = vmax.xlane.f32.xlu0 %v1100_v41 }
 0x3d4   :  { %6672 = vrot.lane.b32.xlu1 %v7646_v24, %s7291_s22 }
 0x3d5   :  { %v5747_v63 = vpop.f32.mrb[10].mxu1 }
 0x3d6   :  { %v1071_v42 = vpop.f32.mrb[11].mxu1  ;;  %v7970_v22 = vadd.f32 %v5747_v63, %v7882_v1 }
 0x3d7   :  { %v7962_v45 = vadd.f32 %v1071_v42, %v7894_v31 }
 0x3d8   :  { %6677 = vrot.lane.b32.xlu1 %v7669_v34, %s7291_s22  ;;  %v1109_v51 = vsel %vm705_vm3, %v7970_v22, -inf }
 0x3d9   :  { %v5750_v44 = vpop.f32.mrb[12].mxu1  ;;  %v1106_v18 = vsel %vm705_vm3, %v7962_v45, -inf }
 0x3da   :  { %v1081_v50 = vpop.f32.mrb[13].mxu1  ;;  %6667 = vrot.lane.b32.xlu0 %v7618_v4, %s7291_s22  ;;  %v7980_v10 = vadd.f32 %v5750_v44, %v7899_v6 }
 0x3db   :  { %v7965_v13 = vadd.f32 %v1081_v50, %v7912_v60 }
 0x3dc   :  { %6682 = vrot.lane.b32.xlu1 %v7691_v57, %s7291_s22 }
 0x3dd   :  { %v1112_v30 = vsel %vm705_vm3, %v7965_v13, -inf }
 0x3df   :  { %v5753_v7 = vpop.f32.mrb[14].mxu1 }
 0x3e0   :  { %v1091_v12 = vpop.f32.mrb[15].mxu1  ;;  %v7987_v52 = vadd.f32 %v5753_v7, %v7917_v25 }
 0x3e1   :  { %v7973_v2 = vadd.f32 %v1091_v12, %v7932_v20 }
 0x3e2   :  { %v1121_v55 = vsel %vm705_vm3, %v7987_v52, -inf }
 0x3f9   :  { %1107 = vmax.xlane.f32.xlu0 %v1106_v18 }
 0x3fb   :  { %v711_v56 = vpop.xlane.xlu1 %710 }
 0x3fc   :  { %v731_v28 = vsub.f32 %v7874_v46, %v711_v56  ;;  %v708_v47 = vpop.xlane.xlu0 %707  ;;  %v1118_v46 = vsel %vm705_vm3, %v7973_v2, -inf }
 0x3fd   :  { %v730_v32 = vsub.f32 %v7877_v26, %v708_v47  ;;  %1113 = vmax.xlane.f32.xlu0 %v1112_v30  ;;  %v1115_v26 = vsel %vm705_vm3, %v7980_v10, -inf }
 0x3fe   :  { %v740_v16 = vmul.f32 1.442695, %v731_v28 }
 0x3ff   :  { %v738_v29 = vmul.f32 1.442695, %v730_v32 }
 0x400   :  { %6942 = vpow2.f32 %v740_v16  ;;  %1110 = vmax.xlane.f32.xlu1 %v1109_v51  ;;  %v717_v40 = vpop.xlane.xlu0 %716 }
 0x401   :  { %6944 = vpow2.f32 %v738_v29  ;;  %1119 = vmax.xlane.f32.xlu0 %v1118_v46  ;;  %v733_v63 = vsub.f32 %v7889_v5, %v717_v40 }
 0x403   :  { %v723_v41 = vpop.xlane.xlu1 %722  ;;  %v744_v50 = vmul.f32 1.442695, %v733_v63 }
 0x404   :  { %1116 = vmax.xlane.f32.xlu1 %v1115_v26  ;;  %v714_v62 = vpop.xlane.xlu0 %713  ;;  %v735_v7 = vsub.f32 %v7907_v38, %v723_v41 }
 0x405   :  { %v732_v44 = vsub.f32 %v7904_v35, %v714_v62  ;;  %6946 = vpow2.f32 %v744_v50 }
 0x406   :  { %v748_v47 = vmul.f32 1.442695, %v735_v7 }
 0x407   :  { %v742_v12 = vmul.f32 1.442695, %v732_v44  ;;  %v729_v18 = vpop.xlane.xlu1 %728 }
 0x408   :  { %1122 = vmax.xlane.f32.xlu1 %v1121_v55  ;;  %v720_v42 = vpop.xlane.xlu0 %719  ;;  %v737_v30 = vsub.f32 %v7927_v54, %v729_v18 }
 0x409   :  { %v734_v56 = vsub.f32 %v7922_v39, %v720_v42  ;;  %6948 = vpow2.f32 %v742_v12 }
 0x40a   :  { %v7993_v9 = vpop.eup %6942  ;;  %6950 = vpow2.f32 %v748_v47  ;;  %v752_v5 = vmul.f32 1.442695, %v737_v30 }
 0x40b   :  { %v7995_v37 = vpop.eup %6944  ;;  %v757_v17 = vsel %vm705_vm3, %v7993_v9, 0.0  ;;  %v746_v32 = vmul.f32 1.442695, %v734_v56 }
 0x40c   :  { %758 = vadd.xlane.f32.xlu1 %v757_v17  ;;  %v754_v58 = vsel %vm705_vm3, %v7995_v37, 0.0  ;;  %v726_v28 = vpop.xlane.xlu0 %725 }
 0x40d   :  { %755 = vadd.xlane.f32.xlu0 %v754_v58  ;;  %v736_v16 = vsub.f32 %v7937_v36, %v726_v28  ;;  %6952 = vpow2.f32 %v746_v32 }
 0x40e   :  { %6954 = vpow2.f32 %v752_v5 }
 0x40f   :  { %v750_v35 = vmul.f32 1.442695, %v736_v16  ;;  %v8011_v38 = vpop.eup %6946 }
 0x410   :  { %v763_v39 = vsel %vm705_vm3, %v8011_v38, 0.0 }
 0x411   :  { %6956 = vpow2.f32 %v750_v35 }
 0x413   :  { %v8013_v29 = vpop.eup %6948 }
 0x414   :  { %v8017_v51 = vpop.eup %6950  ;;  %v760_v54 = vsel %vm705_vm3, %v8013_v29, 0.0 }
 0x415   :  { %v769_v46 = vsel %vm705_vm3, %v8017_v51, 0.0 }
 0x417   :  { %v8021_v36 = vpop.eup %6952 }
 0x418   :  { %v8025_v26 = vpop.eup %6954  ;;  %v766_v55 = vsel %vm705_vm3, %v8021_v36, 0.0 }
 0x419   :  { %v775_v58 = vsel %vm705_vm3, %v8025_v26, 0.0 }
 0x41b   :  { %v8029_v17 = vpop.eup %6956 }
 0x41c   :  { %v772_v40 = vsel %vm705_vm3, %v8029_v17, 0.0 }
 0x41d   :  { %6692 = vrot.lane.b32.xlu1 %v7717_v0, %s7292_s3 }
 0x423   :  { %6687 = vrot.lane.b32.xlu0 %v7709_v11, %s7292_s3 }
 0x441   :  { %764 = vadd.xlane.f32.xlu1 %v763_v39 }
 0x442   :  { %761 = vadd.xlane.f32.xlu0 %v760_v54 }
 0x445   :  { %770 = vadd.xlane.f32.xlu1 %v769_v46 }
 0x446   :  { %767 = vadd.xlane.f32.xlu0 %v766_v55 }
 0x449   :  { %776 = vadd.xlane.f32.xlu1 %v775_v58 }
 0x44a   :  { %773 = vadd.xlane.f32.xlu0 %v772_v40 }
 0x450   :  { %v1105_v62 = vpop.xlane.xlu1 %1104 }
 0x451   :  { %v1125_v41 = vsub.f32 %v7944_v59, %v1105_v62  ;;  %v1102_v63 = vpop.xlane.xlu0 %1101 }
 0x452   :  { %v1124_v42 = vsub.f32 %v7947_v61, %v1102_v63 }
 0x453   :  { %v1134_v44 = vmul.f32 1.442695, %v1125_v41 }
 0x454   :  { %v1132_v50 = vmul.f32 1.442695, %v1124_v42  ;;  %v6673_v61 = vpop.permute.xlu1 %6672 }
 0x455   :  { %6958 = vpow2.f32 %v1134_v44  ;;  %v6668_v7 = vpop.permute.xlu0 %6667 }
 0x456   :  { %6960 = vpow2.f32 %v1132_v50  ;;  %v6670_v12 = vunpack.i.h.bf16 %v6668_v7  ;;  %v6669_v18 = vunpack.i.l.bf16 %v6668_v7 }
 0x458   :  { %v6298_v56 = vpack.c.bf16 %v6670_v12, %v6669_v18  ;;  %v6678_v32 = vpop.permute.xlu1 %6677 }
 0x45a   :  { %6299 = vmatprep.subr.bf16.mxu0 %v6298_v56 }
 0x45c   :  { %v6683_v35 = vpop.permute.xlu1 %6682 }
 0x45f   :  { %v8037_v28 = vpop.eup %6958 }
 0x460   :  { %v8039_v47 = vpop.eup %6960  ;;  %v1151_v30 = vsel %vm705_vm3, %v8037_v28, 0.0 }
 0x461   :  { %1152 = vadd.xlane.f32.xlu1 %v1151_v30  ;;  %v1148_v59 = vsel %vm705_vm3, %v8039_v47, 0.0 }
 0x462   :  { %1149 = vadd.xlane.f32.xlu0 %v1148_v59 }
 0x486   :  { %v1108_v16 = vpop.xlane.xlu0 %1107 }
 0x487   :  { %v1126_v5 = vsub.f32 %v7962_v45, %v1108_v16 }
 0x489   :  { %v1136_v39 = vmul.f32 1.442695, %v1126_v5 }
 0x48a   :  { %v1114_v54 = vpop.xlane.xlu0 %1113 }
 0x48b   :  { %6962 = vpow2.f32 %v1136_v39  ;;  %v1128_v58 = vsub.f32 %v7965_v13, %v1114_v54  ;;  %v6675_v54 = vunpack.i.h.bf16 %v6673_v61 }
 0x48d   :  { %v1111_v46 = vpop.xlane.xlu1 %1110  ;;  %v1140_v63 = vmul.f32 1.442695, %v1128_v58 }
 0x48e   :  { %v1127_v55 = vsub.f32 %v7970_v22, %v1111_v46  ;;  %v1120_v45 = vpop.xlane.xlu0 %1119  ;;  %v6674_v46 = vunpack.i.l.bf16 %v6673_v61 }
 0x490   :  { %v1138_v40 = vmul.f32 1.442695, %v1127_v55 }
 0x491   :  { %v1117_v62 = vpop.xlane.xlu1 %1116 }
 0x492   :  { %6964 = vpow2.f32 %v1138_v40  ;;  %v1129_v41 = vsub.f32 %v7980_v10, %v1117_v62  ;;  %v6680_v40 = vunpack.i.h.bf16 %v6678_v32  ;;  %v6679_v62 = vunpack.i.l.bf16 %v6678_v32 }
 0x494   :  { %v1142_v42 = vmul.f32 1.442695, %v1129_v41  ;;  %v6302_v41 = vpack.c.bf16 %v6675_v54, %v6674_v46 }
 0x495   :  { %v8049_v44 = vpop.eup %6962  ;;  %v1123_v50 = vpop.xlane.xlu1 %1122 }
 0x496   :  { %6966 = vpow2.f32 %v1142_v42  ;;  %v1154_v7 = vsel %vm705_vm3, %v8049_v44, 0.0  ;;  %v6684_v42 = vunpack.i.l.bf16 %v6683_v35 }
 0x497   :  { %1155 = vadd.xlane.f32.xlu0 %v1154_v7  ;;  %6968 = vpow2.f32 %v1140_v63  ;;  %v6685_v63 = vunpack.i.h.bf16 %v6683_v35  ;;  %v6306_v7 = vpack.c.bf16 %v6680_v40, %v6679_v62  ;;  %v1130_v35 = vsub.f32 %v7973_v2, %v1120_v45 }
 0x499   :  { %v759_v22 = vpop.xlane.xlu1 %758  ;;  %v6310_v61 = vpack.c.bf16 %v6685_v63, %v6684_v42 }
 0x49a   :  { %v756_v12 = vpop.xlane.xlu0 %755  ;;  %6970 = vrcp.f32 %v759_v22 }
 0x49b   :  { %6972 = vrcp.f32 %v756_v12 }
 0x49c   :  { %v8053_v13 = vpop.eup %6964 }
 0x49d   :  { %v1157_v10 = vsel %vm705_vm3, %v8053_v13, 0.0 }
 0x49e   :  { %1158 = vadd.xlane.f32.xlu1 %v1157_v10  ;;  %v6688_v22 = vpop.permute.xlu0 %6687  ;;  %v1144_v10 = vmul.f32 1.442695, %v1130_v35 }
 0x4a0   :  { %v8057_v18 = vpop.eup %6966 }
 0x4a1   :  { %v1163_v30 = vsel %vm705_vm3, %v8057_v18, 0.0  ;;  %v8061_v59 = vpop.eup %6968 }
 0x4a2   :  { %1164 = vadd.xlane.f32.xlu0 %v1163_v30  ;;  %v1160_v5 = vsel %vm705_vm3, %v8061_v59, 0.0  ;;  %v6693_v30 = vpop.permute.xlu1 %6692 }
 0x4a4   :  { %v6971_v16 = vpop.eup %6970 }
 0x4a5   :  { %v6973_v39 = vpop.eup %6972  ;;  %v787_v58 = vmul.f32 %v6971_v16, %v7993_v9  ;;  %v6689_v9 = vunpack.i.l.bf16 %v6688_v22 }
 0x4a6   :  { %1161 = vadd.xlane.f32.xlu0 %v1160_v5  ;;  %v786_v55 = vmul.f32 %v6973_v39, %v7995_v37  ;;  %v6690_v37 = vunpack.i.h.bf16 %v6688_v22 }
 0x4a8   :  { %5714 = vmatprep.mubr.msk.f32.mxu0 %vm705_vm3, %v786_v55  ;;  %v8071_v32 = vpack.c.bf16 %v6690_v37, %v6689_v9 }
 0x4a9   :  { %5715 = vmatmul.mubr.msk.f32.vlgmr.msra.gmra.mrb[16].mxu0 %vm705_vm3, %v787_v58 }
 0x4aa   :  { %6301 = vmatpush3.bf16.msra.mxu0 %v6298_v56  ;;  %v1131_v56 = vsub.f32 %v7987_v52, %v1123_v50 }
 0x4ab   :  { %6303 = vmatprep.subr.bf16.mxu0 %v6302_v41 }
 0x4ac   :  { %v1146_v12 = vmul.f32 1.442695, %v1131_v56  ;;  %v6694_v56 = vunpack.i.l.bf16 %v6693_v30 }
 0x4ae   :  { %6305 = vmatpush3.bf16.msra.mxu0 %v6302_v41  ;;  %6974 = vpow2.f32 %v1146_v12 }
 0x4af   :  { %6702 = vrot.lane.b32.xlu1 %v7731_v53, %s7292_s3  ;;  %6307 = vmatprep.subr.bf16.mxu0 %v6306_v7  ;;  %6976 = vpow2.f32 %v1144_v10 }
 0x4b2   :  { %6309 = vmatpush3.bf16.msra.mxu0 %v6306_v7 }
 0x4b3   :  { %6311 = vmatprep.subr.bf16.mxu0 %v6310_v61 }
 0x4b6   :  { %6313 = vmatpush3.bf16.msra.mxu0 %v6310_v61  ;;  %v6695_v61 = vunpack.i.h.bf16 %v6693_v30 }
 0x4b7   :  { %6316 = vmatprep.subr.msk.bf16.mxu0 %vm7763_vm2, %v8071_v32 }
 0x4b8   :  { %v8088_v50 = vpop.eup %6974  ;;  %v6320_v10 = vpack.c.bf16 %v6695_v61, %v6694_v56 }
 0x4b9   :  { %v1169_v45 = vsel %vm705_vm3, %v8088_v50, 0.0  ;;  %v8092_v5 = vpop.eup %6976 }
 0x4ba   :  { %v1166_v46 = vsel %vm705_vm3, %v8092_v5, 0.0 }
 0x4bc   :  { %6697 = vrot.lane.b32.xlu0 %v7725_v8, %s7292_s3 }
 0x4c0   :  { %1390 = vrot.lane.b32.xlu0 %v7748_v3, %s7293_s26 }
 0x4c4   :  { %1394 = vrot.lane.b32.xlu0 %v7783_v23, %s7293_s26 }
 0x4c8   :  { %1398 = vrot.lane.b32.xlu0 %v7799_v49, %s7293_s26 }
 0x4cc   :  { %1402 = vrot.lane.b32.xlu0 %v7813_v27, %s7293_s26 }
 0x4ce   :  { %v765_v52 = vpop.xlane.xlu1 %764 }
 0x4cf   :  { %6978 = vrcp.f32 %v765_v52  ;;  %v762_v16 = vpop.xlane.xlu0 %761 }
 0x4d0   :  { %6980 = vrcp.f32 %v762_v16 }
 0x4d2   :  { %v771_v2 = vpop.xlane.xlu1 %770 }
 0x4d3   :  { %6982 = vrcp.f32 %v771_v2  ;;  %1170 = vadd.xlane.f32.xlu1 %v1169_v45  ;;  %v768_v39 = vpop.xlane.xlu0 %767 }
 0x4d4   :  { %6984 = vrcp.f32 %v768_v39 }
 0x4d6   :  { %v777_v54 = vpop.xlane.xlu1 %776 }
 0x4d7   :  { %6986 = vrcp.f32 %v777_v54  ;;  %1167 = vadd.xlane.f32.xlu1 %v1166_v46  ;;  %v774_v55 = vpop.xlane.xlu0 %773 }
 0x4d8   :  { %6988 = vrcp.f32 %v774_v55 }
 0x4d9   :  { %v6979_v58 = vpop.eup %6978 }
 0x4da   :  { %v6981_v40 = vpop.eup %6980  ;;  %v789_v41 = vmul.f32 %v6979_v58, %v8011_v38 }
 0x4db   :  { %v788_v62 = vmul.f32 %v6981_v40, %v8013_v29 }
 0x4dd   :  { %v6983_v63 = vpop.eup %6982  ;;  %5717 = vmatprep.mubr.msk.f32.mxu0 %vm705_vm3, %v788_v62 }
 0x4de   :  { %v6985_v42 = vpop.eup %6984  ;;  %5718 = vmatmul.mubr.msk.f32.gmra.mrb[18].mxu0 %vm705_vm3, %v789_v41  ;;  %v791_v22 = vmul.f32 %v6983_v63, %v8017_v51 }
 0x4df   :  { %v790_v7 = vmul.f32 %v6985_v42, %v8021_v36 }
 0x4e1   :  { %v6987_v37 = vpop.eup %6986  ;;  %5720 = vmatprep.mubr.msk.f32.mxu0 %vm705_vm3, %v790_v7 }
 0x4e2   :  { %v6989_v9 = vpop.eup %6988  ;;  %5721 = vmatmul.mubr.msk.f32.gmra.mrb[20].mxu0 %vm705_vm3, %v791_v22  ;;  %v793_v38 = vmul.f32 %v6987_v37, %v8025_v26 }
 0x4e3   :  { %v792_v29 = vmul.f32 %v6989_v9, %v8029_v17 }
 0x4e5   :  { %5723 = vmatprep.mubr.msk.f32.mxu0 %vm705_vm3, %v792_v29 }
 0x4e6   :  { %5724 = vmatmul.mubr.msk.f32.gmra.mrb[22].mxu0 %vm705_vm3, %v793_v38 }
 0x4e8   :  { %1392 = vrot.lane.b32.xlu1 %v7769_v15, %s7293_s26 }
 0x4ec   :  { %1396 = vrot.lane.b32.xlu1 %v7793_v33, %s7293_s26 }
 0x4ee   :  { %v1153_v51 = vpop.xlane.xlu1 %1152 }
 0x4ef   :  { %6990 = vrcp.f32 %v1153_v51  ;;  %v1150_v36 = vpop.xlane.xlu0 %1149 }
 0x4f0   :  { %6992 = vrcp.f32 %v1150_v36  ;;  %1400 = vrot.lane.b32.xlu1 %v7807_v14, %s7293_s26 }
 0x4f4   :  { %1404 = vrot.lane.b32.xlu1 %v7821_v48, %s7293_s26 }
 0x4f9   :  { %v6991_v26 = vpop.eup %6990 }
 0x4fa   :  { %v6993_v17 = vpop.eup %6992  ;;  %v1181_v12 = vmul.f32 %v6991_v26, %v8037_v28 }
 0x4fb   :  { %v1180_v35 = vmul.f32 %v6993_v17, %v8039_v47 }
 0x4fd   :  { %5770 = vmatprep.mubr.msk.f32.mxu0 %vm705_vm3, %v1180_v35 }
 0x4fe   :  { %5771 = vmatmul.mubr.msk.f32.vlgmr.msra.gmra.mrb[24].mxu0 %vm705_vm3, %v1181_v12 }
 0x4ff   :  { %6319 = vmatpush3.bf16.xpose.msk.msra.mxu0 %vm7763_vm2, %v8071_v32 }
 0x500   :  { %6322 = vmatprep.subr.msk.bf16.mxu0 %vm7763_vm2, %v6320_v10 }
 0x507   :  { %6325 = vmatpush3.bf16.xpose.msk.msra.mxu0 %vm7763_vm2, %v6320_v10 }
 0x524   :  { %v1156_v30 = vpop.xlane.xlu0 %1155 }
 0x525   :  { %6994 = vrcp.f32 %v1156_v30 }
 0x52b   :  { %v1159_v47 = vpop.xlane.xlu1 %1158 }
 0x52c   :  { %6996 = vrcp.f32 %v1159_v47 }
 0x52f   :  { %v6995_v28 = vpop.eup %6994  ;;  %v1165_v52 = vpop.xlane.xlu0 %1164 }
 0x530   :  { %v1182_v16 = vmul.f32 %v6995_v28, %v8049_v44  ;;  %6998 = vrcp.f32 %v1165_v52  ;;  %v6703_v32 = vpop.permute.xlu1 %6702 }
 0x531   :  { %v6705_v46 = vunpack.i.h.bf16 %v6703_v32  ;;  %v6704_v55 = vunpack.i.l.bf16 %v6703_v32 }
 0x532   :  { %5773 = vmatprep.mubr.msk.f32.mxu0 %vm705_vm3, %v1182_v16 }
 0x533   :  { %v1162_v2 = vpop.xlane.xlu0 %1161  ;;  %v6332_v41 = vpack.c.bf16 %v6705_v46, %v6704_v55 }
 0x534   :  { %7000 = vrcp.f32 %v1162_v2 }
 0x536   :  { %v6997_v45 = vpop.eup %6996 }
 0x537   :  { %v6698_v39 = vpop.permute.xlu0 %6697  ;;  %v1183_v54 = vmul.f32 %v6997_v45, %v8053_v13 }
 0x538   :  { %v6700_v58 = vunpack.i.h.bf16 %v6698_v39  ;;  %v6699_v40 = vunpack.i.l.bf16 %v6698_v39 }
 0x539   :  { %5774 = vmatmul.mubr.msk.f32.gmra.mrb[26].mxu0 %vm705_vm3, %v1183_v54 }
 0x53a   :  { %v6326_v62 = vpack.c.bf16 %v6700_v58, %v6699_v40  ;;  %v6999_v44 = vpop.eup %6998 }
 0x53b   :  { %v1185_v42 = vmul.f32 %v6999_v44, %v8057_v18  ;;  %v1391_v37 = vpop.permute.xlu0 %1390 }
 0x53c   :  { %6328 = vmatprep.subr.msk.bf16.mxu0 %vm7763_vm2, %v6326_v62 }
 0x53d   :  { %6331 = vmatpush3.bf16.xpose.msk.msra.mxu0 %vm7763_vm2, %v6326_v62 }
 0x53e   :  { %v7001_v63 = vpop.eup %7000  ;;  %6334 = vmatprep.subr.msk.bf16.mxu0 %vm7763_vm2, %v6332_v41 }
 0x53f   :  { %v1184_v13 = vmul.f32 %v7001_v63, %v8061_v59  ;;  %v1395_v18 = vpop.permute.xlu0 %1394 }
 0x541   :  { %5776 = vmatprep.mubr.msk.f32.mxu0 %vm705_vm3, %v1184_v13 }
 0x542   :  { %5777 = vmatmul.mubr.msk.f32.gmra.mrb[28].mxu0 %vm705_vm3, %v1185_v42 }
 0x543   :  { %v1399_v26 = vpop.permute.xlu0 %1398 }
 0x545   :  { %6337 = vmatpush3.bf16.xpose.msk.msra.mxu0 %vm7763_vm2, %v6332_v41 }
 0x547   :  { %v1403_v61 = vpop.permute.xlu0 %1402 }
 0x560   :  { %v1171_v7 = vpop.xlane.xlu1 %1170 }
 0x561   :  { %7002 = vrcp.f32 %v1171_v7 }
 0x564   :  { %v1168_v22 = vpop.xlane.xlu1 %1167 }
 0x565   :  { %7004 = vrcp.f32 %v1168_v22 }
 0x568   :  { %v1393_v38 = vpop.permute.xlu1 %1392 }
 0x56b   :  { %v7003_v9 = vpop.eup %7002 }
 0x56c   :  { %v1187_v59 = vmul.f32 %v7003_v9, %v8088_v50  ;;  %v1397_v36 = vpop.permute.xlu1 %1396 }
 0x56f   :  { %v7005_v29 = vpop.eup %7004 }
 0x570   :  { %v1186_v51 = vmul.f32 %v7005_v29, %v8092_v5  ;;  %v1401_v17 = vpop.permute.xlu1 %1400 }
 0x572   :  { %5779 = vmatprep.mubr.msk.f32.mxu0 %vm705_vm3, %v1186_v51 }
 0x573   :  { %5780 = vmatmul.mubr.msk.f32.gmra.mrb[30].mxu0 %vm705_vm3, %v1187_v59 }
 0x574   :  { %5798 = vmatprep.mubr.msk.f32.mxu0 %vm559_vm1, %v1391_v37  ;;  %v1405_v56 = vpop.permute.xlu1 %1404 }
 0x577   :  { %5799 = vmatmul.mubr.msk.f32.vlgmr.msra.gmra.mrb[32].mxu0 %vm559_vm1, %v1393_v38 }
 0x578   :  { %5801 = vmatprep.mubr.msk.f32.mxu0 %vm559_vm1, %v1395_v18 }
 0x57b   :  { %5802 = vmatmul.mubr.msk.f32.gmra.mrb[34].mxu0 %vm559_vm1, %v1397_v36 }
 0x57c   :  { %5804 = vmatprep.mubr.msk.f32.mxu0 %vm559_vm1, %v1399_v26  ;;  %v5716_v5 = vpop.f32.mrb[16].mxu0 }
 0x57d   :  { %924 = vst.msk [vmem:[#allocation2 + $0x8] sm:$0xff] %vm559_vm1, %v5716_v5  ;;  %v884_v50 = vpop.f32.mrb[17].mxu0 }
 0x57e   :  { %923 = vst.msk [vmem:[#allocation2] sm:$0xff] %vm559_vm1, %v884_v50 }
 0x57f   :  { %5805 = vmatmul.mubr.msk.f32.gmra.mrb[36].mxu0 %vm559_vm1, %v1401_v17 }
 0x580   :  { %5807 = vmatprep.mubr.msk.f32.mxu0 %vm559_vm1, %v1403_v61 }
 0x583   :  { %5808 = vmatmul.mubr.msk.f32.gmra.mrb[38].mxu0 %vm559_vm1, %v1405_v56 }
 0x5b1   :  { %v5719_v35 = vpop.f32.mrb[18].mxu0 }
 0x5b2   :  { %926 = vst.msk [vmem:[#allocation2 + $0x18] sm:$0xff] %vm559_vm1, %v5719_v35  ;;  %v894_v12 = vpop.f32.mrb[19].mxu0 }
 0x5b3   :  { %925 = vst.msk [vmem:[#allocation2 + $0x10] sm:$0xff] %vm559_vm1, %v894_v12 }
 0x5b5   :  { %v5722_v10 = vpop.f32.mrb[20].mxu0 }
 0x5b6   :  { %928 = vst.msk [vmem:[#allocation2 + $0x28] sm:$0xff] %vm559_vm1, %v5722_v10  ;;  %v904_v30 = vpop.f32.mrb[21].mxu0 }
 0x5b7   :  { %927 = vst.msk [vmem:[#allocation2 + $0x20] sm:$0xff] %vm559_vm1, %v904_v30 }
 0x5b9   :  { %v5725_v47 = vpop.f32.mrb[22].mxu0 }
 0x5ba   :  { %930 = vst.msk [vmem:[#allocation2 + $0x38] sm:$0xff] %vm559_vm1, %v5725_v47  ;;  %v914_v28 = vpop.f32.mrb[23].mxu0 }
 0x5bb   :  { %929 = vst.msk [vmem:[#allocation2 + $0x30] sm:$0xff] %vm559_vm1, %v914_v28 }
 0x5d1   :  { %v8163_v52 = vpop.f32.mrb[24].mxu0 }
 0x5d2   :  { %v8165_v16 = vpop.f32.mrb[25].mxu0 }
 0x60c   :  { %v8167_v2 = vpop.f32.mrb[26].mxu0 }
 0x60d   :  { %v8169_v32 = vpop.f32.mrb[27].mxu0 }
 0x615   :  { %v8171_v45 = vpop.f32.mrb[28].mxu0 }
 0x616   :  { %v8173_v39 = vpop.f32.mrb[29].mxu0 }
 0x646   :  { %v8175_v54 = vpop.f32.mrb[30].mxu0 }
 0x647   :  { %v8177_v46 = vpop.f32.mrb[31].mxu0 }
 0x64a   :  { %v5800_v55 = vpop.f32.mrb[32].mxu0 }
 0x64b   :  { %v1526_v58 = vadd.f32 %v5800_v55, %v7866_v19  ;;  %v1520_v40 = vpop.f32.mrb[33].mxu0 }
 0x64c   :  { %v1521_v62 = vadd.f32 %v1520_v40, %v7871_v21 }
 0x64d   :  { %v1562_v41 = vsel %vm705_vm3, %v1526_v58, -inf }
 0x64e   :  { %1563 = vmax.xlane.f32.xlu1 %v1562_v41  ;;  %v5803_v44 = vpop.f32.mrb[34].mxu0  ;;  %v1559_v63 = vsel %vm705_vm3, %v1521_v62, -inf }
 0x64f   :  { %v1536_v13 = vadd.f32 %v5803_v44, %v7882_v1  ;;  %v1530_v42 = vpop.f32.mrb[35].mxu0  ;;  %1560 = vmax.xlane.f32.xlu0 %v1559_v63 }
 0x650   :  { %v1531_v22 = vadd.f32 %v1530_v42, %v7894_v31 }
 0x651   :  { %v1568_v7 = vsel %vm705_vm3, %v1536_v13, -inf }
 0x652   :  { %v5806_v37 = vpop.f32.mrb[36].mxu0  ;;  %v1565_v51 = vsel %vm705_vm3, %v1531_v22, -inf }
 0x653   :  { %v1546_v19 = vadd.f32 %v5806_v37, %v7899_v6  ;;  %v1540_v9 = vpop.f32.mrb[37].mxu0  ;;  %1569 = vmax.xlane.f32.xlu0 %v1568_v7 }
 0x654   :  { %v1541_v29 = vadd.f32 %v1540_v9, %v7912_v60 }
 0x655   :  { %v1574_v21 = vsel %vm705_vm3, %v1546_v19, -inf }
 0x656   :  { %1575 = vmax.xlane.f32.xlu1 %v1574_v21  ;;  %v5809_v38 = vpop.f32.mrb[38].mxu0  ;;  %v1571_v18 = vsel %vm705_vm3, %v1541_v29, -inf }
 0x657   :  { %v8191_v1 = vadd.f32 %v5809_v38, %v7917_v25  ;;  %v1550_v59 = vpop.f32.mrb[39].mxu0  ;;  %1566 = vmax.xlane.f32.xlu0 %v1565_v51 }
 0x658   :  { %v8196_v6 = vadd.f32 %v1550_v59, %v7932_v20 }
 0x659   :  { %v1580_v31 = vsel %vm705_vm3, %v8191_v1, -inf }
 0x65a   :  { %1581 = vmax.xlane.f32.xlu1 %v1580_v31  ;;  %v1577_v60 = vsel %vm705_vm3, %v8196_v6, -inf }
 0x65b   :  { %1572 = vmax.xlane.f32.xlu0 %v1571_v18 }
 0x65f   :  { %1578 = vmax.xlane.f32.xlu0 %v1577_v60 }
 0x66b   :  { %6712 = vrot.lane.b32.xlu1 %v7646_v24, %s7293_s26 }
 0x66f   :  { %6717 = vrot.lane.b32.xlu1 %v7669_v34, %s7293_s26 }
 0x673   :  { %6722 = vrot.lane.b32.xlu1 %v7691_v57, %s7293_s26 }
 0x675   :  { %6707 = vrot.lane.b32.xlu0 %v7618_v4, %s7293_s26 }
 0x677   :  { %6732 = vrot.lane.b32.xlu1 %v7717_v0, %s9540_s28 }
 0x679   :  { %6727 = vrot.lane.b32.xlu0 %v7709_v11, %s9540_s28 }
 0x6db   :  { %v1564_v25 = vpop.xlane.xlu1 %1563 }
 0x6dc   :  { %v1584_v20 = vsub.f32 %v1526_v58, %v1564_v25  ;;  %v1561_v36 = vpop.xlane.xlu0 %1560 }
 0x6dd   :  { %v1583_v26 = vsub.f32 %v1521_v62, %v1561_v36 }
 0x6de   :  { %v1593_v17 = vmul.f32 1.442695, %v1584_v20 }
 0x6df   :  { %v1591_v5 = vmul.f32 1.442695, %v1583_v26 }
 0x6e0   :  { %7006 = vpow2.f32 %v1593_v17  ;;  %v1570_v50 = vpop.xlane.xlu0 %1569 }
 0x6e1   :  { %7008 = vpow2.f32 %v1591_v5  ;;  %v1586_v61 = vsub.f32 %v1536_v13, %v1570_v50 }
 0x6e3   :  { %v1597_v56 = vmul.f32 1.442695, %v1586_v61  ;;  %v1576_v35 = vpop.xlane.xlu1 %1575 }
 0x6e4   :  { %v1588_v12 = vsub.f32 %v1546_v19, %v1576_v35  ;;  %v1567_v10 = vpop.xlane.xlu0 %1566 }
 0x6e5   :  { %7010 = vpow2.f32 %v1597_v56  ;;  %v1585_v30 = vsub.f32 %v1531_v22, %v1567_v10 }
 0x6e6   :  { %v1601_v0 = vmul.f32 1.442695, %v1588_v12 }
 0x6e7   :  { %v1595_v47 = vmul.f32 1.442695, %v1585_v30  ;;  %v1582_v28 = vpop.xlane.xlu1 %1581 }
 0x6e8   :  { %v1573_v11 = vpop.xlane.xlu0 %1572 }
 0x6e9   :  { %7012 = vpow2.f32 %v1595_v47  ;;  %v1587_v55 = vsub.f32 %v1541_v29, %v1573_v11 }
 0x6ea   :  { %v8213_v58 = vpop.eup %7006  ;;  %7014 = vpow2.f32 %v1601_v0  ;;  %v1590_v0 = vsub.f32 %v8191_v1, %v1582_v28 }
 0x6eb   :  { %v8215_v40 = vpop.eup %7008  ;;  %v1599_v62 = vmul.f32 1.442695, %v1587_v55  ;;  %v6713_v41 = vpop.permute.xlu1 %6712  ;;  %v1610_v44 = vsel %vm705_vm3, %v8213_v58, 0.0 }
 0x6ec   :  { %1611 = vadd.xlane.f32.xlu1 %v1610_v44  ;;  %v1579_v63 = vpop.xlane.xlu0 %1578  ;;  %v1607_v13 = vsel %vm705_vm3, %v8215_v40, 0.0  ;;  %v6715_v19 = vunpack.i.h.bf16 %v6713_v41  ;;  %v6714_v9 = vunpack.i.l.bf16 %v6713_v41  ;;  %v1605_v47 = vmul.f32 1.442695, %v1590_v0 }
 0x6ed   :  { %1608 = vadd.xlane.f32.xlu0 %v1607_v13  ;;  %7016 = vpow2.f32 %v1599_v62  ;;  %v1589_v11 = vsub.f32 %v8196_v6, %v1579_v63 }
 0x6ee   :  { %v6342_v25 = vpack.c.bf16 %v6715_v19, %v6714_v9  ;;  %7018 = vpow2.f32 %v1605_v47 }
 0x6ef   :  { %v8221_v42 = vpop.eup %7010  ;;  %v6718_v7 = vpop.permute.xlu1 %6717  ;;  %v1603_v55 = vmul.f32 1.442695, %v1589_v11 }
 0x6f0   :  { %v6708_v22 = vpop.permute.xlu0 %6707  ;;  %v1616_v37 = vsel %vm705_vm3, %v8221_v42, 0.0  ;;  %v6720_v18 = vunpack.i.h.bf16 %v6718_v7  ;;  %v6719_v60 = vunpack.i.l.bf16 %v6718_v7 }
 0x6f1   :  { %v6710_v21 = vunpack.i.h.bf16 %v6708_v22  ;;  %v6709_v29 = vunpack.i.l.bf16 %v6708_v22  ;;  %1617 = vadd.xlane.f32.xlu1 %v1616_v37  ;;  %7020 = vpow2.f32 %v1603_v55 }
 0x6f2   :  { %v6346_v50 = vpack.c.bf16 %v6720_v18, %v6719_v60 }
 0x6f3   :  { %v8225_v38 = vpop.eup %7012  ;;  %v6338_v51 = vpack.c.bf16 %v6710_v21, %v6709_v29  ;;  %v6723_v20 = vpop.permute.xlu1 %6722 }
 0x6f4   :  { %v1613_v59 = vsel %vm705_vm3, %v8225_v38, 0.0  ;;  %v8229_v31 = vpop.eup %7014  ;;  %v6725_v17 = vunpack.i.h.bf16 %v6723_v20  ;;  %v6724_v5 = vunpack.i.l.bf16 %v6723_v20  ;;  %v6728_v61 = vpop.permute.xlu0 %6727 }
 0x6f5   :  { %1614 = vadd.xlane.f32.xlu0 %v1613_v59  ;;  %6339 = vmatprep.subr.bf16.mxu1 %v6338_v51  ;;  %v1622_v36 = vsel %vm705_vm3, %v8229_v31, 0.0  ;;  %v6730_v35 = vunpack.i.h.bf16 %v6728_v61  ;;  %v6729_v12 = vunpack.i.l.bf16 %v6728_v61 }
 0x6f6   :  { %6341 = vmatpush3.bf16.msra.mxu1 %v6338_v51  ;;  %v6350_v10 = vpack.c.bf16 %v6725_v17, %v6724_v5 }
 0x6f7   :  { %6343 = vmatprep.subr.bf16.mxu1 %v6342_v25  ;;  %v8233_v26 = vpop.eup %7016  ;;  %v6354_v30 = vpack.c.bf16 %v6730_v35, %v6729_v12 }
 0x6f8   :  { %v1619_v56 = vsel %vm705_vm3, %v8233_v26, 0.0 }
 0x6f9   :  { %1623 = vadd.xlane.f32.xlu0 %v1622_v36 }
 0x6fa   :  { %6345 = vmatpush3.bf16.msra.mxu1 %v6342_v25 }
 0x6fb   :  { %6347 = vmatprep.subr.bf16.mxu1 %v6346_v50 }
 0x6fd   :  { %1620 = vadd.xlane.f32.xlu0 %v1619_v56 }
 0x6fe   :  { %6349 = vmatpush3.bf16.msra.mxu1 %v6346_v50 }
 0x6ff   :  { %6351 = vmatprep.subr.bf16.mxu1 %v6350_v10 }
 0x702   :  { %6742 = vrot.lane.b32.xlu1 %v7731_v53, %s9540_s28  ;;  %6353 = vmatpush3.bf16.msra.mxu1 %v6350_v10  ;;  %v8251_v53 = vpop.eup %7018 }
 0x703   :  { %6356 = vmatprep.subr.msk.bf16.mxu1 %vm7763_vm2, %v6354_v30  ;;  %v8257_v1 = vpop.eup %7020 }
 0x713   :  { %6737 = vrot.lane.b32.xlu0 %v7725_v8, %s9540_s28  ;;  %v1628_v8 = vsel %vm705_vm3, %v8251_v53, 0.0 }
 0x717   :  { %1841 = vrot.lane.b32.xlu0 %v7748_v3, %s9542_s27  ;;  %v1625_v3 = vsel %vm705_vm3, %v8257_v1, 0.0 }
 0x71b   :  { %1845 = vrot.lane.b32.xlu0 %v7783_v23, %s9542_s27  ;;  %v6733_v23 = vpop.permute.xlu1 %6732 }
 0x71c   :  { %v6735_v41 = vunpack.i.h.bf16 %v6733_v23  ;;  %v6734_v44 = vunpack.i.l.bf16 %v6733_v23 }
 0x71f   :  { %1849 = vrot.lane.b32.xlu0 %v7799_v49, %s9542_s27 }
 0x723   :  { %1853 = vrot.lane.b32.xlu0 %v7813_v27, %s9542_s27 }
 0x726   :  { %1629 = vadd.xlane.f32.xlu1 %v1628_v8 }
 0x72a   :  { %1626 = vadd.xlane.f32.xlu1 %v1625_v3 }
 0x73b   :  { %1843 = vrot.lane.b32.xlu1 %v7769_v15, %s9542_s27 }
 0x73f   :  { %1847 = vrot.lane.b32.xlu1 %v7793_v33, %s9542_s27 }
 0x743   :  { %1851 = vrot.lane.b32.xlu1 %v7807_v14, %s9542_s27 }
 0x747   :  { %1855 = vrot.lane.b32.xlu1 %v7821_v48, %s9542_s27  ;;  %v6360_v48 = vpack.c.bf16 %v6735_v41, %v6734_v44 }
 0x779   :  { %v1612_v49 = vpop.xlane.xlu1 %1611 }
 0x77a   :  { %7022 = vrcp.f32 %v1612_v49  ;;  %v1609_v27 = vpop.xlane.xlu0 %1608 }
 0x77b   :  { %7024 = vrcp.f32 %v1609_v27  ;;  %v7262_v27 = vld [vmem:[%s9521_s1 + $0x8] sm:$0xff] }
 0x77e   :  { %v1618_v6 = vpop.xlane.xlu1 %1617 }
 0x77f   :  { %7026 = vrcp.f32 %v1618_v6 }
 0x782   :  { %v1615_v28 = vpop.xlane.xlu0 %1614  ;;  %v6743_v29 = vpop.permute.xlu1 %6742 }
 0x783   :  { %7028 = vrcp.f32 %v1615_v28  ;;  %v6745_v18 = vunpack.i.h.bf16 %v6743_v29 }
 0x784   :  { %v7023_v62 = vpop.eup %7022 }
 0x785   :  { %v7025_v15 = vpop.eup %7024  ;;  %v1640_v14 = vmul.f32 %v7023_v62, %v8213_v58  ;;  %v7263_v62 = vld [vmem:[%s9521_s1] sm:$0xff] }
 0x786   :  { %v1624_v33 = vpop.xlane.xlu0 %1623  ;;  %v1639_v63 = vmul.f32 %v7025_v15, %v8215_v40 }
 0x787   :  { %7030 = vrcp.f32 %v1624_v33 }
 0x788   :  { %5826 = vmatprep.mubr.msk.f32.mxu1 %vm705_vm3, %v1639_v63  ;;  %v7264_v63 = vld [vmem:[%s9521_s1 + $0x18] sm:$0xff] }
 0x789   :  { %5827 = vmatmul.mubr.msk.f32.vlgmr.msra.gmra.mrb[16].mxu1 %vm705_vm3, %v1640_v14  ;;  %v7027_v7 = vpop.eup %7026 }
 0x78a   :  { %6359 = vmatpush3.bf16.xpose.msk.msra.mxu1 %vm7763_vm2, %v6354_v30  ;;  %v1621_v13 = vpop.xlane.xlu0 %1620  ;;  %v1642_v9 = vmul.f32 %v7027_v7, %v8221_v42  ;;  %v7265_v7 = vld [vmem:[%s9521_s1 + $0x10] sm:$0xff] }
 0x78b   :  { %7032 = vrcp.f32 %v1621_v13  ;;  %6362 = vmatprep.subr.msk.bf16.mxu1 %vm7763_vm2, %v6360_v48 }
 0x78d   :  { %v7029_v22 = vpop.eup %7028 }
 0x78e   :  { %v6738_v37 = vpop.permute.xlu0 %6737  ;;  %v1641_v40 = vmul.f32 %v7029_v22, %v8225_v38  ;;  %v6744_v38 = vunpack.i.l.bf16 %v6743_v29 }
 0x78f   :  { %v6740_v58 = vunpack.i.h.bf16 %v6738_v37  ;;  %v6739_v19 = vunpack.i.l.bf16 %v6738_v37 }
 0x790   :  { %5829 = vmatprep.mubr.msk.f32.mxu1 %vm705_vm3, %v1641_v40  ;;  %v6372_v25 = vpack.c.bf16 %v6745_v18, %v6744_v38  ;;  %v7266_v40 = vld [vmem:[%s9521_s1 + $0x28] sm:$0xff]  ;;  %v7268_v18 = vld [vmem:[%s9521_s1 + $0x38] sm:$0xff] }
 0x791   :  { %v6366_v21 = vpack.c.bf16 %v6740_v58, %v6739_v19  ;;  %5830 = vmatmul.mubr.msk.f32.gmra.mrb[18].mxu1 %vm705_vm3, %v1642_v9  ;;  %v7031_v51 = vpop.eup %7030 }
 0x792   :  { %6365 = vmatpush3.bf16.xpose.msk.msra.mxu1 %vm7763_vm2, %v6360_v48  ;;  %v1644_v42 = vmul.f32 %v7031_v51, %v8229_v31 }
 0x793   :  { %6368 = vmatprep.subr.msk.bf16.mxu1 %vm7763_vm2, %v6366_v21 }
 0x795   :  { %v7033_v59 = vpop.eup %7032 }
 0x796   :  { %v1643_v60 = vmul.f32 %v7033_v59, %v8233_v26  ;;  %v1842_v26 = vpop.permute.xlu0 %1841 }
 0x798   :  { %5832 = vmatprep.mubr.msk.f32.mxu1 %vm705_vm3, %v1643_v60 }
 0x799   :  { %5833 = vmatmul.mubr.msk.f32.gmra.mrb[20].mxu1 %vm705_vm3, %v1644_v42 }
 0x79a   :  { %6371 = vmatpush3.bf16.xpose.msk.msra.mxu1 %vm7763_vm2, %v6366_v21  ;;  %v1846_v56 = vpop.permute.xlu0 %1845  ;;  %v7267_v21 = vld [vmem:[%s9521_s1 + $0x20] sm:$0xff] }
 0x79b   :  { %6374 = vmatprep.subr.msk.bf16.mxu1 %vm7763_vm2, %v6372_v25 }
 0x79e   :  { %v1850_v12 = vpop.permute.xlu0 %1849 }
 0x7a2   :  { %6377 = vmatpush3.bf16.xpose.msk.msra.mxu1 %vm7763_vm2, %v6372_v25  ;;  %v1854_v30 = vpop.permute.xlu0 %1853  ;;  %v7269_v25 = vld [vmem:[%s9521_s1 + $0x30] sm:$0xff]  ;;  %s7296_s1 = smov 8  }
 0x7b3   :  { %v1630_v20 = vpop.xlane.xlu1 %1629 }
 0x7b4   :  { %7034 = vrcp.f32 %v1630_v20 }
 0x7b7   :  { %v1627_v36 = vpop.xlane.xlu1 %1626 }
 0x7b8   :  { %7036 = vrcp.f32 %v1627_v36 }
 0x7bb   :  { %v1844_v5 = vpop.permute.xlu1 %1843 }
 0x7be   :  { %v7035_v31 = vpop.eup %7034 }
 0x7bf   :  { %v1646_v61 = vmul.f32 %v7035_v31, %v8251_v53  ;;  %v1848_v35 = vpop.permute.xlu1 %1847 }
 0x7c2   :  { %v7037_v17 = vpop.eup %7036 }
 0x7c3   :  { %v1645_v50 = vmul.f32 %v7037_v17, %v8257_v1  ;;  %v1852_v10 = vpop.permute.xlu1 %1851 }
 0x7c5   :  { %5835 = vmatprep.mubr.msk.f32.mxu1 %vm705_vm3, %v1645_v50 }
 0x7c6   :  { %5836 = vmatmul.mubr.msk.f32.gmra.mrb[22].mxu1 %vm705_vm3, %v1646_v61 }
 0x7c7   :  { %5854 = vmatprep.mubr.msk.f32.mxu1 %vm559_vm1, %v1842_v26  ;;  %v1856_v0 = vpop.permute.xlu1 %1855 }
 0x7ca   :  { %5855 = vmatmul.mubr.msk.f32.vlgmr.msra.gmra.mrb[24].mxu1 %vm559_vm1, %v1844_v5 }
 0x7cb   :  { %5857 = vmatprep.mubr.msk.f32.mxu1 %vm559_vm1, %v1846_v56 }
 0x7ce   :  { %5858 = vmatmul.mubr.msk.f32.gmra.mrb[26].mxu1 %vm559_vm1, %v1848_v35 }
 0x7cf   :  { %5860 = vmatprep.mubr.msk.f32.mxu1 %vm559_vm1, %v1850_v12 }
 0x7d2   :  { %5861 = vmatmul.mubr.msk.f32.gmra.mrb[28].mxu1 %vm559_vm1, %v1852_v10 }
 0x7d3   :  { %5863 = vmatprep.mubr.msk.f32.mxu1 %vm559_vm1, %v1854_v30 }
 0x7d6   :  { %5864 = vmatmul.mubr.msk.f32.gmra.mrb[30].mxu1 %vm559_vm1, %v1856_v0 }
 0x85c   :  { %v8307_v47 = vpop.f32.mrb[16].mxu1 }
 0x85d   :  { %v8309_v11 = vpop.f32.mrb[17].mxu1 }
 0x864   :  { %v8311_v55 = vpop.f32.mrb[18].mxu1 }
 0x865   :  { %v8313_v53 = vpop.f32.mrb[19].mxu1 }
 0x86c   :  { %v8315_v8 = vpop.f32.mrb[20].mxu1 }
 0x86d   :  { %v8317_v1 = vpop.f32.mrb[21].mxu1 }
 0x899   :  { %v8319_v3 = vpop.f32.mrb[22].mxu1 }
 0x89a   :  { %v8321_v23 = vpop.f32.mrb[23].mxu1 }
 0x89d   :  { %v5856_v49 = vpop.f32.mrb[24].mxu1 }
 0x89e   :  { %v1977_v6 = vadd.f32 %v7262_v27, %v5856_v49  ;;  %v1971_v28 = vpop.f32.mrb[25].mxu1 }
 0x89f   :  { %v1972_v15 = vadd.f32 %v7263_v62, %v1971_v28 }
 0x8a0   :  { %v2013_v41 = vsel %vm705_vm3, %v1977_v6, -inf }
 0x8a1   :  { %2014 = vmax.xlane.f32.xlu1 %v2013_v41  ;;  %v5859_v44 = vpop.f32.mrb[26].mxu1  ;;  %v2010_v33 = vsel %vm705_vm3, %v1972_v15, -inf }
 0x8a2   :  { %v1987_v14 = vadd.f32 %v7264_v63, %v5859_v44  ;;  %v1981_v48 = vpop.f32.mrb[27].mxu1  ;;  %2011 = vmax.xlane.f32.xlu0 %v2010_v33 }
 0x8a3   :  { %v1982_v22 = vadd.f32 %v7265_v7, %v1981_v48 }
 0x8a4   :  { %v2019_v13 = vsel %vm705_vm3, %v1987_v14, -inf }
 0x8a5   :  { %v5862_v37 = vpop.f32.mrb[28].mxu1  ;;  %v2016_v59 = vsel %vm705_vm3, %v1982_v22, -inf }
 0x8a6   :  { %v1997_v58 = vadd.f32 %v7266_v40, %v5862_v37  ;;  %v1991_v19 = vpop.f32.mrb[29].mxu1  ;;  %2020 = vmax.xlane.f32.xlu0 %v2019_v13 }
 0x8a7   :  { %v1992_v29 = vadd.f32 %v7267_v21, %v1991_v19 }
 0x8a8   :  { %v2025_v9 = vsel %vm705_vm3, %v1997_v58, -inf }
 0x8a9   :  { %2026 = vmax.xlane.f32.xlu1 %v2025_v9  ;;  %v5865_v51 = vpop.f32.mrb[30].mxu1  ;;  %v2022_v36 = vsel %vm705_vm3, %v1992_v29, -inf }
 0x8aa   :  { %v8349_v38 = vadd.f32 %v7268_v18, %v5865_v51  ;;  %v2001_v60 = vpop.f32.mrb[31].mxu1  ;;  %2017 = vmax.xlane.f32.xlu0 %v2016_v59 }
 0x8ab   :  { %v8356_v20 = vadd.f32 %v7269_v25, %v2001_v60 }
 0x8ac   :  { %v2031_v42 = vsel %vm705_vm3, %v8349_v38, -inf }
 0x8ad   :  { %2032 = vmax.xlane.f32.xlu1 %v2031_v42  ;;  %v2028_v26 = vsel %vm705_vm3, %v8356_v20, -inf }
 0x8ae   :  { %2023 = vmax.xlane.f32.xlu0 %v2022_v36 }
 0x8b2   :  { %2029 = vmax.xlane.f32.xlu0 %v2028_v26 }
 0x8be   :  { %6752 = vrot.lane.b32.xlu1 %v7646_v24, %s9542_s27 }
 0x8c8   :  { %6747 = vrot.lane.b32.xlu0 %v7618_v4, %s9542_s27 }
 0x92e   :  { %v2015_v31 = vpop.xlane.xlu1 %2014 }
 0x92f   :  { %v2035_v17 = vsub.f32 %v1977_v6, %v2015_v31  ;;  %v2012_v5 = vpop.xlane.xlu0 %2011 }
 0x930   :  { %v2034_v50 = vsub.f32 %v1972_v15, %v2012_v5 }
 0x931   :  { %v2044_v61 = vmul.f32 1.442695, %v2035_v17 }
 0x932   :  { %v2042_v56 = vmul.f32 1.442695, %v2034_v50 }
 0x933   :  { %7038 = vpow2.f32 %v2044_v61  ;;  %v2021_v35 = vpop.xlane.xlu0 %2020 }
 0x934   :  { %7040 = vpow2.f32 %v2042_v56  ;;  %v2037_v12 = vsub.f32 %v1987_v14, %v2021_v35 }
 0x936   :  { %v2048_v10 = vmul.f32 1.442695, %v2037_v12  ;;  %v2027_v30 = vpop.xlane.xlu1 %2026 }
 0x937   :  { %v2039_v0 = vsub.f32 %v1997_v58, %v2027_v30  ;;  %v2018_v49 = vpop.xlane.xlu0 %2017 }
 0x938   :  { %7042 = vpow2.f32 %v2048_v10  ;;  %v2036_v27 = vsub.f32 %v1982_v22, %v2018_v49 }
 0x939   :  { %v2052_v24 = vmul.f32 1.442695, %v2039_v0 }
 0x93a   :  { %v2046_v28 = vmul.f32 1.442695, %v2036_v27  ;;  %v2033_v62 = vpop.xlane.xlu1 %2032 }
 0x93b   :  { %v2024_v4 = vpop.xlane.xlu0 %2023  ;;  %v2041_v25 = vsub.f32 %v8349_v38, %v2033_v62 }
 0x93c   :  { %7044 = vpow2.f32 %v2046_v28  ;;  %v2038_v6 = vsub.f32 %v1992_v29, %v2024_v4 }
 0x93d   :  { %v8365_v41 = vpop.eup %7038  ;;  %7046 = vpow2.f32 %v2052_v24  ;;  %v2056_v26 = vmul.f32 1.442695, %v2041_v25 }
 0x93e   :  { %v8367_v15 = vpop.eup %7040  ;;  %v2050_v44 = vmul.f32 1.442695, %v2038_v6  ;;  %v2061_v33 = vsel %vm705_vm3, %v8365_v41, 0.0  ;;  %v6753_v48 = vpop.permute.xlu1 %6752 }
 0x93f   :  { %2062 = vadd.xlane.f32.xlu1 %v2061_v33  ;;  %v2030_v63 = vpop.xlane.xlu0 %2029  ;;  %v2058_v14 = vsel %vm705_vm3, %v8367_v15, 0.0  ;;  %v6755_v37 = vunpack.i.h.bf16 %v6753_v48  ;;  %v6754_v40 = vunpack.i.l.bf16 %v6753_v48 }
 0x940   :  { %7048 = vpow2.f32 %v2050_v44  ;;  %2059 = vadd.xlane.f32.xlu0 %v2058_v14  ;;  %v2040_v36 = vsub.f32 %v8356_v20, %v2030_v63 }
 0x941   :  { %v6382_v59 = vpack.c.bf16 %v6755_v37, %v6754_v40  ;;  %7050 = vpow2.f32 %v2056_v26 }
 0x942   :  { %v8373_v13 = vpop.eup %7042  ;;  %v2054_v31 = vmul.f32 1.442695, %v2040_v36 }
 0x943   :  { %v6748_v7 = vpop.permute.xlu0 %6747  ;;  %v2067_v22 = vsel %vm705_vm3, %v8373_v13, 0.0 }
 0x944   :  { %v6750_v58 = vunpack.i.h.bf16 %v6748_v7  ;;  %v6749_v19 = vunpack.i.l.bf16 %v6748_v7  ;;  %2068 = vadd.xlane.f32.xlu1 %v2067_v22  ;;  %7052 = vpow2.f32 %v2054_v31 }
 0x946   :  { %v8377_v9 = vpop.eup %7044  ;;  %v6378_v21 = vpack.c.bf16 %v6750_v58, %v6749_v19 }
 0x947   :  { %v2064_v29 = vsel %vm705_vm3, %v8377_v9, 0.0  ;;  %v8381_v51 = vpop.eup %7046 }
 0x948   :  { %2065 = vadd.xlane.f32.xlu0 %v2064_v29  ;;  %6379 = vmatprep.subr.bf16.mxu0 %v6378_v21  ;;  %v2073_v60 = vsel %vm705_vm3, %v8381_v51, 0.0  ;;  %v2301_v29 = vld [vmem:[%s9522_s8 + $0x8] sm:$0xff] }
 0x949   :  { %6381 = vmatpush3.bf16.msra.mxu0 %v6378_v21  ;;  %v2300_v21 = vld [vmem:[%s9522_s8] sm:$0xff] }
 0x94a   :  { %v8383_v18 = vpop.eup %7048  ;;  %6383 = vmatprep.subr.bf16.mxu0 %v6382_v59 }
 0x94b   :  { %v2070_v42 = vsel %vm705_vm3, %v8383_v18, 0.0  ;;  %v8395_v17 = vpop.eup %7050 }
 0x94c   :  { %2074 = vadd.xlane.f32.xlu0 %v2073_v60  ;;  %2071 = vadd.xlane.f32.xlu1 %v2070_v42  ;;  %v2079_v50 = vsel %vm705_vm3, %v8395_v17, 0.0 }
 0x94d   :  { %6385 = vmatpush3.bf16.msra.mxu0 %v6382_v59  ;;  %v2302_v59 = vld [vmem:[%s9522_s8 + $0x10] sm:$0xff] }
 0x94e   :  { %v8397_v5 = vpop.eup %7052 }
 0x95d   :  { %6762 = vrot.lane.b32.xlu1 %v7691_v57, %s9542_s27  ;;  %v2076_v57 = vsel %vm705_vm3, %v8397_v5, 0.0 }
 0x962   :  { %6757 = vrot.lane.b32.xlu0 %v7669_v34, %s9542_s27 }
 0x981   :  { %2080 = vadd.xlane.f32.xlu0 %v2079_v50  ;;  %2077 = vadd.xlane.f32.xlu1 %v2076_v57 }
 0x992   :  { %1359 = vrot.lane.b32.xlu1 %v8163_v52, %s7296_s1 }
 0x996   :  { %1808 = vrot.lane.b32.xlu1 %v8309_v11, %s7297_s21 }
 0x997   :  { %1357 = vrot.lane.b32.xlu0 %v8165_v16, %s7296_s1 }
 0x99a   :  { %1810 = vrot.lane.b32.xlu1 %v8307_v47, %s7297_s21 }
 0x99b   :  { %1361 = vrot.lane.b32.xlu0 %v8169_v32, %s7296_s1 }
 0x99e   :  { %1363 = vrot.lane.b32.xlu1 %v8167_v2, %s7296_s1 }
 0x99f   :  { %1812 = vrot.lane.b32.xlu0 %v8313_v53, %s7297_s21 }
 0x9a2   :  { %1814 = vrot.lane.b32.xlu1 %v8311_v55, %s7297_s21 }
 0x9a3   :  { %1365 = vrot.lane.b32.xlu0 %v8173_v39, %s7296_s1 }
 0x9a6   :  { %1367 = vrot.lane.b32.xlu1 %v8171_v45, %s7296_s1 }
 0x9cc   :  { %v2063_v52 = vpop.xlane.xlu1 %2062 }
 0x9cd   :  { %v2060_v34 = vpop.xlane.xlu0 %2059 }
 0x9ce   :  { %7054 = vrcp.f32 %v2060_v34 }
 0x9cf   :  { %7056 = vrcp.f32 %v2063_v52 }
 0x9d1   :  { %v2069_v16 = vpop.xlane.xlu1 %2068 }
 0x9d5   :  { %v2066_v32 = vpop.xlane.xlu0 %2065 }
 0x9d6   :  { %7058 = vrcp.f32 %v2066_v32 }
 0x9d7   :  { %7060 = vrcp.f32 %v2069_v16 }
 0x9d8   :  { %v7055_v47 = vpop.eup %7054 }
 0x9d9   :  { %v2072_v11 = vpop.xlane.xlu1 %2071  ;;  %v2075_v2 = vpop.xlane.xlu0 %2074  ;;  %v2090_v38 = vmul.f32 %v7055_v47, %v8367_v15 }
 0x9da   :  { %7062 = vrcp.f32 %v2072_v11  ;;  %v7057_v12 = vpop.eup %7056 }
 0x9db   :  { %5882 = vmatprep.mubr.msk.f32.mxu0 %vm705_vm3, %v2090_v38  ;;  %7064 = vrcp.f32 %v2075_v2  ;;  %v2091_v30 = vmul.f32 %v7057_v12, %v8365_v41  ;;  %v5207_v12 = vld [vmem:[%s9523_s9] ss:$0 sm:$0xff] }
 0x9dd   :  { %v6763_v55 = vpop.permute.xlu1 %6762  ;;  %v6758_v53 = vpop.permute.xlu0 %6757 }
 0x9de   :  { %v6765_v39 = vunpack.i.h.bf16 %v6763_v55  ;;  %v6764_v20 = vunpack.i.l.bf16 %v6763_v55  ;;  %v6760_v61 = vunpack.i.h.bf16 %v6758_v53  ;;  %v6759_v45 = vunpack.i.l.bf16 %v6758_v53 }
 0x9e0   :  { %v6386_v56 = vpack.c.bf16 %v6760_v61, %v6759_v45  ;;  %v6390_v35 = vpack.c.bf16 %v6765_v39, %v6764_v20  ;;  %v7059_v10 = vpop.eup %7058 }
 0x9e1   :  { %v7061_v0 = vpop.eup %7060  ;;  %v2092_v49 = vmul.f32 %v7059_v10, %v8377_v9  ;;  %v7270_v10 = vld [vmem:[%s9549_s23 + $0x8] sm:$0xff] }
 0x9e2   :  { %6387 = vmatprep.subr.bf16.mxu0 %v6386_v56  ;;  %v2093_v24 = vmul.f32 %v7061_v0, %v8373_v13 }
 0x9e3   :  { %6389 = vmatpush3.bf16.msra.mxu0 %v6386_v56 }
 0x9e4   :  { %6391 = vmatprep.subr.bf16.mxu0 %v6390_v35  ;;  %v7063_v27 = vpop.eup %7062 }
 0x9e5   :  { %v7065_v28 = vpop.eup %7064  ;;  %v2094_v62 = vmul.f32 %v7063_v27, %v8383_v18  ;;  %v2303_v18 = vld [vmem:[%s9522_s8 + $0x18] sm:$0xff]  ;;  %s7299_s8 = smov 88  }
 0x9e6   :  { %v2095_v4 = vmul.f32 %v7065_v28, %v8381_v51  ;;  %v6394_v51 = vpack.c.bf16 %v2301_v29, %v2300_v21  ;;  %v6398_v60 = vpack.c.bf16 %v2303_v18, %v2302_v59  ;;  %v7275_v29 = vld [vmem:[%s9549_s23 + $0x20] sm:$0xff] }
 0x9e7   :  { %6393 = vmatpush3.bf16.msra.mxu0 %v6390_v35 }
 0x9e8   :  { %6395 = vmatprep.subr.bf16.mxu0 %v6394_v51 }
 0x9ea   :  { %5883 = vmatmul.mubr.msk.f32.vlgmr.msra.gmra.mrb[40].mxu0 %vm705_vm3, %v2091_v30 }
 0x9eb   :  { %5885 = vmatprep.mubr.msk.f32.mxu0 %vm705_vm3, %v2092_v49  ;;  %6397 = vmatpush3.bf16.msra.mxu0 %v6394_v51  ;;  %v7271_v49 = vld [vmem:[%s9549_s23] sm:$0xff] }
 0x9ec   :  { %6399 = vmatprep.subr.bf16.mxu0 %v6398_v60 }
 0x9ee   :  { %5886 = vmatmul.mubr.msk.f32.gmra.mrb[42].mxu0 %vm705_vm3, %v2093_v24 }
 0x9ef   :  { %5888 = vmatprep.mubr.msk.f32.mxu0 %vm705_vm3, %v2094_v62  ;;  %6401 = vmatpush3.bf16.msra.mxu0 %v6398_v60 }
 0x9f2   :  { %5889 = vmatmul.mubr.msk.f32.gmra.mrb[44].mxu0 %vm705_vm3, %v2095_v4 }
 0xa0e   :  { %v2078_v6 = vpop.xlane.xlu1 %2077  ;;  %v2081_v41 = vpop.xlane.xlu0 %2080 }
 0xa0f   :  { %7066 = vrcp.f32 %v2078_v6 }
 0xa10   :  { %7068 = vrcp.f32 %v2081_v41 }
 0xa12   :  { %v1360_v15 = vpop.permute.xlu1 %1359  ;;  %v1358_v44 = vpop.permute.xlu0 %1357 }
 0xa13   :  { %1383 = vst.msk [vmem:[#allocation2 + $0x8] sm:$0xff] %vm1381_vm4, %v1360_v15  ;;  %1382 = vst.msk [vmem:[#allocation2] sm:$0xff] %vm1381_vm4, %v1358_v44  ;;  %v7272_v44 = vld [vmem:[%s9549_s23 + $0x18] sm:$0xff] }
 0xa16   :  { %v1809_v33 = vpop.permute.xlu1 %1808  ;;  %v1362_v63 = vpop.permute.xlu0 %1361 }
 0xa17   :  { %1833 = vst.msk [vmem:[#allocation2] sm:$0xff] %vm1832_vm5, %v1809_v33 }
 0xa18   :  { %1384 = vst.msk [vmem:[#allocation2 + $0x10] sm:$0xff] %vm1381_vm4, %v1362_v63 }
 0xa19   :  { %v7067_v14 = vpop.eup %7066 }
 0xa1a   :  { %v7069_v48 = vpop.eup %7068  ;;  %v1811_v13 = vpop.permute.xlu1 %1810  ;;  %v2096_v22 = vmul.f32 %v7067_v14, %v8397_v5  ;;  %v7273_v14 = vld [vmem:[%s9549_s23 + $0x10] sm:$0xff] }
 0xa1b   :  { %v1813_v7 = vpop.permute.xlu0 %1812  ;;  %1834 = vst.msk [vmem:[#allocation2 + $0x8] sm:$0xff] %vm1832_vm5, %v1811_v13  ;;  %v2097_v37 = vmul.f32 %v7069_v48, %v8395_v17 }
 0xa1c   :  { %1835 = vst.msk [vmem:[#allocation2 + $0x10] sm:$0xff] %vm1832_vm5, %v1813_v7  ;;  %5891 = vmatprep.mubr.msk.f32.mxu0 %vm705_vm3, %v2096_v22 }
 0xa1d   :  { %5892 = vmatmul.mubr.msk.f32.gmra.mrb[46].mxu0 %vm705_vm3, %v2097_v37 }
 0xa1e   :  { %v1364_v40 = vpop.permute.xlu1 %1363 }
 0xa1f   :  { %v1366_v58 = vpop.permute.xlu0 %1365  ;;  %1385 = vst.msk [vmem:[#allocation2 + $0x18] sm:$0xff] %vm1381_vm4, %v1364_v40 }
 0xa20   :  { %1386 = vst.msk [vmem:[#allocation2 + $0x20] sm:$0xff] %vm1381_vm4, %v1366_v58 }
 0xa22   :  { %v1815_v19 = vpop.permute.xlu1 %1814 }
 0xa23   :  { %1836 = vst.msk [vmem:[#allocation2 + $0x18] sm:$0xff] %vm1832_vm5, %v1815_v19  ;;  %v7274_v19 = vld [vmem:[%s9549_s23 + $0x28] sm:$0xff] }
 0xa26   :  { %v1368_v9 = vpop.permute.xlu1 %1367 }
 0xa27   :  { %1387 = vst.msk [vmem:[#allocation2 + $0x28] sm:$0xff] %vm1381_vm4, %v1368_v9 }
 0xabd   :  { %v5884_v42 = vpop.f32.mrb[40].mxu0 }
 0xabe   :  { %2261 = vrot.lane.b32.xlu1 %v5884_v42, %s7298_s7  ;;  %v2212_v25 = vpop.f32.mrb[41].mxu0 }
 0xabf   :  { %2259 = vrot.lane.b32.xlu0 %v2212_v25, %s7298_s7 }
 0xac1   :  { %v5887_v36 = vpop.f32.mrb[42].mxu0 }
 0xac2   :  { %1818 = vrot.lane.b32.xlu1 %v8315_v8, %s7297_s21  ;;  %v2222_v26 = vpop.f32.mrb[43].mxu0 }
 0xac3   :  { %1816 = vrot.lane.b32.xlu0 %v8317_v1, %s7297_s21 }
 0xac5   :  { %v5890_v31 = vpop.f32.mrb[44].mxu0 }
 0xac6   :  { %2265 = vrot.lane.b32.xlu1 %v5887_v36, %s7298_s7  ;;  %v2232_v17 = vpop.f32.mrb[45].mxu0 }
 0xac7   :  { %2263 = vrot.lane.b32.xlu0 %v2222_v26, %s7298_s7 }
 0xaca   :  { %1371 = vrot.lane.b32.xlu1 %v8175_v54, %s7296_s1 }
 0xacb   :  { %1369 = vrot.lane.b32.xlu0 %v8177_v46, %s7296_s1 }
 0xace   :  { %2269 = vrot.lane.b32.xlu1 %v5890_v31, %s7298_s7  ;;  %v2543_v31 = vld [vmem:[%s9524_s11] sm:$0xff] }
 0xacf   :  { %2267 = vrot.lane.b32.xlu0 %v2232_v17, %s7298_s7  ;;  %v2544_v17 = vld [vmem:[%s9524_s11 + $0x8] sm:$0xff] }
 0xad2   :  { %1822 = vrot.lane.b32.xlu1 %v8319_v3, %s7297_s21 }
 0xad3   :  { %1820 = vrot.lane.b32.xlu0 %v8321_v23, %s7297_s21 }
 0xaf0   :  { %v5893_v8 = vpop.f32.mrb[46].mxu0 }
 0xaf1   :  { %2273 = vrot.lane.b32.xlu1 %v5893_v8, %s7298_s7  ;;  %v2242_v1 = vpop.f32.mrb[47].mxu0  ;;  %v6402_v8 = vpack.c.bf16 %v2544_v17, %v2543_v31 }
 0xaf2   :  { %2271 = vrot.lane.b32.xlu0 %v2242_v1, %s7298_s7  ;;  %v2545_v1 = vld [vmem:[%s9524_s11 + $0x10] sm:$0xff] }
 0xaf3   :  { %6403 = vmatprep.subr.bf16.mxu1 %v6402_v8 }
 0xaf4   :  { %6405 = vmatpush3.bf16.msra.mxu1 %v6402_v8 }
 0xb30   :  { %v2262_v54 = vpop.permute.xlu1 %2261 }
 0xb31   :  { %2285 = vst.msk [vmem:[#allocation2 + $0x8] sm:$0xff] %vm2283_vm6, %v2262_v54  ;;  %v2260_v46 = vpop.permute.xlu0 %2259  ;;  %v2546_v54 = vld [vmem:[%s9524_s11 + $0x18] sm:$0xff] }
 0xb32   :  { %2284 = vst.msk [vmem:[#allocation2] sm:$0xff] %vm2283_vm6, %v2260_v46  ;;  %v6406_v46 = vpack.c.bf16 %v2546_v54, %v2545_v1 }
 0xb34   :  { %v1819_v5 = vpop.permute.xlu1 %1818  ;;  %6407 = vmatprep.subr.bf16.mxu1 %v6406_v46 }
 0xb35   :  { %1838 = vst.msk [vmem:[#allocation2 + $0x28] sm:$0xff] %vm1832_vm5, %v1819_v5  ;;  %v1817_v3 = vpop.permute.xlu0 %1816  ;;  %6409 = vmatpush3.bf16.msra.mxu1 %v6406_v46 }
 0xb36   :  { %1837 = vst.msk [vmem:[#allocation2 + $0x20] sm:$0xff] %vm1832_vm5, %v1817_v3  ;;  %v7276_v3 = vld [vmem:[%s9549_s23 + $0x38] sm:$0xff] }
 0xb38   :  { %v2266_v23 = vpop.permute.xlu1 %2265  ;;  %v2293_v34 = vld [vmem:[#allocation2 + $0x8] sm:$0xff] }
 0xb39   :  { %2287 = vst.msk [vmem:[#allocation2 + $0x18] sm:$0xff] %vm2283_vm6, %v2266_v23  ;;  %v2264_v50 = vpop.permute.xlu0 %2263  ;;  %v2292_v57 = vld [vmem:[#allocation2] sm:$0xff] }
 0xb3a   :  { %2286 = vst.msk [vmem:[#allocation2 + $0x10] sm:$0xff] %vm2283_vm6, %v2264_v50  ;;  %5902 = vmatprep.mubr.msk.f32.mxu0 %vm90_vm0, %v2292_v57  ;;  %v7277_v57 = vld [vmem:[%s9549_s23 + $0x30] sm:$0xff] }
 0xb3b   :  { %5903 = vmatmul.mubr.msk.f32.vlgmr.msra.gmra.mrb[48].mxu0 %vm90_vm0, %v2293_v34 }
 0xb3c   :  { %v1372_v52 = vpop.permute.xlu1 %1371 }
 0xb3d   :  { %1389 = vst.msk [vmem:[#allocation2 + $0x38] sm:$0xff] %vm1381_vm4, %v1372_v52  ;;  %v1370_v16 = vpop.permute.xlu0 %1369 }
 0xb3e   :  { %1388 = vst.msk [vmem:[#allocation2 + $0x30] sm:$0xff] %vm1381_vm4, %v1370_v16 }
 0xb40   :  { %v2270_v32 = vpop.permute.xlu1 %2269  ;;  %v2295_v2 = vld [vmem:[#allocation2 + $0x18] sm:$0xff] }
 0xb41   :  { %2289 = vst.msk [vmem:[#allocation2 + $0x28] sm:$0xff] %vm2283_vm6, %v2270_v32  ;;  %v2268_v47 = vpop.permute.xlu0 %2267  ;;  %v2294_v11 = vld [vmem:[#allocation2 + $0x10] sm:$0xff] }
 0xb42   :  { %2288 = vst.msk [vmem:[#allocation2 + $0x20] sm:$0xff] %vm2283_vm6, %v2268_v47  ;;  %5905 = vmatprep.mubr.msk.f32.mxu0 %vm90_vm0, %v2294_v11 }
 0xb43   :  { %5906 = vmatmul.mubr.msk.f32.gmra.mrb[50].mxu0 %vm90_vm0, %v2295_v2 }
 0xb44   :  { %v1823_v38 = vpop.permute.xlu1 %1822 }
 0xb45   :  { %1840 = vst.msk [vmem:[#allocation2 + $0x38] sm:$0xff] %vm1832_vm5, %v1823_v38  ;;  %v1821_v55 = vpop.permute.xlu0 %1820 }
 0xb46   :  { %1839 = vst.msk [vmem:[#allocation2 + $0x30] sm:$0xff] %vm1832_vm5, %v1821_v55 }
 0xb48   :  { %v2297_v39 = vld [vmem:[#allocation2 + $0x28] sm:$0xff] }
 0xb49   :  { %v2296_v53 = vld [vmem:[#allocation2 + $0x20] sm:$0xff] }
 0xb4a   :  { %5908 = vmatprep.mubr.msk.f32.mxu0 %vm90_vm0, %v2296_v53 }
 0xb4b   :  { %5909 = vmatmul.mubr.msk.f32.gmra.mrb[52].mxu0 %vm90_vm0, %v2297_v39 }
 0xb63   :  { %v2274_v20 = vpop.permute.xlu1 %2273 }
 0xb64   :  { %2291 = vst.msk [vmem:[#allocation2 + $0x38] sm:$0xff] %vm2283_vm6, %v2274_v20  ;;  %v2272_v61 = vpop.permute.xlu0 %2271 }
 0xb65   :  { %2290 = vst.msk [vmem:[#allocation2 + $0x30] sm:$0xff] %vm2283_vm6, %v2272_v61 }
 0xb6b   :  { %v2299_v56 = vld [vmem:[#allocation2 + $0x38] sm:$0xff] }
 0xb6c   :  { %v2298_v45 = vld [vmem:[#allocation2 + $0x30] sm:$0xff] }
 0xb6d   :  { %5911 = vmatprep.mubr.msk.f32.mxu0 %vm90_vm0, %v2298_v45 }
 0xb6e   :  { %5912 = vmatmul.mubr.msk.f32.gmra.mrb[54].mxu0 %vm90_vm0, %v2299_v56 }
 0xc0e   :  { %v5904_v35 = vpop.f32.mrb[48].mxu0 }
 0xc0f   :  { %v2434_v30 = vadd.f32 %v7270_v10, %v5904_v35  ;;  %v2394_v0 = vpop.f32.mrb[49].mxu0 }
 0xc10   :  { %v2433_v27 = vadd.f32 %v7271_v49, %v2394_v0  ;;  %v5208_v49 = vld [vmem:[%s9525_s10] ss:$0 sm:$0xff] }
 0xc11   :  { %v8512_v24 = vadd.f32 %v5207_v12, %v2434_v30 }
 0xc12   :  { %v8514_v28 = vadd.f32 %v5207_v12, %v2433_v27 }
 0xc13   :  { %v2466_v62 = vmul.f32 %v8512_v24, %v8512_v24 }
 0xc14   :  { %v2465_v4 = vmul.f32 %v8514_v28, %v8514_v28 }
 0xc15   :  { %v2476_v6 = vsel %vm90_vm0, %v2466_v62, 0.0 }
 0xc16   :  { %2477 = vadd.xlane.f32.xlu1 %v2476_v6  ;;  %v5907_v41 = vpop.f32.mrb[50].mxu0  ;;  %v2473_v15 = vsel %vm90_vm0, %v2465_v4, 0.0 }
 0xc17   :  { %v2436_v33 = vadd.f32 %v7272_v44, %v5907_v41  ;;  %2474 = vadd.xlane.f32.xlu0 %v2473_v15  ;;  %v2404_v63 = vpop.f32.mrb[51].mxu0 }
 0xc18   :  { %v2435_v48 = vadd.f32 %v7273_v14, %v2404_v63 }
 0xc19   :  { %v8528_v13 = vadd.f32 %v5207_v12, %v2436_v33 }
 0xc1a   :  { %v8530_v7 = vadd.f32 %v5207_v12, %v2435_v48 }
 0xc1b   :  { %v2468_v58 = vmul.f32 %v8528_v13, %v8528_v13 }
 0xc1c   :  { %v2467_v22 = vmul.f32 %v8530_v7, %v8530_v7 }
 0xc1d   :  { %v2482_v60 = vsel %vm90_vm0, %v2468_v58, 0.0 }
 0xc1e   :  { %v5910_v37 = vpop.f32.mrb[52].mxu0  ;;  %v2479_v40 = vsel %vm90_vm0, %v2467_v22, 0.0 }
 0xc1f   :  { %v2438_v9 = vadd.f32 %v7274_v19, %v5910_v37  ;;  %2480 = vadd.xlane.f32.xlu0 %v2479_v40  ;;  %v2414_v21 = vpop.f32.mrb[53].mxu0 }
 0xc20   :  { %v2437_v51 = vadd.f32 %v7275_v29, %v2414_v21 }
 0xc21   :  { %v8543_v59 = vadd.f32 %v5207_v12, %v2438_v9 }
 0xc22   :  { %v8545_v18 = vadd.f32 %v5207_v12, %v2437_v51 }
 0xc23   :  { %2483 = vadd.xlane.f32.xlu0 %v2482_v60  ;;  %v2470_v42 = vmul.f32 %v8543_v59, %v8543_v59 }
 0xc24   :  { %v2469_v25 = vmul.f32 %v8545_v18, %v8545_v18 }
 0xc25   :  { %v2488_v36 = vsel %vm90_vm0, %v2470_v42, 0.0 }
 0xc26   :  { %2489 = vadd.xlane.f32.xlu1 %v2488_v36  ;;  %v2485_v26 = vsel %vm90_vm0, %v2469_v25, 0.0 }
 0xc27   :  { %2486 = vadd.xlane.f32.xlu0 %v2485_v26 }
 0xc41   :  { %v5913_v5 = vpop.f32.mrb[54].mxu0 }
 0xc42   :  { %v2440_v23 = vadd.f32 %v7276_v3, %v5913_v5  ;;  %v2424_v50 = vpop.f32.mrb[55].mxu0 }
 0xc43   :  { %v2439_v34 = vadd.f32 %v7277_v57, %v2424_v50  ;;  %v5209_v57 = vld [vmem:[%s9526_s12] ss:$0 sm:$0xff] }
 0xc44   :  { %v8572_v52 = vadd.f32 %v5207_v12, %v2440_v23 }
 0xc45   :  { %v8574_v16 = vadd.f32 %v5207_v12, %v2439_v34 }
 0xc46   :  { %v2472_v32 = vmul.f32 %v8572_v52, %v8572_v52 }
 0xc47   :  { %v2471_v47 = vmul.f32 %v8574_v16, %v8574_v16 }
 0xc48   :  { %v2494_v11 = vsel %vm90_vm0, %v2472_v32, 0.0 }
 0xc49   :  { %2495 = vadd.xlane.f32.xlu1 %v2494_v11  ;;  %v2491_v2 = vsel %vm90_vm0, %v2471_v47, 0.0 }
 0xc4a   :  { %2492 = vadd.xlane.f32.xlu0 %v2491_v2 }
 0xca3   :  { %v2478_v38 = vpop.xlane.xlu1 %2477 }
 0xca4   :  { %v2498_v55 = vmul.f32 0.03125, %v2478_v38  ;;  %v2475_v53 = vpop.xlane.xlu0 %2474 }
 0xca5   :  { %v2497_v39 = vmul.f32 0.03125, %v2475_v53 }
 0xca6   :  { %v2506_v20 = vadd.f32 1.1920929e-07, %v2498_v55 }
 0xca7   :  { %v2505_v61 = vadd.f32 1.1920929e-07, %v2497_v39 }
 0xca8   :  { %7070 = vrsqrt.f32 %v2506_v20 }
 0xca9   :  { %7072 = vrsqrt.f32 %v2505_v61 }
 0xcac   :  { %v2481_v45 = vpop.xlane.xlu0 %2480 }
 0xcad   :  { %v2499_v56 = vmul.f32 0.03125, %v2481_v45 }
 0xcaf   :  { %v2507_v35 = vadd.f32 1.1920929e-07, %v2499_v56 }
 0xcb0   :  { %v2484_v12 = vpop.xlane.xlu0 %2483 }
 0xcb1   :  { %7074 = vrsqrt.f32 %v2507_v35  ;;  %v2500_v10 = vmul.f32 0.03125, %v2484_v12 }
 0xcb2   :  { %v7071_v30 = vpop.eup %7070 }
 0xcb3   :  { %v7073_v0 = vpop.eup %7072  ;;  %v2522_v27 = vmul.f32 %v7071_v30, %v8512_v24  ;;  %v2508_v62 = vadd.f32 1.1920929e-07, %v2500_v10  ;;  %v2490_v4 = vpop.xlane.xlu1 %2489 }
 0xcb4   :  { %v2502_v6 = vmul.f32 0.03125, %v2490_v4  ;;  %v2487_v41 = vpop.xlane.xlu0 %2486  ;;  %v2521_v15 = vmul.f32 %v7073_v0, %v8514_v28 }
 0xcb5   :  { %7076 = vrsqrt.f32 %v2508_v62  ;;  %v2501_v44 = vmul.f32 0.03125, %v2487_v41  ;;  %v2536_v14 = vmul.f32 %v5208_v49, %v2522_v27 }
 0xcb6   :  { %v2510_v33 = vadd.f32 1.1920929e-07, %v2502_v6  ;;  %v2535_v63 = vmul.f32 %v5208_v49, %v2521_v15 }
 0xcb7   :  { %v2509_v48 = vadd.f32 1.1920929e-07, %v2501_v44 }
 0xcb8   :  { %7078 = vrsqrt.f32 %v2510_v33  ;;  %5922 = vmatprep.mubr.msk.f32.mxu1 %vm90_vm0, %v2535_v63 }
 0xcb9   :  { %7080 = vrsqrt.f32 %v2509_v48  ;;  %5923 = vmatmul.mubr.msk.f32.vlgmr.msra.gmra.mrb[32].mxu1 %vm90_vm0, %v2536_v14 }
 0xcbb   :  { %v7075_v22 = vpop.eup %7074 }
 0xcbc   :  { %v2523_v37 = vmul.f32 %v7075_v22, %v8530_v7 }
 0xcbe   :  { %v2537_v40 = vmul.f32 %v5208_v49, %v2523_v37 }
 0xcbf   :  { %v7077_v58 = vpop.eup %7076 }
 0xcc0   :  { %5925 = vmatprep.mubr.msk.f32.mxu1 %vm90_vm0, %v2537_v40  ;;  %v2524_v19 = vmul.f32 %v7077_v58, %v8528_v13 }
 0xcc2   :  { %v7079_v9 = vpop.eup %7078  ;;  %v2538_v21 = vmul.f32 %v5208_v49, %v2524_v19 }
 0xcc3   :  { %v7081_v29 = vpop.eup %7080  ;;  %v2526_v51 = vmul.f32 %v7079_v9, %v8543_v59 }
 0xcc4   :  { %5926 = vmatmul.mubr.msk.f32.gmra.mrb[34].mxu1 %vm90_vm0, %v2538_v21  ;;  %v2525_v60 = vmul.f32 %v7081_v29, %v8545_v18  ;;  %v8679_v21 = vld [vmem:[%s9527_s2 + $0x8] sm:$0xff]  ;;  %v8684_v29 = vld [vmem:[%s9527_s2] sm:$0xff] }
 0xcc5   :  { %v2540_v25 = vmul.f32 %v5208_v49, %v2526_v51 }
 0xcc6   :  { %v2539_v42 = vmul.f32 %v5208_v49, %v2525_v60 }
 0xcc8   :  { %5928 = vmatprep.mubr.msk.f32.mxu1 %vm90_vm0, %v2539_v42 }
 0xcc9   :  { %5929 = vmatmul.mubr.msk.f32.gmra.mrb[36].mxu1 %vm90_vm0, %v2540_v25 }
 0xcd6   :  { %v2496_v36 = vpop.xlane.xlu1 %2495 }
 0xcd7   :  { %v2504_v26 = vmul.f32 0.03125, %v2496_v36  ;;  %v2493_v31 = vpop.xlane.xlu0 %2492  ;;  %v8691_v36 = vld [vmem:[%s9527_s2 + $0x18] sm:$0xff] }
 0xcd8   :  { %v2503_v17 = vmul.f32 0.03125, %v2493_v31 }
 0xcd9   :  { %v2512_v8 = vadd.f32 1.1920929e-07, %v2504_v26 }
 0xcda   :  { %v2511_v1 = vadd.f32 1.1920929e-07, %v2503_v17 }
 0xcdb   :  { %7082 = vrsqrt.f32 %v2512_v8 }
 0xcdc   :  { %7084 = vrsqrt.f32 %v2511_v1 }
 0xce5   :  { %v7083_v54 = vpop.eup %7082 }
 0xce6   :  { %v7085_v46 = vpop.eup %7084  ;;  %v2528_v5 = vmul.f32 %v7083_v54, %v8572_v52  ;;  %v8699_v54 = vld [vmem:[%s9527_s2 + $0x10] sm:$0xff] }
 0xce7   :  { %v2527_v3 = vmul.f32 %v7085_v46, %v8574_v16  ;;  %v8704_v46 = vld [vmem:[%s9527_s2 + $0x28] sm:$0xff] }
 0xce8   :  { %v2542_v50 = vmul.f32 %v5208_v49, %v2528_v5 }
 0xce9   :  { %v2541_v23 = vmul.f32 %v5208_v49, %v2527_v3 }
 0xceb   :  { %5931 = vmatprep.mubr.msk.f32.mxu1 %vm90_vm0, %v2541_v23 }
 0xcec   :  { %5932 = vmatmul.mubr.msk.f32.gmra.mrb[38].mxu1 %vm90_vm0, %v2542_v50 }
 0xd8c   :  { %v5924_v34 = vpop.f32.mrb[32].mxu1 }
 0xd8d   :  { %v8604_v32 = vadd.f32 %v5924_v34, %v5209_v57  ;;  %v2644_v47 = vpop.f32.mrb[33].mxu1  ;;  %v8712_v34 = vld [vmem:[%s9527_s2 + $0x20] sm:$0xff] }
 0xd8e   :  { %v8606_v11 = vadd.f32 %v5209_v57, %v2644_v47  ;;  %v8717_v47 = vld [vmem:[%s9527_s2 + $0x38] sm:$0xff] }
 0xd90   :  { %5950 = vmatprep.mubr.msk.f32.mxu0 %vm559_vm1, %v8606_v11  ;;  %v8612_v2 = vpack.i.bf16 %v8604_v32, %v8606_v11 }
 0xd92   :  { %6767 = vrot.lane.b32.xlu0 %v8612_v2, %s7287_s30 }
 0xd97   :  { %v5927_v38 = vpop.f32.mrb[34].mxu1 }
 0xd98   :  { %v8616_v55 = vadd.f32 %v5927_v38, %v5209_v57  ;;  %v2654_v53 = vpop.f32.mrb[35].mxu1 }
 0xd99   :  { %v8618_v39 = vadd.f32 %v5209_v57, %v2654_v53 }
 0xd9b   :  { %v8622_v20 = vpack.i.bf16 %v8616_v55, %v8618_v39 }
 0xd9c   :  { %v5930_v61 = vpop.f32.mrb[36].mxu1 }
 0xd9d   :  { %v8624_v45 = vadd.f32 %v5930_v61, %v5209_v57  ;;  %v2664_v56 = vpop.f32.mrb[37].mxu1  ;;  %6772 = vrot.lane.b32.xlu1 %v8622_v20, %s7287_s30 }
 0xd9e   :  { %v8628_v35 = vadd.f32 %v5209_v57, %v2664_v56 }
 0xda0   :  { %v8632_v12 = vpack.i.bf16 %v8624_v45, %v8628_v35 }
 0xda2   :  { %6777 = vrot.lane.b32.xlu1 %v8632_v12, %s7287_s30 }
 0xdbf   :  { %v5933_v10 = vpop.f32.mrb[38].mxu1 }
 0xdc0   :  { %v8636_v30 = vadd.f32 %v5933_v10, %v5209_v57  ;;  %v2674_v0 = vpop.f32.mrb[39].mxu1 }
 0xdc1   :  { %v8638_v49 = vadd.f32 %v5209_v57, %v2674_v0 }
 0xdc3   :  { %v8642_v27 = vpack.i.bf16 %v8636_v30, %v8638_v49 }
 0xdc5   :  { %6782 = vrot.lane.b32.xlu1 %v8642_v27, %s7287_s30 }
 0xe04   :  { %v6768_v62 = vpop.permute.xlu0 %6767 }
 0xe05   :  { %v6770_v4 = vunpack.i.h.bf16 %v6768_v62  ;;  %v6769_v6 = vunpack.i.l.bf16 %v6768_v62  ;;  %v8728_v62 = vld [vmem:[%s9527_s2 + $0x30] sm:$0xff] }
 0xe07   :  { %v6410_v41 = vpack.c.bf16 %v6770_v4, %v6769_v6 }
 0xe09   :  { %6412 = vmatprep.subr.msk.bf16.mxu0 %vm7763_vm2, %v6410_v41 }
 0xe0a   :  { %6415 = vmatpush3.bf16.xpose.msk.msra.mxu0 %vm7763_vm2, %v6410_v41 }
 0xe0f   :  { %v6773_v15 = vpop.permute.xlu1 %6772 }
 0xe10   :  { %v6775_v44 = vunpack.i.h.bf16 %v6773_v15  ;;  %v6774_v33 = vunpack.i.l.bf16 %v6773_v15 }
 0xe12   :  { %v6416_v63 = vpack.c.bf16 %v6775_v44, %v6774_v33 }
 0xe14   :  { %v6778_v14 = vpop.permute.xlu1 %6777  ;;  %6418 = vmatprep.subr.msk.bf16.mxu0 %vm7763_vm2, %v6416_v63 }
 0xe15   :  { %v6780_v48 = vunpack.i.h.bf16 %v6778_v14  ;;  %v6779_v22 = vunpack.i.l.bf16 %v6778_v14  ;;  %6421 = vmatpush3.bf16.xpose.msk.msra.mxu0 %vm7763_vm2, %v6416_v63 }
 0xe17   :  { %v6422_v37 = vpack.c.bf16 %v6780_v48, %v6779_v22 }
 0xe19   :  { %6424 = vmatprep.subr.msk.bf16.mxu0 %vm7763_vm2, %v6422_v37 }
 0xe1d   :  { %6427 = vmatpush3.bf16.xpose.msk.msra.mxu0 %vm7763_vm2, %v6422_v37 }
 0xe37   :  { %v6783_v40 = vpop.permute.xlu1 %6782 }
 0xe38   :  { %v6785_v58 = vunpack.i.h.bf16 %v6783_v40  ;;  %v6784_v19 = vunpack.i.l.bf16 %v6783_v40 }
 0xe3a   :  { %v6428_v9 = vpack.c.bf16 %v6785_v58, %v6784_v19 }
 0xe3c   :  { %6430 = vmatprep.subr.msk.bf16.mxu0 %vm7763_vm2, %v6428_v9 }
 0xe3d   :  { %6433 = vmatpush3.bf16.xpose.msk.msra.mxu0 %vm7763_vm2, %v6428_v9 }
 0xe44   :  { %5951 = vmatmul.mubr.msk.f32.vlgmr.msra.gmra.mrb[56].mxu0 %vm559_vm1, %v8604_v32 }
 0xe45   :  { %5953 = vmatprep.mubr.msk.f32.mxu0 %vm559_vm1, %v8618_v39 }
 0xe48   :  { %5954 = vmatmul.mubr.msk.f32.gmra.mrb[58].mxu0 %vm559_vm1, %v8616_v55 }
 0xe49   :  { %5956 = vmatprep.mubr.msk.f32.mxu0 %vm559_vm1, %v8628_v35 }
 0xe4c   :  { %5957 = vmatmul.mubr.msk.f32.gmra.mrb[60].mxu0 %vm559_vm1, %v8624_v45 }
 0xe4d   :  { %5959 = vmatprep.mubr.msk.f32.mxu0 %vm559_vm1, %v8638_v49 }
 0xe50   :  { %5960 = vmatmul.mubr.msk.f32.gmra.mrb[62].mxu0 %vm559_vm1, %v8636_v30 }
 0xf17   :  { %v5952_v51 = vpop.f32.mrb[56].mxu0 }
 0xf18   :  { %v2811_v60 = vadd.f32 %v5952_v51, %v8679_v21  ;;  %v2805_v42 = vpop.f32.mrb[57].mxu0 }
 0xf19   :  { %v2806_v25 = vadd.f32 %v2805_v42, %v8684_v29 }
 0xf1a   :  { %v2847_v26 = vsel %vm705_vm3, %v2811_v60, -inf }
 0xf1b   :  { %2848 = vmax.xlane.f32.xlu1 %v2847_v26  ;;  %v5955_v31 = vpop.f32.mrb[58].mxu0  ;;  %v2844_v17 = vsel %vm705_vm3, %v2806_v25, -inf }
 0xf1c   :  { %v2821_v8 = vadd.f32 %v5955_v31, %v8691_v36  ;;  %v2815_v1 = vpop.f32.mrb[59].mxu0  ;;  %2845 = vmax.xlane.f32.xlu0 %v2844_v17 }
 0xf1d   :  { %v2816_v3 = vadd.f32 %v2815_v1, %v8699_v54 }
 0xf1e   :  { %v2853_v5 = vsel %vm705_vm3, %v2821_v8, -inf }
 0xf1f   :  { %v5958_v23 = vpop.f32.mrb[60].mxu0  ;;  %v2850_v56 = vsel %vm705_vm3, %v2816_v3, -inf }
 0xf20   :  { %v2831_v50 = vadd.f32 %v5958_v23, %v8704_v46  ;;  %v2825_v57 = vpop.f32.mrb[61].mxu0  ;;  %2854 = vmax.xlane.f32.xlu0 %v2853_v5 }
 0xf21   :  { %v2826_v53 = vadd.f32 %v2825_v57, %v8712_v34 }
 0xf22   :  { %v2859_v38 = vsel %vm705_vm3, %v2831_v50, -inf }
 0xf23   :  { %2860 = vmax.xlane.f32.xlu1 %v2859_v38  ;;  %v5961_v61 = vpop.f32.mrb[62].mxu0  ;;  %v2856_v41 = vsel %vm705_vm3, %v2826_v53, -inf }
 0xf24   :  { %v8723_v10 = vadd.f32 %v5961_v61, %v8717_v47  ;;  %v2835_v0 = vpop.f32.mrb[63].mxu0  ;;  %2851 = vmax.xlane.f32.xlu0 %v2850_v56 }
 0xf25   :  { %v8733_v6 = vadd.f32 %v2835_v0, %v8728_v62 }
 0xf26   :  { %v2865_v4 = vsel %vm705_vm3, %v8723_v10, -inf }
 0xf27   :  { %2866 = vmax.xlane.f32.xlu1 %v2865_v4  ;;  %v2862_v15 = vsel %vm705_vm3, %v8733_v6, -inf }
 0xf28   :  { %2857 = vmax.xlane.f32.xlu0 %v2856_v41 }
 0xf2c   :  { %2863 = vmax.xlane.f32.xlu0 %v2862_v15 }
 0xf38   :  { %6792 = vrot.lane.b32.xlu1 %v8622_v20, %s7288_s0 }
 0xf3c   :  { %6797 = vrot.lane.b32.xlu1 %v8632_v12, %s7288_s0 }
 0xf40   :  { %6802 = vrot.lane.b32.xlu1 %v8642_v27, %s7288_s0 }
 0xf42   :  { %6787 = vrot.lane.b32.xlu0 %v8612_v2, %s7288_s0 }
 0xf44   :  { %6812 = vrot.lane.b32.xlu1 %v8622_v20, %s7299_s8 }
 0xf46   :  { %6807 = vrot.lane.b32.xlu0 %v8612_v2, %s7299_s8 }
 0xfa8   :  { %v2849_v44 = vpop.xlane.xlu1 %2848 }
 0xfa9   :  { %v2869_v33 = vsub.f32 %v2811_v60, %v2849_v44  ;;  %v2846_v63 = vpop.xlane.xlu0 %2845 }
 0xfaa   :  { %v2868_v14 = vsub.f32 %v2806_v25, %v2846_v63 }
 0xfab   :  { %v2878_v48 = vmul.f32 1.442695, %v2869_v33 }
 0xfac   :  { %v2876_v22 = vmul.f32 1.442695, %v2868_v14 }
 0xfad   :  { %7086 = vpow2.f32 %v2878_v48  ;;  %v2855_v37 = vpop.xlane.xlu0 %2854 }
 0xfae   :  { %7088 = vpow2.f32 %v2876_v22  ;;  %v2871_v40 = vsub.f32 %v2821_v8, %v2855_v37 }
 0xfb0   :  { %v2882_v58 = vmul.f32 1.442695, %v2871_v40  ;;  %v2861_v19 = vpop.xlane.xlu1 %2860 }
 0xfb1   :  { %v2873_v9 = vsub.f32 %v2831_v50, %v2861_v19  ;;  %v2852_v51 = vpop.xlane.xlu0 %2851 }
 0xfb2   :  { %7090 = vpow2.f32 %v2882_v58  ;;  %v2870_v42 = vsub.f32 %v2816_v3, %v2852_v51 }
 0xfb3   :  { %v2886_v26 = vmul.f32 1.442695, %v2873_v9 }
 0xfb4   :  { %v2880_v31 = vmul.f32 1.442695, %v2870_v42  ;;  %v2867_v17 = vpop.xlane.xlu1 %2866 }
 0xfb5   :  { %v2858_v1 = vpop.xlane.xlu0 %2857 }
 0xfb6   :  { %7092 = vpow2.f32 %v2880_v31  ;;  %v2872_v60 = vsub.f32 %v2826_v53, %v2858_v1 }
 0xfb7   :  { %v8750_v5 = vpop.eup %7086  ;;  %7094 = vpow2.f32 %v2886_v26 }
 0xfb8   :  { %v8752_v25 = vpop.eup %7088  ;;  %v2884_v23 = vmul.f32 1.442695, %v2872_v60  ;;  %v6793_v57 = vpop.permute.xlu1 %6792  ;;  %v2895_v8 = vsel %vm705_vm3, %v8750_v5, 0.0 }
 0xfb9   :  { %2896 = vadd.xlane.f32.xlu1 %v2895_v8  ;;  %v2864_v50 = vpop.xlane.xlu0 %2863  ;;  %v2892_v3 = vsel %vm705_vm3, %v8752_v25, 0.0  ;;  %v6795_v0 = vunpack.i.h.bf16 %v6793_v57  ;;  %v6794_v4 = vunpack.i.l.bf16 %v6793_v57  ;;  %v2875_v8 = vsub.f32 %v8723_v10, %v2867_v17 }
 0xfba   :  { %2893 = vadd.xlane.f32.xlu0 %v2892_v3  ;;  %7096 = vpow2.f32 %v2884_v23 }
 0xfbb   :  { %v6438_v37 = vpack.c.bf16 %v6795_v0, %v6794_v4  ;;  %v2890_v3 = vmul.f32 1.442695, %v2875_v8 }
 0xfbc   :  { %v8758_v38 = vpop.eup %7090  ;;  %v6798_v53 = vpop.permute.xlu1 %6797 }
 0xfbd   :  { %v6788_v61 = vpop.permute.xlu0 %6787  ;;  %v2901_v56 = vsel %vm705_vm3, %v8758_v38, 0.0  ;;  %v6800_v48 = vunpack.i.h.bf16 %v6798_v53  ;;  %v6799_v22 = vunpack.i.l.bf16 %v6798_v53  ;;  %v2874_v53 = vsub.f32 %v8733_v6, %v2864_v50 }
 0xfbe   :  { %v6790_v41 = vunpack.i.h.bf16 %v6788_v61  ;;  %v6789_v15 = vunpack.i.l.bf16 %v6788_v61  ;;  %2902 = vadd.xlane.f32.xlu1 %v2901_v56  ;;  %7098 = vpow2.f32 %v2890_v3 }
 0xfbf   :  { %v6442_v42 = vpack.c.bf16 %v6800_v48, %v6799_v22  ;;  %v2888_v61 = vmul.f32 1.442695, %v2874_v53 }
 0xfc0   :  { %v8762_v44 = vpop.eup %7092  ;;  %v6434_v33 = vpack.c.bf16 %v6790_v41, %v6789_v15  ;;  %v6803_v40 = vpop.permute.xlu1 %6802 }
 0xfc1   :  { %v2898_v63 = vsel %vm705_vm3, %v8762_v44, 0.0  ;;  %v8766_v14 = vpop.eup %7094  ;;  %v6805_v9 = vunpack.i.h.bf16 %v6803_v40  ;;  %v6804_v51 = vunpack.i.l.bf16 %v6803_v40  ;;  %v6808_v26 = vpop.permute.xlu0 %6807  ;;  %7100 = vpow2.f32 %v2888_v61 }
 0xfc2   :  { %2899 = vadd.xlane.f32.xlu0 %v2898_v63  ;;  %6435 = vmatprep.subr.bf16.mxu1 %v6434_v33  ;;  %v2907_v58 = vsel %vm705_vm3, %v8766_v14, 0.0  ;;  %v6810_v1 = vunpack.i.h.bf16 %v6808_v26  ;;  %v6809_v60 = vunpack.i.l.bf16 %v6808_v26 }
 0xfc3   :  { %6437 = vmatpush3.bf16.msra.mxu1 %v6434_v33  ;;  %v6446_v23 = vpack.c.bf16 %v6805_v9, %v6804_v51 }
 0xfc4   :  { %6439 = vmatprep.subr.bf16.mxu1 %v6438_v37  ;;  %v8770_v19 = vpop.eup %7096  ;;  %v6450_v57 = vpack.c.bf16 %v6810_v1, %v6809_v60  ;;  %v6813_v50 = vpop.permute.xlu1 %6812 }
 0xfc5   :  { %v2904_v31 = vsel %vm705_vm3, %v8770_v19, 0.0  ;;  %v6815_v48 = vunpack.i.h.bf16 %v6813_v50  ;;  %v6814_v22 = vunpack.i.l.bf16 %v6813_v50 }
 0xfc6   :  { %2908 = vadd.xlane.f32.xlu0 %v2907_v58 }
 0xfc7   :  { %6441 = vmatpush3.bf16.msra.mxu1 %v6438_v37  ;;  %v6456_v9 = vpack.c.bf16 %v6815_v48, %v6814_v22 }
 0xfc8   :  { %6443 = vmatprep.subr.bf16.mxu1 %v6442_v42  ;;  %v8788_v56 = vpop.eup %7098 }
 0xfc9   :  { %v2913_v10 = vsel %vm705_vm3, %v8788_v56, 0.0 }
 0xfca   :  { %2905 = vadd.xlane.f32.xlu0 %v2904_v31 }
 0xfcb   :  { %6445 = vmatpush3.bf16.msra.mxu1 %v6442_v42  ;;  %v8794_v6 = vpop.eup %7100 }
 0xfcc   :  { %6447 = vmatprep.subr.bf16.mxu1 %v6446_v23  ;;  %v2910_v17 = vsel %vm705_vm3, %v8794_v6, 0.0 }
 0xfcf   :  { %6822 = vrot.lane.b32.xlu1 %v8642_v27, %s7299_s8  ;;  %6449 = vmatpush3.bf16.msra.mxu1 %v6446_v23 }
 0xfd0   :  { %6452 = vmatprep.subr.msk.bf16.mxu1 %vm7763_vm2, %v6450_v57 }
 0xfe0   :  { %6817 = vrot.lane.b32.xlu0 %v8632_v12, %s7299_s8 }
 0xfe4   :  { %3093 = vrot.lane.b32.xlu0 %v8606_v11, %s7291_s22 }
 0xfe8   :  { %3097 = vrot.lane.b32.xlu0 %v8618_v39, %s7291_s22 }
 0xfec   :  { %3101 = vrot.lane.b32.xlu0 %v8628_v35, %s7291_s22 }
 0xff0   :  { %3105 = vrot.lane.b32.xlu0 %v8638_v49, %s7291_s22 }
 0xff3   :  { %2914 = vadd.xlane.f32.xlu1 %v2913_v10 }
 0xff7   :  { %2911 = vadd.xlane.f32.xlu1 %v2910_v17 }
0x1008   :  { %3095 = vrot.lane.b32.xlu1 %v8604_v32, %s7291_s22 }
0x100c   :  { %3099 = vrot.lane.b32.xlu1 %v8616_v55, %s7291_s22 }
0x1010   :  { %3103 = vrot.lane.b32.xlu1 %v8624_v45, %s7291_s22 }
0x1014   :  { %3107 = vrot.lane.b32.xlu1 %v8636_v30, %s7291_s22  ;;  %s7300_s22 = smov 80  }
0x1046   :  { %v2897_v0 = vpop.xlane.xlu1 %2896 }
0x1047   :  { %7102 = vrcp.f32 %v2897_v0  ;;  %v2894_v4 = vpop.xlane.xlu0 %2893 }
0x1048   :  { %7104 = vrcp.f32 %v2894_v4 }
0x104b   :  { %v2903_v41 = vpop.xlane.xlu1 %2902 }
0x104c   :  { %7106 = vrcp.f32 %v2903_v41 }
0x104f   :  { %v2900_v15 = vpop.xlane.xlu0 %2899 }
0x1050   :  { %7108 = vrcp.f32 %v2900_v15 }
0x1051   :  { %v7103_v33 = vpop.eup %7102 }
0x1052   :  { %v7105_v63 = vpop.eup %7104  ;;  %v2925_v58 = vmul.f32 %v7103_v33, %v8750_v5 }
0x1053   :  { %v2909_v37 = vpop.xlane.xlu0 %2908  ;;  %v2924_v40 = vmul.f32 %v7105_v63, %v8752_v25 }
0x1054   :  { %7110 = vrcp.f32 %v2909_v37 }
0x1055   :  { %5978 = vmatprep.mubr.msk.f32.mxu1 %vm705_vm3, %v2924_v40 }
0x1056   :  { %5979 = vmatmul.mubr.msk.f32.vlgmr.msra.gmra.mrb[40].mxu1 %vm705_vm3, %v2925_v58  ;;  %v7107_v42 = vpop.eup %7106 }
0x1057   :  { %6455 = vmatpush3.bf16.xpose.msk.msra.mxu1 %vm7763_vm2, %v6450_v57  ;;  %v2906_v51 = vpop.xlane.xlu0 %2905  ;;  %v2927_v60 = vmul.f32 %v7107_v42, %v8758_v38  ;;  %v6823_v57 = vpop.permute.xlu1 %6822 }
0x1058   :  { %7112 = vrcp.f32 %v2906_v51  ;;  %6458 = vmatprep.subr.msk.bf16.mxu1 %vm7763_vm2, %v6456_v9  ;;  %v6825_v53 = vunpack.i.h.bf16 %v6823_v57 }
0x105a   :  { %v7109_v26 = vpop.eup %7108 }
0x105b   :  { %v6818_v31 = vpop.permute.xlu0 %6817  ;;  %v2926_v25 = vmul.f32 %v7109_v26, %v8762_v44  ;;  %v6824_v44 = vunpack.i.l.bf16 %v6823_v57 }
0x105c   :  { %v6820_v5 = vunpack.i.h.bf16 %v6818_v31  ;;  %v6819_v1 = vunpack.i.l.bf16 %v6818_v31 }
0x105d   :  { %5981 = vmatprep.mubr.msk.f32.mxu1 %vm705_vm3, %v2926_v25  ;;  %v6468_v10 = vpack.c.bf16 %v6825_v53, %v6824_v44 }
0x105e   :  { %v6462_v23 = vpack.c.bf16 %v6820_v5, %v6819_v1  ;;  %5982 = vmatmul.mubr.msk.f32.gmra.mrb[42].mxu1 %vm705_vm3, %v2927_v60  ;;  %v7111_v8 = vpop.eup %7110 }
0x105f   :  { %6461 = vmatpush3.bf16.xpose.msk.msra.mxu1 %vm7763_vm2, %v6456_v9  ;;  %v2929_v38 = vmul.f32 %v7111_v8, %v8766_v14 }
0x1060   :  { %6464 = vmatprep.subr.msk.bf16.mxu1 %vm7763_vm2, %v6462_v23 }
0x1062   :  { %v7113_v3 = vpop.eup %7112 }
0x1063   :  { %v2928_v61 = vmul.f32 %v7113_v3, %v8770_v19  ;;  %v3094_v19 = vpop.permute.xlu0 %3093 }
0x1065   :  { %5984 = vmatprep.mubr.msk.f32.mxu1 %vm705_vm3, %v2928_v61 }
0x1066   :  { %5985 = vmatmul.mubr.msk.f32.gmra.mrb[44].mxu1 %vm705_vm3, %v2929_v38 }
0x1067   :  { %6467 = vmatpush3.bf16.xpose.msk.msra.mxu1 %vm7763_vm2, %v6462_v23  ;;  %v3098_v33 = vpop.permute.xlu0 %3097 }
0x1068   :  { %6470 = vmatprep.subr.msk.bf16.mxu1 %vm7763_vm2, %v6468_v10 }
0x106b   :  { %v3102_v48 = vpop.permute.xlu0 %3101 }
0x106f   :  { %6473 = vmatpush3.bf16.xpose.msk.msra.mxu1 %vm7763_vm2, %v6468_v10 }
0x1080   :  { %v2915_v17 = vpop.xlane.xlu1 %2914 }
0x1081   :  { %7114 = vrcp.f32 %v2915_v17 }
0x1084   :  { %v2912_v50 = vpop.xlane.xlu1 %2911 }
0x1085   :  { %7116 = vrcp.f32 %v2912_v50 }
0x1088   :  { %v3096_v4 = vpop.permute.xlu1 %3095 }
0x108b   :  { %v7115_v14 = vpop.eup %7114 }
0x108c   :  { %v2931_v15 = vmul.f32 %v7115_v14, %v8788_v56  ;;  %v3100_v63 = vpop.permute.xlu1 %3099 }
0x108f   :  { %v7117_v0 = vpop.eup %7116 }
0x1090   :  { %v2930_v41 = vmul.f32 %v7117_v0, %v8794_v6  ;;  %v3104_v22 = vpop.permute.xlu1 %3103  ;;  %v3106_v6 = vpop.permute.xlu0 %3105 }
0x1092   :  { %5987 = vmatprep.mubr.msk.f32.mxu1 %vm705_vm3, %v2930_v41 }
0x1093   :  { %5988 = vmatmul.mubr.msk.f32.gmra.mrb[46].mxu1 %vm705_vm3, %v2931_v15 }
0x1094   :  { %6006 = vmatprep.mubr.msk.f32.mxu1 %vm559_vm1, %v3094_v19  ;;  %v3108_v56 = vpop.permute.xlu1 %3107 }
0x1097   :  { %6007 = vmatmul.mubr.msk.f32.vlgmr.msra.gmra.mrb[48].mxu1 %vm559_vm1, %v3096_v4 }
0x1098   :  { %6009 = vmatprep.mubr.msk.f32.mxu1 %vm559_vm1, %v3098_v33 }
0x109b   :  { %6010 = vmatmul.mubr.msk.f32.gmra.mrb[50].mxu1 %vm559_vm1, %v3100_v63 }
0x109c   :  { %6012 = vmatprep.mubr.msk.f32.mxu1 %vm559_vm1, %v3102_v48 }
0x109f   :  { %6013 = vmatmul.mubr.msk.f32.gmra.mrb[52].mxu1 %vm559_vm1, %v3104_v22 }
0x10a0   :  { %6015 = vmatprep.mubr.msk.f32.mxu1 %vm559_vm1, %v3106_v6 }
0x10a3   :  { %6016 = vmatmul.mubr.msk.f32.gmra.mrb[54].mxu1 %vm559_vm1, %v3108_v56 }
0x1129   :  { %v5980_v37 = vpop.f32.mrb[40].mxu1 }
0x112a   :  { %3086 = vst.msk [vmem:[#allocation2 + $0x8] sm:$0xff] %vm559_vm1, %v5980_v37  ;;  %v3046_v40 = vpop.f32.mrb[41].mxu1 }
0x112b   :  { %3085 = vst.msk [vmem:[#allocation2] sm:$0xff] %vm559_vm1, %v3046_v40 }
0x1131   :  { %v5983_v58 = vpop.f32.mrb[42].mxu1 }
0x1132   :  { %3088 = vst.msk [vmem:[#allocation2 + $0x18] sm:$0xff] %vm559_vm1, %v5983_v58  ;;  %v3056_v9 = vpop.f32.mrb[43].mxu1 }
0x1133   :  { %3087 = vst.msk [vmem:[#allocation2 + $0x10] sm:$0xff] %vm559_vm1, %v3056_v9 }
0x1139   :  { %v5986_v51 = vpop.f32.mrb[44].mxu1 }
0x113a   :  { %3090 = vst.msk [vmem:[#allocation2 + $0x28] sm:$0xff] %vm559_vm1, %v5986_v51  ;;  %v3066_v42 = vpop.f32.mrb[45].mxu1 }
0x113b   :  { %3089 = vst.msk [vmem:[#allocation2 + $0x20] sm:$0xff] %vm559_vm1, %v3066_v42 }
0x1166   :  { %v5989_v26 = vpop.f32.mrb[46].mxu1 }
0x1167   :  { %3092 = vst.msk [vmem:[#allocation2 + $0x38] sm:$0xff] %vm559_vm1, %v5989_v26  ;;  %v3076_v31 = vpop.f32.mrb[47].mxu1 }
0x1168   :  { %3091 = vst.msk [vmem:[#allocation2 + $0x30] sm:$0xff] %vm559_vm1, %v3076_v31 }
0x116a   :  { %v6008_v25 = vpop.f32.mrb[48].mxu1 }
0x116b   :  { %v3229_v5 = vadd.f32 %v6008_v25, %v8679_v21  ;;  %v3223_v1 = vpop.f32.mrb[49].mxu1 }
0x116c   :  { %v3224_v60 = vadd.f32 %v3223_v1, %v8684_v29 }
0x116d   :  { %v3265_v23 = vsel %vm705_vm3, %v3229_v5, -inf }
0x116e   :  { %3266 = vmax.xlane.f32.xlu1 %v3265_v23  ;;  %v6011_v57 = vpop.f32.mrb[50].mxu1  ;;  %v3262_v8 = vsel %vm705_vm3, %v3224_v60, -inf }
0x116f   :  { %v3239_v3 = vadd.f32 %v6011_v57, %v8691_v36  ;;  %v3233_v53 = vpop.f32.mrb[51].mxu1  ;;  %3263 = vmax.xlane.f32.xlu0 %v3262_v8 }
0x1170   :  { %v3234_v61 = vadd.f32 %v3233_v53, %v8699_v54 }
0x1171   :  { %v3271_v44 = vsel %vm705_vm3, %v3239_v3, -inf }
0x1172   :  { %v6014_v38 = vpop.f32.mrb[52].mxu1  ;;  %v3268_v0 = vsel %vm705_vm3, %v3234_v61, -inf }
0x1173   :  { %v3249_v10 = vadd.f32 %v6014_v38, %v8704_v46  ;;  %v3243_v17 = vpop.f32.mrb[53].mxu1  ;;  %3272 = vmax.xlane.f32.xlu0 %v3271_v44 }
0x1174   :  { %v3244_v19 = vadd.f32 %v3243_v17, %v8712_v34 }
0x1175   :  { %v3277_v50 = vsel %vm705_vm3, %v3249_v10, -inf }
0x1176   :  { %3278 = vmax.xlane.f32.xlu1 %v3277_v50  ;;  %v6017_v14 = vpop.f32.mrb[54].mxu1  ;;  %v3274_v63 = vsel %vm705_vm3, %v3244_v19, -inf }
0x1177   :  { %v8864_v4 = vadd.f32 %v6017_v14, %v8717_v47  ;;  %v3253_v41 = vpop.f32.mrb[55].mxu1  ;;  %3269 = vmax.xlane.f32.xlu0 %v3268_v0 }
0x1178   :  { %v8869_v33 = vadd.f32 %v3253_v41, %v8728_v62 }
0x1179   :  { %v3283_v15 = vsel %vm705_vm3, %v8864_v4, -inf }
0x117a   :  { %3284 = vmax.xlane.f32.xlu1 %v3283_v15  ;;  %v3280_v48 = vsel %vm705_vm3, %v8869_v33, -inf }
0x117b   :  { %3275 = vmax.xlane.f32.xlu0 %v3274_v63 }
0x117f   :  { %3281 = vmax.xlane.f32.xlu0 %v3280_v48 }
0x118b   :  { %6832 = vrot.lane.b32.xlu1 %v8622_v20, %s7290_s25 }
0x118f   :  { %6837 = vrot.lane.b32.xlu1 %v8632_v12, %s7290_s25 }
0x1193   :  { %6842 = vrot.lane.b32.xlu1 %v8642_v27, %s7290_s25 }
0x1195   :  { %6827 = vrot.lane.b32.xlu0 %v8612_v2, %s7290_s25  ;;  %s7301_s25 = smov 72  }
0x1197   :  { %6852 = vrot.lane.b32.xlu1 %v8622_v20, %s7300_s22 }
0x1199   :  { %6847 = vrot.lane.b32.xlu0 %v8612_v2, %s7300_s22 }
0x11fb   :  { %v3267_v22 = vpop.xlane.xlu1 %3266 }
0x11fc   :  { %v3287_v6 = vsub.f32 %v3229_v5, %v3267_v22  ;;  %v3264_v56 = vpop.xlane.xlu0 %3263 }
0x11fd   :  { %v3286_v37 = vsub.f32 %v3224_v60, %v3264_v56 }
0x11fe   :  { %v3296_v40 = vmul.f32 1.442695, %v3287_v6 }
0x11ff   :  { %v3294_v58 = vmul.f32 1.442695, %v3286_v37 }
0x1200   :  { %7118 = vpow2.f32 %v3296_v40  ;;  %v3273_v9 = vpop.xlane.xlu0 %3272 }
0x1201   :  { %7120 = vpow2.f32 %v3294_v58  ;;  %v3289_v51 = vsub.f32 %v3239_v3, %v3273_v9 }
0x1203   :  { %v3300_v42 = vmul.f32 1.442695, %v3289_v51  ;;  %v3279_v26 = vpop.xlane.xlu1 %3278 }
0x1204   :  { %v3291_v31 = vsub.f32 %v3249_v10, %v3279_v26  ;;  %v3270_v25 = vpop.xlane.xlu0 %3269 }
0x1205   :  { %7122 = vpow2.f32 %v3300_v42  ;;  %v3288_v1 = vsub.f32 %v3234_v61, %v3270_v25 }
0x1206   :  { %v3304_v23 = vmul.f32 1.442695, %v3291_v31 }
0x1207   :  { %v3298_v57 = vmul.f32 1.442695, %v3288_v1  ;;  %v3285_v8 = vpop.xlane.xlu1 %3284 }
0x1208   :  { %v3276_v53 = vpop.xlane.xlu0 %3275 }
0x1209   :  { %7124 = vpow2.f32 %v3298_v57  ;;  %v3290_v5 = vsub.f32 %v3244_v19, %v3276_v53 }
0x120a   :  { %v8886_v44 = vpop.eup %7118  ;;  %7126 = vpow2.f32 %v3304_v23 }
0x120b   :  { %v8888_v60 = vpop.eup %7120  ;;  %v3302_v38 = vmul.f32 1.442695, %v3290_v5  ;;  %v6833_v17 = vpop.permute.xlu1 %6832  ;;  %v3313_v3 = vsel %vm705_vm3, %v8886_v44, 0.0 }
0x120c   :  { %3314 = vadd.xlane.f32.xlu1 %v3313_v3  ;;  %v3282_v10 = vpop.xlane.xlu0 %3281  ;;  %v3310_v61 = vsel %vm705_vm3, %v8888_v60, 0.0  ;;  %v6835_v41 = vunpack.i.h.bf16 %v6833_v17  ;;  %v6834_v15 = vunpack.i.l.bf16 %v6833_v17  ;;  %v3293_v3 = vsub.f32 %v8864_v4, %v3285_v8 }
0x120d   :  { %3311 = vadd.xlane.f32.xlu0 %v3310_v61  ;;  %7128 = vpow2.f32 %v3302_v38 }
0x120e   :  { %v6478_v9 = vpack.c.bf16 %v6835_v41, %v6834_v15  ;;  %v3308_v61 = vmul.f32 1.442695, %v3293_v3 }
0x120f   :  { %v8894_v50 = vpop.eup %7122  ;;  %v6838_v19 = vpop.permute.xlu1 %6837 }
0x1210   :  { %v6828_v14 = vpop.permute.xlu0 %6827  ;;  %v3319_v0 = vsel %vm705_vm3, %v8894_v50, 0.0  ;;  %v6840_v40 = vunpack.i.h.bf16 %v6838_v19  ;;  %v6839_v58 = vunpack.i.l.bf16 %v6838_v19  ;;  %v3292_v19 = vsub.f32 %v8869_v33, %v3282_v10 }
0x1211   :  { %v6830_v63 = vunpack.i.h.bf16 %v6828_v14  ;;  %v6829_v48 = vunpack.i.l.bf16 %v6828_v14  ;;  %3320 = vadd.xlane.f32.xlu1 %v3319_v0  ;;  %7130 = vpow2.f32 %v3308_v61 }
0x1212   :  { %v6482_v1 = vpack.c.bf16 %v6840_v40, %v6839_v58  ;;  %v3306_v14 = vmul.f32 1.442695, %v3292_v19 }
0x1213   :  { %v8898_v22 = vpop.eup %7124  ;;  %v6474_v6 = vpack.c.bf16 %v6830_v63, %v6829_v48  ;;  %v6843_v51 = vpop.permute.xlu1 %6842 }
0x1214   :  { %v3316_v56 = vsel %vm705_vm3, %v8898_v22, 0.0  ;;  %v8902_v37 = vpop.eup %7126  ;;  %v6845_v31 = vunpack.i.h.bf16 %v6843_v51  ;;  %v6844_v25 = vunpack.i.l.bf16 %v6843_v51  ;;  %v6848_v23 = vpop.permute.xlu0 %6847  ;;  %7132 = vpow2.f32 %v3306_v14 }
0x1215   :  { %3317 = vadd.xlane.f32.xlu0 %v3316_v56  ;;  %6475 = vmatprep.subr.bf16.mxu0 %v6474_v6  ;;  %v3325_v42 = vsel %vm705_vm3, %v8902_v37, 0.0  ;;  %v6850_v53 = vunpack.i.h.bf16 %v6848_v23  ;;  %v6849_v5 = vunpack.i.l.bf16 %v6848_v23 }
0x1216   :  { %6477 = vmatpush3.bf16.msra.mxu0 %v6474_v6  ;;  %v6486_v38 = vpack.c.bf16 %v6845_v31, %v6844_v25 }
0x1217   :  { %6479 = vmatprep.subr.bf16.mxu0 %v6478_v9  ;;  %v8906_v26 = vpop.eup %7128  ;;  %v6490_v17 = vpack.c.bf16 %v6850_v53, %v6849_v5  ;;  %v6853_v10 = vpop.permute.xlu1 %6852 }
0x1218   :  { %v3322_v57 = vsel %vm705_vm3, %v8906_v26, 0.0  ;;  %v6855_v40 = vunpack.i.h.bf16 %v6853_v10  ;;  %v6854_v58 = vunpack.i.l.bf16 %v6853_v10 }
0x1219   :  { %3326 = vadd.xlane.f32.xlu0 %v3325_v42 }
0x121a   :  { %6481 = vmatpush3.bf16.msra.mxu0 %v6478_v9  ;;  %v6496_v31 = vpack.c.bf16 %v6855_v40, %v6854_v58 }
0x121b   :  { %6483 = vmatprep.subr.bf16.mxu0 %v6482_v1  ;;  %v8924_v0 = vpop.eup %7130 }
0x121c   :  { %v3331_v4 = vsel %vm705_vm3, %v8924_v0, 0.0 }
0x121d   :  { %3323 = vadd.xlane.f32.xlu0 %v3322_v57 }
0x121e   :  { %6485 = vmatpush3.bf16.msra.mxu0 %v6482_v1  ;;  %v8930_v33 = vpop.eup %7132 }
0x121f   :  { %6487 = vmatprep.subr.bf16.mxu0 %v6486_v38  ;;  %v3328_v8 = vsel %vm705_vm3, %v8930_v33, 0.0 }
0x1222   :  { %6862 = vrot.lane.b32.xlu1 %v8642_v27, %s7300_s22  ;;  %6489 = vmatpush3.bf16.msra.mxu0 %v6486_v38 }
0x1223   :  { %6492 = vmatprep.subr.msk.bf16.mxu0 %vm7763_vm2, %v6490_v17 }
0x1233   :  { %6857 = vrot.lane.b32.xlu0 %v8632_v12, %s7300_s22 }
0x1237   :  { %3543 = vrot.lane.b32.xlu0 %v8606_v11, %s7293_s26 }
0x123b   :  { %3547 = vrot.lane.b32.xlu0 %v8618_v39, %s7293_s26 }
0x123f   :  { %3551 = vrot.lane.b32.xlu0 %v8628_v35, %s7293_s26 }
0x1243   :  { %3555 = vrot.lane.b32.xlu0 %v8638_v49, %s7293_s26 }
0x1246   :  { %3332 = vadd.xlane.f32.xlu1 %v3331_v4 }
0x124a   :  { %3329 = vadd.xlane.f32.xlu1 %v3328_v8 }
0x125b   :  { %3545 = vrot.lane.b32.xlu1 %v8604_v32, %s7293_s26 }
0x125f   :  { %3549 = vrot.lane.b32.xlu1 %v8616_v55, %s7293_s26 }
0x1263   :  { %3553 = vrot.lane.b32.xlu1 %v8624_v45, %s7293_s26 }
0x1267   :  { %3557 = vrot.lane.b32.xlu1 %v8636_v30, %s7293_s26 }
0x1299   :  { %v3315_v41 = vpop.xlane.xlu1 %3314 }
0x129a   :  { %7134 = vrcp.f32 %v3315_v41  ;;  %v3312_v15 = vpop.xlane.xlu0 %3311 }
0x129b   :  { %7136 = vrcp.f32 %v3312_v15 }
0x129e   :  { %v3321_v63 = vpop.xlane.xlu1 %3320 }
0x129f   :  { %7138 = vrcp.f32 %v3321_v63 }
0x12a2   :  { %v3318_v48 = vpop.xlane.xlu0 %3317 }
0x12a3   :  { %7140 = vrcp.f32 %v3318_v48 }
0x12a4   :  { %v7135_v6 = vpop.eup %7134 }
0x12a5   :  { %v7137_v56 = vpop.eup %7136  ;;  %v3343_v42 = vmul.f32 %v7135_v6, %v8886_v44 }
0x12a6   :  { %v3327_v9 = vpop.xlane.xlu0 %3326  ;;  %v3342_v51 = vmul.f32 %v7137_v56, %v8888_v60 }
0x12a7   :  { %7142 = vrcp.f32 %v3327_v9 }
0x12a8   :  { %6034 = vmatprep.mubr.msk.f32.mxu0 %vm705_vm3, %v3342_v51 }
0x12a9   :  { %6035 = vmatmul.mubr.msk.f32.vlgmr.msra.gmra.mrb[64].mxu0 %vm705_vm3, %v3343_v42  ;;  %v7139_v1 = vpop.eup %7138 }
0x12aa   :  { %6495 = vmatpush3.bf16.xpose.msk.msra.mxu0 %vm7763_vm2, %v6490_v17  ;;  %v3324_v25 = vpop.xlane.xlu0 %3323  ;;  %v3345_v5 = vmul.f32 %v7139_v1, %v8894_v50  ;;  %v6863_v17 = vpop.permute.xlu1 %6862 }
0x12ab   :  { %7144 = vrcp.f32 %v3324_v25  ;;  %6498 = vmatprep.subr.msk.bf16.mxu0 %vm7763_vm2, %v6496_v31  ;;  %v6865_v19 = vunpack.i.h.bf16 %v6863_v17 }
0x12ad   :  { %v7141_v23 = vpop.eup %7140 }
0x12ae   :  { %v6858_v57 = vpop.permute.xlu0 %6857  ;;  %v3344_v60 = vmul.f32 %v7141_v23, %v8898_v22  ;;  %v6864_v22 = vunpack.i.l.bf16 %v6863_v17 }
0x12af   :  { %v6860_v44 = vunpack.i.h.bf16 %v6858_v57  ;;  %v6859_v53 = vunpack.i.l.bf16 %v6858_v57 }
0x12b0   :  { %6037 = vmatprep.mubr.msk.f32.mxu0 %vm705_vm3, %v3344_v60  ;;  %v6508_v4 = vpack.c.bf16 %v6865_v19, %v6864_v22 }
0x12b1   :  { %v6502_v38 = vpack.c.bf16 %v6860_v44, %v6859_v53  ;;  %6038 = vmatmul.mubr.msk.f32.gmra.mrb[66].mxu0 %vm705_vm3, %v3345_v5  ;;  %v7143_v3 = vpop.eup %7142 }
0x12b2   :  { %6501 = vmatpush3.bf16.xpose.msk.msra.mxu0 %vm7763_vm2, %v6496_v31  ;;  %v3347_v50 = vmul.f32 %v7143_v3, %v8902_v37 }
0x12b3   :  { %6504 = vmatprep.subr.msk.bf16.mxu0 %vm7763_vm2, %v6502_v38 }
0x12b5   :  { %v7145_v61 = vpop.eup %7144 }
0x12b6   :  { %v3346_v14 = vmul.f32 %v7145_v61, %v8906_v26  ;;  %v3544_v26 = vpop.permute.xlu0 %3543 }
0x12b8   :  { %6040 = vmatprep.mubr.msk.f32.mxu0 %vm705_vm3, %v3346_v14 }
0x12b9   :  { %6041 = vmatmul.mubr.msk.f32.gmra.mrb[68].mxu0 %vm705_vm3, %v3347_v50 }
0x12ba   :  { %6507 = vmatpush3.bf16.xpose.msk.msra.mxu0 %vm7763_vm2, %v6502_v38  ;;  %v3548_v6 = vpop.permute.xlu0 %3547 }
0x12bb   :  { %6510 = vmatprep.subr.msk.bf16.mxu0 %vm7763_vm2, %v6508_v4 }
0x12be   :  { %v3552_v40 = vpop.permute.xlu0 %3551 }
0x12c2   :  { %6513 = vmatpush3.bf16.xpose.msk.msra.mxu0 %vm7763_vm2, %v6508_v4 }
0x12d3   :  { %v3333_v8 = vpop.xlane.xlu1 %3332 }
0x12d4   :  { %7146 = vrcp.f32 %v3333_v8 }
0x12d7   :  { %v3330_v10 = vpop.xlane.xlu1 %3329 }
0x12d8   :  { %7148 = vrcp.f32 %v3330_v10 }
0x12db   :  { %v3546_v15 = vpop.permute.xlu1 %3545 }
0x12de   :  { %v7147_v37 = vpop.eup %7146 }
0x12df   :  { %v3349_v48 = vmul.f32 %v7147_v37, %v8924_v0  ;;  %v3550_v56 = vpop.permute.xlu1 %3549 }
0x12e2   :  { %v7149_v41 = vpop.eup %7148 }
0x12e3   :  { %v3348_v63 = vmul.f32 %v7149_v41, %v8930_v33  ;;  %v3554_v58 = vpop.permute.xlu1 %3553  ;;  %v3556_v33 = vpop.permute.xlu0 %3555 }
0x12e5   :  { %6043 = vmatprep.mubr.msk.f32.mxu0 %vm705_vm3, %v3348_v63 }
0x12e6   :  { %6044 = vmatmul.mubr.msk.f32.gmra.mrb[70].mxu0 %vm705_vm3, %v3349_v48 }
0x12e7   :  { %6062 = vmatprep.mubr.msk.f32.mxu0 %vm559_vm1, %v3544_v26  ;;  %v3558_v0 = vpop.permute.xlu1 %3557 }
0x12ea   :  { %6063 = vmatmul.mubr.msk.f32.vlgmr.msra.gmra.mrb[72].mxu0 %vm559_vm1, %v3546_v15 }
0x12eb   :  { %6065 = vmatprep.mubr.msk.f32.mxu0 %vm559_vm1, %v3548_v6 }
0x12ee   :  { %6066 = vmatmul.mubr.msk.f32.gmra.mrb[74].mxu0 %vm559_vm1, %v3550_v56 }
0x12ef   :  { %6068 = vmatprep.mubr.msk.f32.mxu0 %vm559_vm1, %v3552_v40 }
0x12f2   :  { %6069 = vmatmul.mubr.msk.f32.gmra.mrb[76].mxu0 %vm559_vm1, %v3554_v58 }
0x12f3   :  { %6071 = vmatprep.mubr.msk.f32.mxu0 %vm559_vm1, %v3556_v33 }
0x12f6   :  { %6072 = vmatmul.mubr.msk.f32.gmra.mrb[78].mxu0 %vm559_vm1, %v3558_v0 }
0x137c   :  { %v8980_v9 = vpop.f32.mrb[64].mxu0 }
0x137d   :  { %v8982_v51 = vpop.f32.mrb[65].mxu0 }
0x1384   :  { %v8984_v42 = vpop.f32.mrb[66].mxu0 }
0x1385   :  { %v8986_v31 = vpop.f32.mrb[67].mxu0 }
0x138c   :  { %v8988_v25 = vpop.f32.mrb[68].mxu0 }
0x138d   :  { %v8990_v1 = vpop.f32.mrb[69].mxu0 }
0x13b9   :  { %v8992_v23 = vpop.f32.mrb[70].mxu0 }
0x13ba   :  { %v8994_v57 = vpop.f32.mrb[71].mxu0 }
0x13bd   :  { %v6064_v60 = vpop.f32.mrb[72].mxu0 }
0x13be   :  { %v3679_v44 = vadd.f32 %v6064_v60, %v8679_v21  ;;  %v3673_v53 = vpop.f32.mrb[73].mxu0 }
0x13bf   :  { %v3674_v5 = vadd.f32 %v3673_v53, %v8684_v29 }
0x13c0   :  { %v3715_v38 = vsel %vm705_vm3, %v3679_v44, -inf }
0x13c1   :  { %3716 = vmax.xlane.f32.xlu1 %v3715_v38  ;;  %v6067_v17 = vpop.f32.mrb[74].mxu0  ;;  %v3712_v3 = vsel %vm705_vm3, %v3674_v5, -inf }
0x13c2   :  { %v3689_v61 = vadd.f32 %v6067_v17, %v8691_v36  ;;  %v3683_v19 = vpop.f32.mrb[75].mxu0  ;;  %3713 = vmax.xlane.f32.xlu0 %v3712_v3 }
0x13c3   :  { %v3684_v14 = vadd.f32 %v3683_v19, %v8699_v54 }
0x13c4   :  { %v3721_v22 = vsel %vm705_vm3, %v3689_v61, -inf }
0x13c5   :  { %v6070_v50 = vpop.f32.mrb[76].mxu0  ;;  %v3718_v26 = vsel %vm705_vm3, %v3684_v14, -inf }
0x13c6   :  { %v3699_v21 = vadd.f32 %v6070_v50, %v8704_v46  ;;  %v3693_v4 = vpop.f32.mrb[77].mxu0  ;;  %3722 = vmax.xlane.f32.xlu0 %v3721_v22 }
0x13c7   :  { %v3694_v8 = vadd.f32 %v3693_v4, %v8712_v34 }
0x13c8   :  { %v3727_v29 = vsel %vm705_vm3, %v3699_v21, -inf }
0x13c9   :  { %3728 = vmax.xlane.f32.xlu1 %v3727_v29  ;;  %v6073_v10 = vpop.f32.mrb[78].mxu0  ;;  %v3724_v41 = vsel %vm705_vm3, %v3694_v8, -inf }
0x13ca   :  { %v9008_v36 = vadd.f32 %v6073_v10, %v8717_v47  ;;  %v3703_v37 = vpop.f32.mrb[79].mxu0  ;;  %3719 = vmax.xlane.f32.xlu0 %v3718_v26 }
0x13cb   :  { %v9013_v46 = vadd.f32 %v3703_v37, %v8728_v62 }
0x13cc   :  { %v3733_v54 = vsel %vm705_vm3, %v9008_v36, -inf }
0x13cd   :  { %3734 = vmax.xlane.f32.xlu1 %v3733_v54  ;;  %v3730_v34 = vsel %vm705_vm3, %v9013_v46, -inf }
0x13ce   :  { %3725 = vmax.xlane.f32.xlu0 %v3724_v41 }
0x13d2   :  { %3731 = vmax.xlane.f32.xlu0 %v3730_v34 }
0x13de   :  { %6872 = vrot.lane.b32.xlu1 %v8622_v20, %s7292_s3 }
0x13e2   :  { %6877 = vrot.lane.b32.xlu1 %v8632_v12, %s7292_s3 }
0x13e6   :  { %6882 = vrot.lane.b32.xlu1 %v8642_v27, %s7292_s3 }
0x13e8   :  { %6867 = vrot.lane.b32.xlu0 %v8612_v2, %s7292_s3  ;;  %s9556_s3 = smov 104  }
0x13ea   :  { %6892 = vrot.lane.b32.xlu1 %v8622_v20, %s7301_s25 }
0x13ec   :  { %6887 = vrot.lane.b32.xlu0 %v8612_v2, %s7301_s25 }
0x144e   :  { %v3717_v47 = vpop.xlane.xlu1 %3716 }
0x144f   :  { %v3737_v62 = vsub.f32 %v3679_v44, %v3717_v47  ;;  %v3714_v15 = vpop.xlane.xlu0 %3713 }
0x1450   :  { %v3736_v63 = vsub.f32 %v3674_v5, %v3714_v15 }
0x1451   :  { %v3746_v48 = vmul.f32 1.442695, %v3737_v62 }
0x1452   :  { %v3744_v6 = vmul.f32 1.442695, %v3736_v63 }
0x1453   :  { %7150 = vpow2.f32 %v3746_v48  ;;  %v3723_v56 = vpop.xlane.xlu0 %3722 }
0x1454   :  { %7152 = vpow2.f32 %v3744_v6  ;;  %v3739_v40 = vsub.f32 %v3689_v61, %v3723_v56 }
0x1456   :  { %v3750_v58 = vmul.f32 1.442695, %v3739_v40  ;;  %v3729_v33 = vpop.xlane.xlu1 %3728 }
0x1457   :  { %v3741_v0 = vsub.f32 %v3699_v21, %v3729_v33  ;;  %v3720_v60 = vpop.xlane.xlu0 %3719 }
0x1458   :  { %7154 = vpow2.f32 %v3750_v58  ;;  %v3738_v53 = vsub.f32 %v3684_v14, %v3720_v60 }
0x1459   :  { %v3754_v38 = vmul.f32 1.442695, %v3741_v0 }
0x145a   :  { %v3748_v17 = vmul.f32 1.442695, %v3738_v53  ;;  %v3735_v3 = vpop.xlane.xlu1 %3734 }
0x145b   :  { %v3726_v19 = vpop.xlane.xlu0 %3725 }
0x145c   :  { %7156 = vpow2.f32 %v3748_v17  ;;  %v3740_v44 = vsub.f32 %v3694_v8, %v3726_v19 }
0x145d   :  { %v9030_v22 = vpop.eup %7150  ;;  %7158 = vpow2.f32 %v3754_v38 }
0x145e   :  { %v9032_v5 = vpop.eup %7152  ;;  %v3752_v50 = vmul.f32 1.442695, %v3740_v44  ;;  %v6873_v4 = vpop.permute.xlu1 %6872  ;;  %v3763_v61 = vsel %vm705_vm3, %v9030_v22, 0.0 }
0x145f   :  { %3764 = vadd.xlane.f32.xlu1 %v3763_v61  ;;  %v3732_v21 = vpop.xlane.xlu0 %3731  ;;  %v3760_v14 = vsel %vm705_vm3, %v9032_v5, 0.0  ;;  %v6875_v37 = vunpack.i.h.bf16 %v6873_v4  ;;  %v6874_v54 = vunpack.i.l.bf16 %v6873_v4  ;;  %v3743_v61 = vsub.f32 %v9008_v36, %v3735_v3 }
0x1460   :  { %3761 = vadd.xlane.f32.xlu0 %v3760_v14  ;;  %7160 = vpow2.f32 %v3752_v50 }
0x1461   :  { %v6518_v48 = vpack.c.bf16 %v6875_v37, %v6874_v54  ;;  %v3758_v14 = vmul.f32 1.442695, %v3743_v61 }
0x1462   :  { %v9038_v29 = vpop.eup %7154  ;;  %v6878_v8 = vpop.permute.xlu1 %6877 }
0x1463   :  { %v6868_v10 = vpop.permute.xlu0 %6867  ;;  %v3769_v26 = vsel %vm705_vm3, %v9038_v29, 0.0  ;;  %v6880_v6 = vunpack.i.h.bf16 %v6878_v8  ;;  %v6879_v56 = vunpack.i.l.bf16 %v6878_v8  ;;  %v3742_v8 = vsub.f32 %v9013_v46, %v3732_v21 }
0x1464   :  { %v6870_v41 = vunpack.i.h.bf16 %v6868_v10  ;;  %v6869_v34 = vunpack.i.l.bf16 %v6868_v10  ;;  %3770 = vadd.xlane.f32.xlu1 %v3769_v26  ;;  %7162 = vpow2.f32 %v3758_v14 }
0x1465   :  { %v6522_v0 = vpack.c.bf16 %v6880_v6, %v6879_v56  ;;  %v3756_v10 = vmul.f32 1.442695, %v3742_v8 }
0x1466   :  { %v9042_v47 = vpop.eup %7156  ;;  %v6514_v62 = vpack.c.bf16 %v6870_v41, %v6869_v34  ;;  %v6883_v40 = vpop.permute.xlu1 %6882 }
0x1467   :  { %v3766_v15 = vsel %vm705_vm3, %v9042_v47, 0.0  ;;  %v9046_v63 = vpop.eup %7158  ;;  %v6885_v60 = vunpack.i.h.bf16 %v6883_v40  ;;  %v6884_v53 = vunpack.i.l.bf16 %v6883_v40  ;;  %v6888_v38 = vpop.permute.xlu0 %6887  ;;  %7164 = vpow2.f32 %v3756_v10 }
0x1468   :  { %3767 = vadd.xlane.f32.xlu0 %v3766_v15  ;;  %6515 = vmatprep.subr.bf16.mxu1 %v6514_v62  ;;  %v3775_v58 = vsel %vm705_vm3, %v9046_v63, 0.0  ;;  %v6890_v44 = vunpack.i.h.bf16 %v6888_v38  ;;  %v6889_v50 = vunpack.i.l.bf16 %v6888_v38 }
0x1469   :  { %6517 = vmatpush3.bf16.msra.mxu1 %v6514_v62  ;;  %v6526_v19 = vpack.c.bf16 %v6885_v60, %v6884_v53 }
0x146a   :  { %6519 = vmatprep.subr.bf16.mxu1 %v6518_v48  ;;  %v9050_v33 = vpop.eup %7160  ;;  %v6530_v4 = vpack.c.bf16 %v6890_v44, %v6889_v50 }
0x146b   :  { %v3772_v17 = vsel %vm705_vm3, %v9050_v33, 0.0 }
0x146c   :  { %3776 = vadd.xlane.f32.xlu0 %v3775_v58 }
0x146d   :  { %6521 = vmatpush3.bf16.msra.mxu1 %v6518_v48 }
0x146e   :  { %6523 = vmatprep.subr.bf16.mxu1 %v6522_v0 }
0x1470   :  { %3773 = vadd.xlane.f32.xlu0 %v3772_v17 }
0x1471   :  { %6525 = vmatpush3.bf16.msra.mxu1 %v6522_v0 }
0x1472   :  { %6527 = vmatprep.subr.bf16.mxu1 %v6526_v19 }
0x1475   :  { %6902 = vrot.lane.b32.xlu1 %v8642_v27, %s7301_s25  ;;  %6529 = vmatpush3.bf16.msra.mxu1 %v6526_v19 }
0x1476   :  { %6532 = vmatprep.subr.msk.bf16.mxu1 %vm7763_vm2, %v6530_v4 }
0x1479   :  { %3995 = vrot.lane.b32.xlu1 %v8604_v32, %s9556_s3  ;;  %v9072_v32 = vpop.eup %7162 }
0x147a   :  { %v9076_v36 = vpop.eup %7164 }
0x1486   :  { %6897 = vrot.lane.b32.xlu0 %v8632_v12, %s7301_s25  ;;  %s9557_s25 = smov 40  }
0x148a   :  { %3993 = vrot.lane.b32.xlu0 %v8606_v11, %s9556_s3  ;;  %v3781_v11 = vsel %vm705_vm3, %v9072_v32, 0.0 }
0x148e   :  { %3997 = vrot.lane.b32.xlu0 %v8618_v39, %s9556_s3  ;;  %v3778_v39 = vsel %vm705_vm3, %v9076_v36, 0.0 }
0x1492   :  { %4001 = vrot.lane.b32.xlu0 %v8628_v35, %s9556_s3  ;;  %v6893_v35 = vpop.permute.xlu1 %6892 }
0x1493   :  { %v6895_v54 = vunpack.i.h.bf16 %v6893_v35  ;;  %v6894_v41 = vunpack.i.l.bf16 %v6893_v35 }
0x1496   :  { %4005 = vrot.lane.b32.xlu0 %v8638_v49, %s9556_s3 }
0x149d   :  { %3782 = vadd.xlane.f32.xlu1 %v3781_v11 }
0x14a1   :  { %3779 = vadd.xlane.f32.xlu1 %v3778_v39 }
0x14b2   :  { %3999 = vrot.lane.b32.xlu1 %v8616_v55, %s9556_s3 }
0x14b6   :  { %4003 = vrot.lane.b32.xlu1 %v8624_v45, %s9556_s3 }
0x14ba   :  { %4007 = vrot.lane.b32.xlu1 %v8636_v30, %s9556_s3  ;;  %v6536_v30 = vpack.c.bf16 %v6895_v54, %v6894_v41 }
0x14ec   :  { %v3765_v49 = vpop.xlane.xlu1 %3764 }
0x14ed   :  { %7166 = vrcp.f32 %v3765_v49  ;;  %v3762_v46 = vpop.xlane.xlu0 %3761 }
0x14ee   :  { %7168 = vrcp.f32 %v3762_v46 }
0x14f1   :  { %v3771_v3 = vpop.xlane.xlu1 %3770 }
0x14f2   :  { %7170 = vrcp.f32 %v3771_v3 }
0x14f5   :  { %v3768_v21 = vpop.xlane.xlu0 %3767  ;;  %v6903_v0 = vpop.permute.xlu1 %6902 }
0x14f6   :  { %7172 = vrcp.f32 %v3768_v21  ;;  %v6905_v38 = vunpack.i.h.bf16 %v6903_v0 }
0x14f7   :  { %v7167_v26 = vpop.eup %7166 }
0x14f8   :  { %v7169_v37 = vpop.eup %7168  ;;  %v3793_v45 = vmul.f32 %v7167_v26, %v9030_v22 }
0x14f9   :  { %v3777_v55 = vpop.xlane.xlu0 %3776  ;;  %v3792_v34 = vmul.f32 %v7169_v37, %v9032_v5  ;;  %v3996_v44 = vpop.permute.xlu1 %3995 }
0x14fa   :  { %7174 = vrcp.f32 %v3777_v55  ;;  %v7278_v55 = vld [vmem:[%s9527_s2 + $0x8] sm:$0xff] }
0x14fb   :  { %6090 = vmatprep.mubr.msk.f32.mxu1 %vm705_vm3, %v3792_v34 }
0x14fc   :  { %6091 = vmatmul.mubr.msk.f32.vlgmr.msra.gmra.mrb[56].mxu1 %vm705_vm3, %v3793_v45  ;;  %v7171_v15 = vpop.eup %7170 }
0x14fd   :  { %6535 = vmatpush3.bf16.xpose.msk.msra.mxu1 %vm7763_vm2, %v6530_v4  ;;  %v3774_v62 = vpop.xlane.xlu0 %3773  ;;  %v3795_v40 = vmul.f32 %v7171_v15, %v9038_v29 }
0x14fe   :  { %7176 = vrcp.f32 %v3774_v62  ;;  %6538 = vmatprep.subr.msk.bf16.mxu1 %vm7763_vm2, %v6536_v30 }
0x1500   :  { %v7173_v48 = vpop.eup %7172 }
0x1501   :  { %v6898_v6 = vpop.permute.xlu0 %6897  ;;  %v3794_v5 = vmul.f32 %v7173_v48, %v9042_v47  ;;  %v6904_v47 = vunpack.i.l.bf16 %v6903_v0 }
0x1502   :  { %v6900_v22 = vunpack.i.h.bf16 %v6898_v6  ;;  %v6899_v56 = vunpack.i.l.bf16 %v6898_v6 }
0x1503   :  { %6093 = vmatprep.mubr.msk.f32.mxu1 %vm705_vm3, %v3794_v5  ;;  %v6548_v19 = vpack.c.bf16 %v6905_v38, %v6904_v47  ;;  %v7280_v5 = vld [vmem:[%s9527_s2 + $0x18] sm:$0xff] }
0x1504   :  { %v6542_v58 = vpack.c.bf16 %v6900_v22, %v6899_v56  ;;  %6094 = vmatmul.mubr.msk.f32.gmra.mrb[58].mxu1 %vm705_vm3, %v3795_v40  ;;  %v7175_v60 = vpop.eup %7174 }
0x1505   :  { %6541 = vmatpush3.bf16.xpose.msk.msra.mxu1 %vm7763_vm2, %v6536_v30  ;;  %v3797_v29 = vmul.f32 %v7175_v60, %v9046_v63  ;;  %v3994_v63 = vpop.permute.xlu0 %3993  ;;  %v7279_v30 = vld [vmem:[%s9527_s2] sm:$0xff] }
0x1506   :  { %6544 = vmatprep.subr.msk.bf16.mxu1 %vm7763_vm2, %v6542_v58 }
0x1508   :  { %v7177_v53 = vpop.eup %7176 }
0x1509   :  { %v3796_v17 = vmul.f32 %v7177_v53, %v9050_v33  ;;  %v3998_v10 = vpop.permute.xlu0 %3997  ;;  %v7282_v53 = vld [vmem:[%s9527_s2 + $0x28] sm:$0xff] }
0x150b   :  { %6096 = vmatprep.mubr.msk.f32.mxu1 %vm705_vm3, %v3796_v17 }
0x150c   :  { %6097 = vmatmul.mubr.msk.f32.gmra.mrb[60].mxu1 %vm705_vm3, %v3797_v29  ;;  %v7283_v29 = vld [vmem:[%s9527_s2 + $0x20] sm:$0xff] }
0x150d   :  { %6547 = vmatpush3.bf16.xpose.msk.msra.mxu1 %vm7763_vm2, %v6542_v58  ;;  %v4002_v11 = vpop.permute.xlu0 %4001  ;;  %v7281_v58 = vld [vmem:[%s9527_s2 + $0x10] sm:$0xff] }
0x150e   :  { %6550 = vmatprep.subr.msk.bf16.mxu1 %vm7763_vm2, %v6548_v19 }
0x1515   :  { %6553 = vmatpush3.bf16.xpose.msk.msra.mxu1 %vm7763_vm2, %v6548_v19 }
0x152a   :  { %v3783_v50 = vpop.xlane.xlu1 %3782 }
0x152b   :  { %7178 = vrcp.f32 %v3783_v50 }
0x152e   :  { %v3780_v33 = vpop.xlane.xlu1 %3779 }
0x152f   :  { %7180 = vrcp.f32 %v3780_v33  ;;  %v7284_v33 = vld [vmem:[%s9527_s2 + $0x38] sm:$0xff] }
0x1532   :  { %v4000_v43 = vpop.permute.xlu1 %3999 }
0x1535   :  { %v7179_v4 = vpop.eup %7178 }
0x1536   :  { %v3799_v8 = vmul.f32 %v7179_v4, %v9072_v32  ;;  %v4004_v39 = vpop.permute.xlu1 %4003 }
0x1539   :  { %v7181_v61 = vpop.eup %7180 }
0x153a   :  { %v3798_v14 = vmul.f32 %v7181_v61, %v9076_v36  ;;  %v4006_v36 = vpop.permute.xlu0 %4005  ;;  %v4008_v32 = vpop.permute.xlu1 %4007 }
0x153c   :  { %6099 = vmatprep.mubr.msk.f32.mxu1 %vm705_vm3, %v3798_v14  ;;  %v7285_v14 = vld [vmem:[%s9527_s2 + $0x30] sm:$0xff] }
0x153d   :  { %6100 = vmatmul.mubr.msk.f32.gmra.mrb[62].mxu1 %vm705_vm3, %v3799_v8 }
0x153e   :  { %6118 = vmatprep.mubr.msk.f32.mxu1 %vm559_vm1, %v3994_v63 }
0x1541   :  { %6119 = vmatmul.mubr.msk.f32.vlgmr.msra.gmra.mrb[64].mxu1 %vm559_vm1, %v3996_v44 }
0x1542   :  { %6121 = vmatprep.mubr.msk.f32.mxu1 %vm559_vm1, %v3998_v10 }
0x1545   :  { %6122 = vmatmul.mubr.msk.f32.gmra.mrb[66].mxu1 %vm559_vm1, %v4000_v43 }
0x1546   :  { %6124 = vmatprep.mubr.msk.f32.mxu1 %vm559_vm1, %v4002_v11 }
0x1549   :  { %6125 = vmatmul.mubr.msk.f32.gmra.mrb[68].mxu1 %vm559_vm1, %v4004_v39 }
0x154a   :  { %6127 = vmatprep.mubr.msk.f32.mxu1 %vm559_vm1, %v4006_v36 }
0x154d   :  { %6128 = vmatmul.mubr.msk.f32.gmra.mrb[70].mxu1 %vm559_vm1, %v4008_v32 }
0x15cf   :  { %v9124_v35 = vpop.f32.mrb[56].mxu1 }
0x15d0   :  { %v9126_v49 = vpop.f32.mrb[57].mxu1 }
0x15d7   :  { %v9128_v46 = vpop.f32.mrb[58].mxu1 }
0x15d8   :  { %v9130_v3 = vpop.f32.mrb[59].mxu1 }
0x15df   :  { %v9132_v21 = vpop.f32.mrb[60].mxu1 }
0x15e0   :  { %v9134_v26 = vpop.f32.mrb[61].mxu1 }
0x1610   :  { %v9136_v37 = vpop.f32.mrb[62].mxu1 }
0x1611   :  { %v9138_v54 = vpop.f32.mrb[63].mxu1 }
0x1614   :  { %v6120_v41 = vpop.f32.mrb[64].mxu1 }
0x1615   :  { %v4129_v34 = vadd.f32 %v7278_v55, %v6120_v41  ;;  %v4123_v45 = vpop.f32.mrb[65].mxu1 }
0x1616   :  { %v4124_v62 = vadd.f32 %v7279_v30, %v4123_v45 }
0x1617   :  { %v4165_v15 = vsel %vm705_vm3, %v4129_v34, -inf }
0x1618   :  { %4166 = vmax.xlane.f32.xlu1 %v4165_v15  ;;  %v6123_v48 = vpop.f32.mrb[66].mxu1  ;;  %v4162_v6 = vsel %vm705_vm3, %v4124_v62, -inf }
0x1619   :  { %v4139_v22 = vadd.f32 %v7280_v5, %v6123_v48  ;;  %v4133_v56 = vpop.f32.mrb[67].mxu1  ;;  %4163 = vmax.xlane.f32.xlu0 %v4162_v6 }
0x161a   :  { %v4134_v0 = vadd.f32 %v7281_v58, %v4133_v56 }
0x161b   :  { %v4171_v40 = vsel %vm705_vm3, %v4139_v22, -inf }
0x161c   :  { %v6126_v60 = vpop.f32.mrb[68].mxu1  ;;  %v4168_v50 = vsel %vm705_vm3, %v4134_v0, -inf }
0x161d   :  { %v4149_v38 = vadd.f32 %v7282_v53, %v6126_v60  ;;  %v4143_v47 = vpop.f32.mrb[69].mxu1  ;;  %4172 = vmax.xlane.f32.xlu0 %v4171_v40 }
0x161e   :  { %v4144_v19 = vadd.f32 %v7283_v29, %v4143_v47 }
0x161f   :  { %v4177_v17 = vsel %vm705_vm3, %v4149_v38, -inf }
0x1620   :  { %4178 = vmax.xlane.f32.xlu1 %v4177_v17  ;;  %v6129_v44 = vpop.f32.mrb[70].mxu1  ;;  %v4174_v10 = vsel %vm705_vm3, %v4144_v19, -inf }
0x1621   :  { %v4159_v63 = vadd.f32 %v7284_v33, %v6129_v44  ;;  %v4153_v4 = vpop.f32.mrb[71].mxu1  ;;  %4169 = vmax.xlane.f32.xlu0 %v4168_v50 }
0x1622   :  { %v4154_v8 = vadd.f32 %v7285_v14, %v4153_v4 }
0x1623   :  { %v4183_v61 = vsel %vm705_vm3, %v4159_v63, -inf }
0x1624   :  { %4184 = vmax.xlane.f32.xlu1 %v4183_v61  ;;  %v4180_v43 = vsel %vm705_vm3, %v4154_v8, -inf }
0x1625   :  { %4175 = vmax.xlane.f32.xlu0 %v4174_v10 }
0x1629   :  { %4181 = vmax.xlane.f32.xlu0 %v4180_v43 }
0x1635   :  { %6912 = vrot.lane.b32.xlu1 %v8622_v20, %s9557_s25 }
0x163f   :  { %6907 = vrot.lane.b32.xlu0 %v8612_v2, %s9557_s25 }
0x16a5   :  { %v4167_v11 = vpop.xlane.xlu1 %4166 }
0x16a6   :  { %v4187_v39 = vsub.f32 %v4129_v34, %v4167_v11  ;;  %v4164_v36 = vpop.xlane.xlu0 %4163 }
0x16a7   :  { %v4186_v32 = vsub.f32 %v4124_v62, %v4164_v36 }
0x16a8   :  { %v4196_v41 = vmul.f32 1.442695, %v4187_v39 }
0x16a9   :  { %v4194_v55 = vmul.f32 1.442695, %v4186_v32 }
0x16aa   :  { %7182 = vpow2.f32 %v4196_v41  ;;  %v4173_v45 = vpop.xlane.xlu0 %4172 }
0x16ab   :  { %7184 = vpow2.f32 %v4194_v55  ;;  %v4189_v30 = vsub.f32 %v4139_v22, %v4173_v45 }
0x16ad   :  { %v4200_v15 = vmul.f32 1.442695, %v4189_v30  ;;  %v4179_v48 = vpop.xlane.xlu1 %4178 }
0x16ae   :  { %v4191_v6 = vsub.f32 %v4149_v38, %v4179_v48  ;;  %v4170_v5 = vpop.xlane.xlu0 %4169 }
0x16af   :  { %7186 = vpow2.f32 %v4200_v15  ;;  %v4188_v56 = vsub.f32 %v4134_v0, %v4170_v5 }
0x16b0   :  { %v4204_v20 = vmul.f32 1.442695, %v4191_v6 }
0x16b1   :  { %v4198_v40 = vmul.f32 1.442695, %v4188_v56  ;;  %v4185_v58 = vpop.xlane.xlu1 %4184 }
0x16b2   :  { %7188 = vpow2.f32 %v4204_v20  ;;  %v4193_v2 = vsub.f32 %v4159_v63, %v4185_v58  ;;  %v4176_v34 = vpop.xlane.xlu0 %4175 }
0x16b3   :  { %7190 = vpow2.f32 %v4198_v40  ;;  %v4190_v62 = vsub.f32 %v4144_v19, %v4176_v34 }
0x16b4   :  { %v9176_v60 = vpop.eup %7182  ;;  %v4208_v53 = vmul.f32 1.442695, %v4193_v2 }
0x16b5   :  { %v9178_v47 = vpop.eup %7184  ;;  %v4202_v22 = vmul.f32 1.442695, %v4190_v62  ;;  %v4213_v38 = vsel %vm705_vm3, %v9176_v60, 0.0  ;;  %v6913_v19 = vpop.permute.xlu1 %6912 }
0x16b6   :  { %7192 = vpow2.f32 %v4208_v53  ;;  %4214 = vadd.xlane.f32.xlu1 %v4213_v38  ;;  %v4182_v0 = vpop.xlane.xlu0 %4181  ;;  %v4210_v17 = vsel %vm705_vm3, %v9178_v47, 0.0  ;;  %v6915_v10 = vunpack.i.h.bf16 %v6913_v19  ;;  %v6914_v43 = vunpack.i.l.bf16 %v6913_v19 }
0x16b7   :  { %7194 = vpow2.f32 %v4202_v22  ;;  %v4192_v29 = vsub.f32 %v4154_v8, %v4182_v0  ;;  %4211 = vadd.xlane.f32.xlu0 %v4210_v17 }
0x16b8   :  { %v6558_v41 = vpack.c.bf16 %v6915_v10, %v6914_v43 }
0x16b9   :  { %v9184_v44 = vpop.eup %7186  ;;  %v4206_v50 = vmul.f32 1.442695, %v4192_v29 }
0x16ba   :  { %v6908_v33 = vpop.permute.xlu0 %6907  ;;  %v4219_v63 = vsel %vm705_vm3, %v9184_v44, 0.0 }
0x16bb   :  { %7196 = vpow2.f32 %v4206_v50  ;;  %v6910_v4 = vunpack.i.h.bf16 %v6908_v33  ;;  %v6909_v61 = vunpack.i.l.bf16 %v6908_v33  ;;  %4220 = vadd.xlane.f32.xlu1 %v4219_v63 }
0x16bc   :  { %v9188_v14 = vpop.eup %7188 }
0x16bd   :  { %v9190_v11 = vpop.eup %7190  ;;  %v6554_v8 = vpack.c.bf16 %v6910_v4, %v6909_v61  ;;  %v4225_v39 = vsel %vm705_vm3, %v9188_v14, 0.0 }
0x16be   :  { %v4216_v36 = vsel %vm705_vm3, %v9190_v11, 0.0 }
0x16bf   :  { %4226 = vadd.xlane.f32.xlu1 %v4225_v39  ;;  %4217 = vadd.xlane.f32.xlu0 %v4216_v36  ;;  %v4451_v36 = vld [vmem:[%s9528_s13] sm:$0xff] }
0x16c0   :  { %v9196_v32 = vpop.eup %7192  ;;  %6555 = vmatprep.subr.bf16.mxu0 %v6554_v8 }
0x16c1   :  { %v9198_v55 = vpop.eup %7194  ;;  %6557 = vmatpush3.bf16.msra.mxu0 %v6554_v8  ;;  %v4231_v45 = vsel %vm705_vm3, %v9196_v32, 0.0 }
0x16c2   :  { %6559 = vmatprep.subr.bf16.mxu0 %v6558_v41  ;;  %v4222_v30 = vsel %vm705_vm3, %v9198_v55, 0.0 }
0x16c3   :  { %4232 = vadd.xlane.f32.xlu1 %v4231_v45  ;;  %4223 = vadd.xlane.f32.xlu0 %v4222_v30  ;;  %v4454_v45 = vld [vmem:[%s9528_s13 + $0x18] sm:$0xff] }
0x16c5   :  { %v9204_v15 = vpop.eup %7196  ;;  %6561 = vmatpush3.bf16.msra.mxu0 %v6558_v41 }
0x16c6   :  { %v4228_v48 = vsel %vm705_vm3, %v9204_v15, 0.0 }
0x16c7   :  { %4229 = vadd.xlane.f32.xlu1 %v4228_v48 }
0x16d8   :  { %6922 = vrot.lane.b32.xlu1 %v8642_v27, %s9557_s25 }
0x16d9   :  { %6917 = vrot.lane.b32.xlu0 %v8632_v12, %s9557_s25 }
0x16dc   :  { %3513 = vrot.lane.b32.xlu1 %v8980_v9, %s7296_s1 }
0x16dd   :  { %3511 = vrot.lane.b32.xlu0 %v8982_v51, %s7296_s1 }
0x16e0   :  { %3963 = vrot.lane.b32.xlu1 %v9124_v35, %s7297_s21 }
0x16e1   :  { %3961 = vrot.lane.b32.xlu0 %v9126_v49, %s7297_s21 }
0x16e4   :  { %3517 = vrot.lane.b32.xlu1 %v8984_v42, %s7296_s1 }
0x16e5   :  { %3515 = vrot.lane.b32.xlu0 %v8986_v31, %s7296_s1 }
0x16e8   :  { %3967 = vrot.lane.b32.xlu1 %v9128_v46, %s7297_s21 }
0x16e9   :  { %3965 = vrot.lane.b32.xlu0 %v9130_v3, %s7297_s21 }
0x16ec   :  { %3521 = vrot.lane.b32.xlu1 %v8988_v25, %s7296_s1 }
0x16ed   :  { %3519 = vrot.lane.b32.xlu0 %v8990_v1, %s7296_s1 }
0x16f0   :  { %3971 = vrot.lane.b32.xlu1 %v9132_v21, %s7297_s21 }
0x16f1   :  { %3969 = vrot.lane.b32.xlu0 %v9134_v26, %s7297_s21 }
0x16f4   :  { %3525 = vrot.lane.b32.xlu1 %v8992_v23, %s7296_s1 }
0x16f5   :  { %3523 = vrot.lane.b32.xlu0 %v8994_v57, %s7296_s1 }
0x16f8   :  { %3975 = vrot.lane.b32.xlu1 %v9136_v37, %s7297_s21 }
0x16f9   :  { %3973 = vrot.lane.b32.xlu0 %v9138_v54, %s7297_s21 }
0x1743   :  { %v4215_v12 = vpop.xlane.xlu1 %4214 }
0x1744   :  { %v4212_v27 = vpop.xlane.xlu0 %4211 }
0x1745   :  { %7198 = vrcp.f32 %v4212_v27 }
0x1746   :  { %7200 = vrcp.f32 %v4215_v12 }
0x1748   :  { %v4221_v9 = vpop.xlane.xlu1 %4220 }
0x174c   :  { %v4227_v51 = vpop.xlane.xlu1 %4226  ;;  %v4218_v42 = vpop.xlane.xlu0 %4217 }
0x174d   :  { %7202 = vrcp.f32 %v4218_v42 }
0x174e   :  { %7204 = vrcp.f32 %v4221_v9 }
0x174f   :  { %v7199_v31 = vpop.eup %7198 }
0x1750   :  { %v4233_v25 = vpop.xlane.xlu1 %4232  ;;  %v4224_v1 = vpop.xlane.xlu0 %4223  ;;  %v4242_v23 = vmul.f32 %v7199_v31, %v9178_v47 }
0x1751   :  { %7206 = vrcp.f32 %v4224_v1  ;;  %v7201_v5 = vpop.eup %7200 }
0x1752   :  { %6146 = vmatprep.mubr.msk.f32.mxu0 %vm705_vm3, %v4242_v23  ;;  %7208 = vrcp.f32 %v4227_v51  ;;  %v4243_v58 = vmul.f32 %v7201_v5, %v9176_v60 }
0x1754   :  { %v4230_v57 = vpop.xlane.xlu1 %4229  ;;  %v6918_v35 = vpop.permute.xlu0 %6917 }
0x1755   :  { %v6920_v49 = vunpack.i.h.bf16 %v6918_v35  ;;  %v6919_v46 = vunpack.i.l.bf16 %v6918_v35  ;;  %7210 = vrcp.f32 %v4230_v57 }
0x1756   :  { %7212 = vrcp.f32 %v4233_v25 }
0x1757   :  { %v6562_v3 = vpack.c.bf16 %v6920_v49, %v6919_v46  ;;  %v7203_v40 = vpop.eup %7202 }
0x1758   :  { %v6923_v21 = vpop.permute.xlu1 %6922  ;;  %v3512_v26 = vpop.permute.xlu0 %3511  ;;  %v4244_v53 = vmul.f32 %v7203_v40, %v9190_v11 }
0x1759   :  { %v6925_v37 = vunpack.i.h.bf16 %v6923_v21  ;;  %v6924_v54 = vunpack.i.l.bf16 %v6923_v21  ;;  %3535 = vst.msk [vmem:[#allocation2] sm:$0xff] %vm1381_vm4, %v3512_v26  ;;  %6563 = vmatprep.subr.bf16.mxu0 %v6562_v3  ;;  %v7205_v2 = vpop.eup %7204 }
0x175a   :  { %6565 = vmatpush3.bf16.msra.mxu0 %v6562_v3  ;;  %v4245_v22 = vmul.f32 %v7205_v2, %v9184_v44 }
0x175b   :  { %v6566_v6 = vpack.c.bf16 %v6925_v37, %v6924_v54  ;;  %v7207_v47 = vpop.eup %7206 }
0x175c   :  { %v3514_v56 = vpop.permute.xlu1 %3513  ;;  %v3962_v20 = vpop.permute.xlu0 %3961  ;;  %v4246_v60 = vmul.f32 %v7207_v47, %v9198_v55  ;;  %v4453_v55 = vld [vmem:[%s9528_s13 + $0x10] sm:$0xff] }
0x175d   :  { %3536 = vst.msk [vmem:[#allocation2 + $0x8] sm:$0xff] %vm1381_vm4, %v3514_v56  ;;  %6567 = vmatprep.subr.bf16.mxu0 %v6566_v6  ;;  %v7209_v38 = vpop.eup %7208  ;;  %v6574_v30 = vpack.c.bf16 %v4454_v45, %v4453_v55 }
0x175e   :  { %3985 = vst.msk [vmem:[#allocation2] sm:$0xff] %vm1832_vm5, %v3962_v20  ;;  %6569 = vmatpush3.bf16.msra.mxu0 %v6566_v6  ;;  %v4247_v19 = vmul.f32 %v7209_v38, %v9188_v14 }
0x175f   :  { %v7211_v29 = vpop.eup %7210 }
0x1760   :  { %v3964_v34 = vpop.permute.xlu1 %3963  ;;  %v3516_v62 = vpop.permute.xlu0 %3515  ;;  %v4248_v44 = vmul.f32 %v7211_v29, %v9204_v15 }
0x1761   :  { %3986 = vst.msk [vmem:[#allocation2 + $0x8] sm:$0xff] %vm1832_vm5, %v3964_v34  ;;  %6147 = vmatmul.mubr.msk.f32.vlgmr.msra.gmra.mrb[80].mxu0 %vm705_vm3, %v4243_v58  ;;  %v7213_v50 = vpop.eup %7212  ;;  %v5322_v58 = vld [vmem:[%s9529_s14] ss:$0 sm:$0xff] }
0x1762   :  { %3537 = vst.msk [vmem:[#allocation2 + $0x10] sm:$0xff] %vm1381_vm4, %v3516_v62  ;;  %6149 = vmatprep.mubr.msk.f32.mxu0 %vm705_vm3, %v4244_v53  ;;  %v4249_v4 = vmul.f32 %v7213_v50, %v9196_v32  ;;  %v4452_v32 = vld [vmem:[%s9528_s13 + $0x8] sm:$0xff] }
0x1763   :  { %v6570_v41 = vpack.c.bf16 %v4452_v32, %v4451_v36 }
0x1764   :  { %v3518_v0 = vpop.permute.xlu1 %3517  ;;  %v3966_v17 = vpop.permute.xlu0 %3965 }
0x1765   :  { %3538 = vst.msk [vmem:[#allocation2 + $0x18] sm:$0xff] %vm1381_vm4, %v3518_v0  ;;  %6150 = vmatmul.mubr.msk.f32.gmra.mrb[82].mxu0 %vm705_vm3, %v4245_v22  ;;  %6571 = vmatprep.subr.bf16.mxu0 %v6570_v41 }
0x1766   :  { %3987 = vst.msk [vmem:[#allocation2 + $0x10] sm:$0xff] %vm1832_vm5, %v3966_v17  ;;  %6152 = vmatprep.mubr.msk.f32.mxu0 %vm705_vm3, %v4246_v60  ;;  %6573 = vmatpush3.bf16.msra.mxu0 %v6570_v41 }
0x1767   :  { %6575 = vmatprep.subr.bf16.mxu0 %v6574_v30 }
0x1768   :  { %v3968_v33 = vpop.permute.xlu1 %3967  ;;  %v3520_v63 = vpop.permute.xlu0 %3519 }
0x1769   :  { %3988 = vst.msk [vmem:[#allocation2 + $0x18] sm:$0xff] %vm1832_vm5, %v3968_v33  ;;  %6153 = vmatmul.mubr.msk.f32.gmra.mrb[84].mxu0 %vm705_vm3, %v4247_v19 }
0x176a   :  { %3539 = vst.msk [vmem:[#allocation2 + $0x20] sm:$0xff] %vm1381_vm4, %v3520_v63  ;;  %6155 = vmatprep.mubr.msk.f32.mxu0 %vm705_vm3, %v4248_v44  ;;  %6577 = vmatpush3.bf16.msra.mxu0 %v6574_v30 }
0x176c   :  { %v3522_v61 = vpop.permute.xlu1 %3521  ;;  %v3970_v10 = vpop.permute.xlu0 %3969 }
0x176d   :  { %3540 = vst.msk [vmem:[#allocation2 + $0x28] sm:$0xff] %vm1381_vm4, %v3522_v61  ;;  %6156 = vmatmul.mubr.msk.f32.gmra.mrb[86].mxu0 %vm705_vm3, %v4249_v4 }
0x176e   :  { %3989 = vst.msk [vmem:[#allocation2 + $0x20] sm:$0xff] %vm1832_vm5, %v3970_v10 }
0x1770   :  { %v3972_v14 = vpop.permute.xlu1 %3971  ;;  %v3524_v43 = vpop.permute.xlu0 %3523 }
0x1771   :  { %3990 = vst.msk [vmem:[#allocation2 + $0x28] sm:$0xff] %vm1832_vm5, %v3972_v14 }
0x1772   :  { %3541 = vst.msk [vmem:[#allocation2 + $0x30] sm:$0xff] %vm1381_vm4, %v3524_v43 }
0x1774   :  { %v3526_v11 = vpop.permute.xlu1 %3525  ;;  %v3974_v8 = vpop.permute.xlu0 %3973 }
0x1775   :  { %3542 = vst.msk [vmem:[#allocation2 + $0x38] sm:$0xff] %vm1381_vm4, %v3526_v11 }
0x1776   :  { %3991 = vst.msk [vmem:[#allocation2 + $0x30] sm:$0xff] %vm1832_vm5, %v3974_v8 }
0x1778   :  { %v3976_v39 = vpop.permute.xlu1 %3975 }
0x1779   :  { %3992 = vst.msk [vmem:[#allocation2 + $0x38] sm:$0xff] %vm1832_vm5, %v3976_v39 }
0x1834   :  { %v6148_v15 = vpop.f32.mrb[80].mxu0 }
0x1835   :  { %4413 = vrot.lane.b32.xlu1 %v6148_v15, %s7298_s7  ;;  %v4364_v48 = vpop.f32.mrb[81].mxu0 }
0x1836   :  { %4411 = vrot.lane.b32.xlu0 %v4364_v48, %s7298_s7  ;;  %v4686_v48 = vld [vmem:[%s9530_s16] sm:$0xff] }
0x1838   :  { %v6151_v12 = vpop.f32.mrb[82].mxu0 }
0x1839   :  { %4417 = vrot.lane.b32.xlu1 %v6151_v12, %s7298_s7  ;;  %v4374_v27 = vpop.f32.mrb[83].mxu0  ;;  %v4687_v12 = vld [vmem:[%s9530_s16 + $0x8] sm:$0xff] }
0x183a   :  { %4415 = vrot.lane.b32.xlu0 %v4374_v27, %s7298_s7  ;;  %v6578_v27 = vpack.c.bf16 %v4687_v12, %v4686_v48  ;;  %v4923_v48 = vld [vmem:[%s9532_s18 + $0x8] sm:$0xff]  ;;  %v4924_v12 = vld [vmem:[%s9532_s18 + $0x10] sm:$0xff] }
0x183c   :  { %v6154_v9 = vpop.f32.mrb[84].mxu0  ;;  %6579 = vmatprep.subr.bf16.mxu1 %v6578_v27 }
0x183d   :  { %4421 = vrot.lane.b32.xlu1 %v6154_v9, %s7298_s7  ;;  %v4384_v51 = vpop.f32.mrb[85].mxu0  ;;  %6581 = vmatpush3.bf16.msra.mxu1 %v6578_v27  ;;  %v4688_v9 = vld [vmem:[%s9530_s16 + $0x10] sm:$0xff] }
0x183e   :  { %4419 = vrot.lane.b32.xlu0 %v4384_v51, %s7298_s7  ;;  %v4689_v51 = vld [vmem:[%s9530_s16 + $0x18] sm:$0xff] }
0x1840   :  { %v6157_v42 = vpop.f32.mrb[86].mxu0 }
0x1841   :  { %4425 = vrot.lane.b32.xlu1 %v6157_v42, %s7298_s7  ;;  %v4394_v31 = vpop.f32.mrb[87].mxu0  ;;  %v6582_v42 = vpack.c.bf16 %v4689_v51, %v4688_v9  ;;  %v4925_v9 = vld [vmem:[%s9532_s18 + $0x18] sm:$0xff] }
0x1842   :  { %4423 = vrot.lane.b32.xlu0 %v4394_v31, %s7298_s7  ;;  %v6590_v51 = vpack.c.bf16 %v4925_v9, %v4924_v12 }
0x1843   :  { %6583 = vmatprep.subr.bf16.mxu1 %v6582_v42 }
0x1844   :  { %6585 = vmatpush3.bf16.msra.mxu1 %v6582_v42  ;;  %v4926_v42 = vld [vmem:[%s9532_s18 + $0x20] sm:$0xff] }
0x18a7   :  { %v4414_v25 = vpop.permute.xlu1 %4413 }
0x18a8   :  { %4436 = vst.msk [vmem:[#allocation2 + $0x8] sm:$0xff] %vm2283_vm6, %v4414_v25  ;;  %v4412_v1 = vpop.permute.xlu0 %4411 }
0x18a9   :  { %4435 = vst.msk [vmem:[#allocation2] sm:$0xff] %vm2283_vm6, %v4412_v1 }
0x18ab   :  { %v4418_v23 = vpop.permute.xlu1 %4417 }
0x18ac   :  { %4438 = vst.msk [vmem:[#allocation2 + $0x18] sm:$0xff] %vm2283_vm6, %v4418_v23  ;;  %v4416_v57 = vpop.permute.xlu0 %4415 }
0x18ad   :  { %4437 = vst.msk [vmem:[#allocation2 + $0x10] sm:$0xff] %vm2283_vm6, %v4416_v57 }
0x18af   :  { %v4422_v35 = vpop.permute.xlu1 %4421  ;;  %v4444_v3 = vld [vmem:[#allocation2 + $0x8] sm:$0xff] }
0x18b0   :  { %4440 = vst.msk [vmem:[#allocation2 + $0x28] sm:$0xff] %vm2283_vm6, %v4422_v35  ;;  %v4420_v49 = vpop.permute.xlu0 %4419  ;;  %v4443_v46 = vld [vmem:[#allocation2] sm:$0xff] }
0x18b1   :  { %4439 = vst.msk [vmem:[#allocation2 + $0x20] sm:$0xff] %vm2283_vm6, %v4420_v49  ;;  %6166 = vmatprep.mubr.msk.f32.mxu0 %vm90_vm0, %v4443_v46 }
0x18b2   :  { %6167 = vmatmul.mubr.msk.f32.vlgmr.msra.gmra.mrb[88].mxu0 %vm90_vm0, %v4444_v3 }
0x18b3   :  { %v4426_v21 = vpop.permute.xlu1 %4425  ;;  %v4446_v54 = vld [vmem:[#allocation2 + $0x18] sm:$0xff] }
0x18b4   :  { %4442 = vst.msk [vmem:[#allocation2 + $0x38] sm:$0xff] %vm2283_vm6, %v4426_v21  ;;  %v4424_v26 = vpop.permute.xlu0 %4423  ;;  %v4445_v37 = vld [vmem:[#allocation2 + $0x10] sm:$0xff] }
0x18b5   :  { %4441 = vst.msk [vmem:[#allocation2 + $0x30] sm:$0xff] %vm2283_vm6, %v4424_v26  ;;  %6169 = vmatprep.mubr.msk.f32.mxu0 %vm90_vm0, %v4445_v37 }
0x18b6   :  { %6170 = vmatmul.mubr.msk.f32.gmra.mrb[90].mxu0 %vm90_vm0, %v4446_v54 }
0x18b7   :  { %v4448_v5 = vld [vmem:[#allocation2 + $0x28] sm:$0xff] }
0x18b8   :  { %v4447_v6 = vld [vmem:[#allocation2 + $0x20] sm:$0xff] }
0x18b9   :  { %6172 = vmatprep.mubr.msk.f32.mxu0 %vm90_vm0, %v4447_v6 }
0x18ba   :  { %6173 = vmatmul.mubr.msk.f32.gmra.mrb[92].mxu0 %vm90_vm0, %v4448_v5 }
0x18bb   :  { %v4450_v20 = vld [vmem:[#allocation2 + $0x38] sm:$0xff] }
0x18bc   :  { %v4449_v56 = vld [vmem:[#allocation2 + $0x30] sm:$0xff] }
0x18bd   :  { %6175 = vmatprep.mubr.msk.f32.mxu0 %vm90_vm0, %v4449_v56 }
0x18be   :  { %6176 = vmatmul.mubr.msk.f32.gmra.mrb[94].mxu0 %vm90_vm0, %v4450_v20 }
0x1985   :  { %v6168_v40 = vpop.f32.mrb[88].mxu0 }
0x1986   :  { %v4585_v2 = vadd.f32 %v6168_v40, %v8512_v24  ;;  %v4545_v34 = vpop.f32.mrb[89].mxu0 }
0x1987   :  { %v4584_v62 = vadd.f32 %v4545_v34, %v8514_v28 }
0x1988   :  { %v9317_v53 = vadd.f32 %v5322_v58, %v4585_v2 }
0x1989   :  { %v9319_v47 = vadd.f32 %v5322_v58, %v4584_v62  ;;  %v6171_v22 = vpop.f32.mrb[90].mxu0 }
0x198a   :  { %v4587_v38 = vadd.f32 %v6171_v22, %v8528_v13  ;;  %v4555_v0 = vpop.f32.mrb[91].mxu0  ;;  %v4609_v17 = vmul.f32 %v9317_v53, %v9317_v53  ;;  %v5323_v22 = vld [vmem:[%s9531_s15] ss:$0 sm:$0xff] }
0x198b   :  { %v4586_v60 = vadd.f32 %v4555_v0, %v8530_v7  ;;  %v4608_v29 = vmul.f32 %v9319_v47, %v9319_v47 }
0x198c   :  { %v9327_v24 = vadd.f32 %v5322_v58, %v4587_v38  ;;  %v4619_v28 = vsel %vm90_vm0, %v4609_v17, 0.0 }
0x198d   :  { %v9330_v19 = vadd.f32 %v5322_v58, %v4586_v60  ;;  %4620 = vadd.xlane.f32.xlu1 %v4619_v28  ;;  %v6174_v50 = vpop.f32.mrb[92].mxu0  ;;  %v4616_v33 = vsel %vm90_vm0, %v4608_v29, 0.0 }
0x198e   :  { %v4589_v13 = vadd.f32 %v6174_v50, %v8543_v59  ;;  %4617 = vadd.xlane.f32.xlu0 %v4616_v33  ;;  %v4565_v63 = vpop.f32.mrb[93].mxu0  ;;  %v4611_v7 = vmul.f32 %v9327_v24, %v9327_v24 }
0x198f   :  { %v4588_v44 = vadd.f32 %v4565_v63, %v8545_v18  ;;  %v4610_v43 = vmul.f32 %v9330_v19, %v9330_v19 }
0x1990   :  { %v9337_v4 = vadd.f32 %v5322_v58, %v4589_v13  ;;  %v4625_v61 = vsel %vm90_vm0, %v4611_v7, 0.0 }
0x1991   :  { %v9340_v10 = vadd.f32 %v5322_v58, %v4588_v44  ;;  %v6177_v14 = vpop.f32.mrb[94].mxu0  ;;  %v4622_v41 = vsel %vm90_vm0, %v4610_v43, 0.0 }
0x1992   :  { %v4591_v11 = vadd.f32 %v6177_v14, %v8572_v52  ;;  %4626 = vadd.xlane.f32.xlu0 %v4625_v61  ;;  %v4575_v59 = vpop.f32.mrb[95].mxu0  ;;  %v4613_v8 = vmul.f32 %v9337_v4, %v9337_v4 }
0x1993   :  { %v4590_v39 = vadd.f32 %v4575_v59, %v8574_v16  ;;  %v4612_v55 = vmul.f32 %v9340_v10, %v9340_v10 }
0x1994   :  { %v9348_v18 = vadd.f32 %v5322_v58, %v4591_v11  ;;  %v4631_v36 = vsel %vm90_vm0, %v4613_v8, 0.0 }
0x1995   :  { %v9351_v32 = vadd.f32 %v5322_v58, %v4590_v39  ;;  %4632 = vadd.xlane.f32.xlu1 %v4631_v36  ;;  %v4628_v16 = vsel %vm90_vm0, %v4612_v55, 0.0 }
0x1996   :  { %4623 = vadd.xlane.f32.xlu0 %v4622_v41  ;;  %v4615_v52 = vmul.f32 %v9348_v18, %v9348_v18 }
0x1997   :  { %v4614_v30 = vmul.f32 %v9351_v32, %v9351_v32 }
0x1998   :  { %v4637_v45 = vsel %vm90_vm0, %v4615_v52, 0.0 }
0x1999   :  { %4638 = vadd.xlane.f32.xlu1 %v4637_v45  ;;  %v4634_v15 = vsel %vm90_vm0, %v4614_v30, 0.0 }
0x199a   :  { %4629 = vadd.xlane.f32.xlu0 %v4628_v16 }
0x199e   :  { %4635 = vadd.xlane.f32.xlu0 %v4634_v15  ;;  %v4922_v15 = vld [vmem:[%s9532_s18] sm:$0xff] }
0x199f   :  { %v6586_v27 = vpack.c.bf16 %v4923_v48, %v4922_v15 }
0x19a1   :  { %6587 = vmatprep.subr.bf16.mxu0 %v6586_v27  ;;  %6602 = vmatprep.subr.bf16.mxu1 %v6586_v27 }
0x19a2   :  { %6589 = vmatpush3.bf16.msra.mxu0 %v6586_v27 }
0x19a3   :  { %6591 = vmatprep.subr.bf16.mxu0 %v6590_v51 }
0x19a6   :  { %6593 = vmatpush3.bf16.msra.mxu0 %v6590_v51 }
0x1a1a   :  { %v4621_v31 = vpop.xlane.xlu1 %4620 }
0x1a1b   :  { %v4641_v25 = vmul.f32 0.03125, %v4621_v31  ;;  %v4618_v1 = vpop.xlane.xlu0 %4617  ;;  %v4927_v31 = vld [vmem:[%s9532_s18 + $0x28] sm:$0xff] }
0x1a1c   :  { %v4640_v23 = vmul.f32 0.03125, %v4618_v1  ;;  %v4928_v1 = vld [vmem:[%s9532_s18 + $0x30] sm:$0xff] }
0x1a1d   :  { %v4649_v57 = vadd.f32 1.1920929e-07, %v4641_v25  ;;  %v6594_v25 = vpack.c.bf16 %v4927_v31, %v4926_v42 }
0x1a1e   :  { %v4648_v35 = vadd.f32 1.1920929e-07, %v4640_v23  ;;  %v4929_v23 = vld [vmem:[%s9532_s18 + $0x38] sm:$0xff] }
0x1a1f   :  { %7214 = vrsqrt.f32 %v4649_v57  ;;  %v4627_v49 = vpop.xlane.xlu0 %4626  ;;  %6595 = vmatprep.subr.bf16.mxu0 %v6594_v25  ;;  %v6598_v57 = vpack.c.bf16 %v4929_v23, %v4928_v1 }
0x1a20   :  { %7216 = vrsqrt.f32 %v4648_v35  ;;  %v4643_v46 = vmul.f32 0.03125, %v4627_v49  ;;  %6597 = vmatpush3.bf16.msra.mxu0 %v6594_v25  ;;  %v5324_v35 = vld [vmem:[%s9533_s17] ss:$0 sm:$0xff] }
0x1a21   :  { %6599 = vmatprep.subr.bf16.mxu0 %v6598_v57 }
0x1a22   :  { %v4651_v3 = vadd.f32 1.1920929e-07, %v4643_v46  ;;  %v4633_v21 = vpop.xlane.xlu1 %4632 }
0x1a23   :  { %v4645_v26 = vmul.f32 0.03125, %v4633_v21  ;;  %v4624_v37 = vpop.xlane.xlu0 %4623 }
0x1a24   :  { %v4642_v54 = vmul.f32 0.03125, %v4624_v37  ;;  %7218 = vrsqrt.f32 %v4651_v3  ;;  %6601 = vmatpush3.bf16.msra.mxu0 %v6598_v57 }
0x1a25   :  { %v4653_v6 = vadd.f32 1.1920929e-07, %v4645_v26 }
0x1a26   :  { %v4650_v5 = vadd.f32 1.1920929e-07, %v4642_v54  ;;  %v4639_v56 = vpop.xlane.xlu1 %4638 }
0x1a27   :  { %v4647_v20 = vmul.f32 0.03125, %v4639_v56  ;;  %v4630_v40 = vpop.xlane.xlu0 %4629 }
0x1a28   :  { %7220 = vrsqrt.f32 %v4650_v5  ;;  %v4644_v58 = vmul.f32 0.03125, %v4630_v40 }
0x1a29   :  { %v7215_v2 = vpop.eup %7214  ;;  %7222 = vrsqrt.f32 %v4653_v6  ;;  %v4655_v34 = vadd.f32 1.1920929e-07, %v4647_v20 }
0x1a2a   :  { %v7217_v62 = vpop.eup %7216  ;;  %v4665_v38 = vmul.f32 %v7215_v2, %v9317_v53  ;;  %v4652_v0 = vadd.f32 1.1920929e-07, %v4644_v58 }
0x1a2b   :  { %v4636_v17 = vpop.xlane.xlu0 %4635  ;;  %v4664_v60 = vmul.f32 %v7217_v62, %v9319_v47 }
0x1a2c   :  { %7224 = vrsqrt.f32 %v4652_v0  ;;  %v4646_v29 = vmul.f32 0.03125, %v4636_v17  ;;  %v4679_v50 = vmul.f32 %v5323_v22, %v4665_v38 }
0x1a2d   :  { %7226 = vrsqrt.f32 %v4655_v34  ;;  %v4678_v28 = vmul.f32 %v5323_v22, %v4664_v60 }
0x1a2e   :  { %v4654_v33 = vadd.f32 1.1920929e-07, %v4646_v29  ;;  %v7219_v13 = vpop.eup %7218 }
0x1a2f   :  { %6186 = vmatprep.mubr.msk.f32.mxu1 %vm90_vm0, %v4678_v28  ;;  %v4667_v7 = vmul.f32 %v7219_v13, %v9327_v24 }
0x1a30   :  { %7228 = vrsqrt.f32 %v4654_v33  ;;  %6187 = vmatmul.mubr.msk.f32.vlgmr.msra.gmra.mrb[72].mxu1 %vm90_vm0, %v4679_v50 }
0x1a31   :  { %v4681_v11 = vmul.f32 %v5323_v22, %v4667_v7  ;;  %6606 = vmatpush3.bf16.msra.mxu1 %v6586_v27 }
0x1a32   :  { %v7221_v63 = vpop.eup %7220  ;;  %6603 = vmatprep.subr.bf16.mxu1 %v6590_v51 }
0x1a33   :  { %v7223_v44 = vpop.eup %7222  ;;  %v4666_v61 = vmul.f32 %v7221_v63, %v9330_v19 }
0x1a34   :  { %v4669_v59 = vmul.f32 %v7223_v44, %v9337_v4 }
0x1a35   :  { %v4680_v14 = vmul.f32 %v5323_v22, %v4666_v61  ;;  %6607 = vmatpush3.bf16.msra.mxu1 %v6590_v51 }
0x1a36   :  { %v7225_v43 = vpop.eup %7224  ;;  %v4683_v55 = vmul.f32 %v5323_v22, %v4669_v59  ;;  %6604 = vmatprep.subr.bf16.mxu1 %v6594_v25 }
0x1a37   :  { %v7227_v8 = vpop.eup %7226  ;;  %6189 = vmatprep.mubr.msk.f32.mxu1 %vm90_vm0, %v4680_v14  ;;  %v4668_v39 = vmul.f32 %v7225_v43, %v9340_v10 }
0x1a38   :  { %6190 = vmatmul.mubr.msk.f32.gmra.mrb[74].mxu1 %vm90_vm0, %v4681_v11  ;;  %v4671_v52 = vmul.f32 %v7227_v8, %v9348_v18 }
0x1a39   :  { %v4682_v36 = vmul.f32 %v5323_v22, %v4668_v39  ;;  %6608 = vmatpush3.bf16.msra.mxu1 %v6594_v25 }
0x1a3a   :  { %v7229_v41 = vpop.eup %7228  ;;  %v4685_v30 = vmul.f32 %v5323_v22, %v4671_v52  ;;  %6605 = vmatprep.subr.bf16.mxu1 %v6598_v57 }
0x1a3b   :  { %6192 = vmatprep.mubr.msk.f32.mxu1 %vm90_vm0, %v4682_v36  ;;  %v4670_v45 = vmul.f32 %v7229_v41, %v9351_v32 }
0x1a3c   :  { %6193 = vmatmul.mubr.msk.f32.gmra.mrb[76].mxu1 %vm90_vm0, %v4683_v55 }
0x1a3d   :  { %v4684_v16 = vmul.f32 %v5323_v22, %v4670_v45  ;;  %6609 = vmatpush3.bf16.msra.mxu1 %v6598_v57 }
0x1a3f   :  { %6195 = vmatprep.mubr.msk.f32.mxu1 %vm90_vm0, %v4684_v16 }
0x1a40   :  { %6196 = vmatmul.mubr.msk.f32.gmra.mrb[78].mxu1 %vm90_vm0, %v4685_v30 }
0x1b03   :  { %v6188_v49 = vpop.f32.mrb[72].mxu1 }
0x1b04   :  { %v9421_v46 = vadd.f32 %v6188_v49, %v5324_v35  ;;  %v4787_v3 = vpop.f32.mrb[73].mxu1 }
0x1b05   :  { %v4788_v21 = vadd.f32 %v5324_v35, %v4787_v3 }
0x1b06   :  { %4892 = vrot.lane.b32.xlu1 %v9421_v46, %s7288_s0  ;;  %v5334_v38 = vmul.f32 -1.442695, %v9421_v46 }
0x1b07   :  { %4890 = vrot.lane.b32.xlu0 %v4788_v21, %s7288_s0  ;;  %v5333_v22 = vmul.f32 -1.442695, %v4788_v21 }
0x1b09   :  { %7230 = vpow2.f32 %v5333_v22 }
0x1b0a   :  { %7232 = vpow2.f32 %v5334_v38 }
0x1b0b   :  { %v6191_v26 = vpop.f32.mrb[74].mxu1 }
0x1b0c   :  { %v9426_v37 = vadd.f32 %v6191_v26, %v5324_v35  ;;  %v4797_v54 = vpop.f32.mrb[75].mxu1 }
0x1b0d   :  { %v9430_v5 = vadd.f32 %v5324_v35, %v4797_v54 }
0x1b0e   :  { %4896 = vrot.lane.b32.xlu1 %v9426_v37, %s7288_s0  ;;  %v5336_v0 = vmul.f32 -1.442695, %v9426_v37 }
0x1b0f   :  { %v6194_v6 = vpop.f32.mrb[76].mxu1  ;;  %v5335_v17 = vmul.f32 -1.442695, %v9430_v5 }
0x1b10   :  { %v4807_v56 = vpop.f32.mrb[77].mxu1  ;;  %v9438_v2 = vadd.f32 %v6194_v6, %v5324_v35  ;;  %7234 = vpow2.f32 %v5336_v0 }
0x1b11   :  { %v9432_v20 = vadd.f32 %v5324_v35, %v4807_v56  ;;  %7236 = vpow2.f32 %v5335_v17 }
0x1b12   :  { %4894 = vrot.lane.b32.xlu1 %v9430_v5, %s7288_s0  ;;  %v5338_v50 = vmul.f32 -1.442695, %v9438_v2 }
0x1b13   :  { %4898 = vrot.lane.b32.xlu0 %v9432_v20, %s7288_s0  ;;  %v6197_v40 = vpop.f32.mrb[78].mxu1  ;;  %v5337_v60 = vmul.f32 -1.442695, %v9432_v20  ;;  %v7231_v29 = vpop.eup %7230 }
0x1b14   :  { %v4817_v58 = vpop.f32.mrb[79].mxu1  ;;  %v9446_v62 = vadd.f32 %v6197_v40, %v5324_v35  ;;  %v7233_v28 = vpop.eup %7232  ;;  %v4850_v13 = vadd.f32 1.0, %v7231_v29 }
0x1b15   :  { %v9440_v34 = vadd.f32 %v5324_v35, %v4817_v58  ;;  %7238 = vpow2.f32 %v5337_v60  ;;  %v4851_v63 = vadd.f32 1.0, %v7233_v28 }
0x1b16   :  { %7240 = vpow2.f32 %v5338_v50  ;;  %v5340_v7 = vmul.f32 -1.442695, %v9446_v62 }
0x1b17   :  { %4900 = vrot.lane.b32.xlu0 %v9438_v2, %s7288_s0  ;;  %4902 = vrot.lane.b32.xlu1 %v9440_v34, %s7288_s0  ;;  %v5339_v33 = vmul.f32 -1.442695, %v9440_v34 }
0x1b19   :  { %7242 = vpow2.f32 %v5339_v33 }
0x1b1a   :  { %7244 = vrcp.f32 %v4850_v13  ;;  %v7235_v44 = vpop.eup %7234 }
0x1b1b   :  { %4904 = vrot.lane.b32.xlu1 %v9446_v62, %s7288_s0  ;;  %7246 = vrcp.f32 %v4851_v63  ;;  %v7237_v61 = vpop.eup %7236  ;;  %v4853_v43 = vadd.f32 1.0, %v7235_v44 }
0x1b1c   :  { %7248 = vpow2.f32 %v5340_v7  ;;  %v4852_v11 = vadd.f32 1.0, %v7237_v61 }
0x1b1d   :  { %7250 = vrcp.f32 %v4853_v43 }
0x1b1e   :  { %7252 = vrcp.f32 %v4852_v11 }
0x1b1f   :  { %v7239_v14 = vpop.eup %7238 }
0x1b20   :  { %v7241_v59 = vpop.eup %7240  ;;  %v4854_v8 = vadd.f32 1.0, %v7239_v14 }
0x1b21   :  { %v4855_v55 = vadd.f32 1.0, %v7241_v59 }
0x1b22   :  { %7254 = vrcp.f32 %v4854_v8 }
0x1b23   :  { %v7243_v39 = vpop.eup %7242  ;;  %7256 = vrcp.f32 %v4855_v55 }
0x1b24   :  { %v7245_v36 = vpop.eup %7244  ;;  %v4856_v52 = vadd.f32 1.0, %v7243_v39 }
0x1b25   :  { %v7247_v41 = vpop.eup %7246  ;;  %v4874_v30 = vmul.f32 %v7245_v36, %v4788_v21 }
0x1b26   :  { %v7249_v45 = vpop.eup %7248  ;;  %v4875_v15 = vmul.f32 %v7247_v41, %v9421_v46  ;;  %7258 = vrcp.f32 %v4856_v52 }
0x1b27   :  { %v4857_v27 = vadd.f32 1.0, %v7249_v45  ;;  %v7251_v51 = vpop.eup %7250 }
0x1b28   :  { %v7253_v42 = vpop.eup %7252  ;;  %v4877_v57 = vmul.f32 %v7251_v51, %v9426_v37 }
0x1b29   :  { %7260 = vrcp.f32 %v4857_v27  ;;  %v4876_v1 = vmul.f32 %v7253_v42, %v9430_v5 }
0x1b2c   :  { %v7255_v25 = vpop.eup %7254 }
0x1b2d   :  { %v7257_v23 = vpop.eup %7256  ;;  %v4878_v49 = vmul.f32 %v7255_v25, %v9432_v20 }
0x1b2e   :  { %v4879_v56 = vmul.f32 %v7257_v23, %v9438_v2  ;;  %v5349_v2 = vld [vmem:[%s9534_s19] ss:$0 sm:$0xff] }
0x1b30   :  { %v7259_v46 = vpop.eup %7258 }
0x1b31   :  { %v4880_v6 = vmul.f32 %v7259_v46, %v9440_v34 }
0x1b33   :  { %v7261_v5 = vpop.eup %7260 }
0x1b34   :  { %v4881_v22 = vmul.f32 %v7261_v5, %v9446_v62 }
0x1b78   :  { %v4893_v16 = vpop.permute.xlu1 %4892 }
0x1b79   :  { %v4891_v48 = vpop.permute.xlu0 %4890  ;;  %v4915_v9 = vmul.f32 %v4893_v16, %v4875_v15 }
0x1b7a   :  { %v4914_v12 = vmul.f32 %v4891_v48, %v4874_v30 }
0x1b7c   :  { %6214 = vmatprep.mubr.msk.f32.mxu0 %vm705_vm3, %v4914_v12 }
0x1b7d   :  { %6215 = vmatmul.mubr.msk.f32.vlgmr.msra.gmra.mrb[96].mxu0 %vm705_vm3, %v4915_v9 }
0x1b80   :  { %v4897_v31 = vpop.permute.xlu1 %4896 }
0x1b81   :  { %v4917_v26 = vmul.f32 %v4897_v31, %v4877_v57 }
0x1b84   :  { %v4895_v35 = vpop.permute.xlu1 %4894 }
0x1b85   :  { %v4916_v3 = vmul.f32 %v4895_v35, %v4876_v1  ;;  %v4899_v21 = vpop.permute.xlu0 %4898 }
0x1b86   :  { %v4918_v54 = vmul.f32 %v4899_v21, %v4878_v49 }
0x1b87   :  { %6217 = vmatprep.mubr.msk.f32.mxu0 %vm705_vm3, %v4916_v3 }
0x1b88   :  { %6218 = vmatmul.mubr.msk.f32.gmra.mrb[98].mxu0 %vm705_vm3, %v4917_v26 }
0x1b89   :  { %v4903_v40 = vpop.permute.xlu1 %4902  ;;  %6220 = vmatprep.mubr.msk.f32.mxu0 %vm705_vm3, %v4918_v54  ;;  %v4901_v37 = vpop.permute.xlu0 %4900 }
0x1b8a   :  { %v4920_v58 = vmul.f32 %v4903_v40, %v4880_v6  ;;  %v4919_v20 = vmul.f32 %v4901_v37, %v4879_v56 }
0x1b8c   :  { %6221 = vmatmul.mubr.msk.f32.gmra.mrb[100].mxu0 %vm705_vm3, %v4919_v20  ;;  %6223 = vmatprep.mubr.msk.f32.mxu1 %vm705_vm3, %v4920_v58 }
0x1b8d   :  { %v4905_v38 = vpop.permute.xlu1 %4904 }
0x1b8e   :  { %v4921_v0 = vmul.f32 %v4905_v38, %v4881_v22 }
0x1b90   :  { %6224 = vmatmul.mubr.msk.f32.vlgmr.msra.gmra.mrb[80].mxu1 %vm705_vm3, %v4921_v0 }
0x1c50   :  { %v6216_v34 = vpop.f32.mrb[96].mxu0 }
0x1c51   :  { %v5060_v17 = vadd.f32 %v6216_v34, %v9317_v53  ;;  %v5020_v60 = vpop.f32.mrb[97].mxu0 }
0x1c52   :  { %v5059_v29 = vadd.f32 %v5020_v60, %v9319_v47 }
0x1c53   :  { %v5075_v28 = vadd.f32 %v5349_v2, %v5060_v17 }
0x1c54   :  { %v5074_v50 = vadd.f32 %v5349_v2, %v5059_v29 }
0x1c55   :  { %5083 = vst.msk [vmem:[%s9535_s20 + $0x8] sm:$0xff] %vm90_vm0, %v5075_v28 }
0x1c56   :  { %5082 = vst.msk [vmem:[%s9535_s20] sm:$0xff] %vm90_vm0, %v5074_v50 }
0x1c5b   :  { %v6219_v62 = vpop.f32.mrb[98].mxu0 }
0x1c5c   :  { %v5062_v33 = vadd.f32 %v6219_v62, %v9327_v24  ;;  %v5030_v13 = vpop.f32.mrb[99].mxu0 }
0x1c5d   :  { %v5061_v53 = vadd.f32 %v5030_v13, %v9330_v19 }
0x1c5e   :  { %v5077_v63 = vadd.f32 %v5349_v2, %v5062_v33 }
0x1c5f   :  { %v5076_v47 = vadd.f32 %v5349_v2, %v5061_v53  ;;  %v6222_v7 = vpop.f32.mrb[100].mxu0 }
0x1c60   :  { %5085 = vst.msk [vmem:[%s9535_s20 + $0x18] sm:$0xff] %vm90_vm0, %v5077_v63  ;;  %v5064_v44 = vadd.f32 %v6222_v7, %v9337_v4  ;;  %v5040_v61 = vpop.f32.mrb[101].mxu0 }
0x1c61   :  { %5084 = vst.msk [vmem:[%s9535_s20 + $0x10] sm:$0xff] %vm90_vm0, %v5076_v47  ;;  %v5063_v24 = vadd.f32 %v5040_v61, %v9340_v10 }
0x1c62   :  { %v5079_v14 = vadd.f32 %v5349_v2, %v5064_v44 }
0x1c63   :  { %v5078_v19 = vadd.f32 %v5349_v2, %v5063_v24  ;;  %v6225_v43 = vpop.f32.mrb[80].mxu1 }
0x1c64   :  { %5087 = vst.msk [vmem:[%s9535_s20 + $0x28] sm:$0xff] %vm90_vm0, %v5079_v14  ;;  %v5066_v11 = vadd.f32 %v6225_v43, %v9348_v18  ;;  %v5050_v59 = vpop.f32.mrb[81].mxu1 }
0x1c65   :  { %5086 = vst.msk [vmem:[%s9535_s20 + $0x20] sm:$0xff] %vm90_vm0, %v5078_v19  ;;  %v5065_v4 = vadd.f32 %v5050_v59, %v9351_v32 }
0x1c66   :  { %v5081_v8 = vadd.f32 %v5349_v2, %v5066_v11 }
0x1c67   :  { %v5080_v10 = vadd.f32 %v5349_v2, %v5065_v4 }
0x1c68   :  { %5089 = vst.msk [vmem:[%s9535_s20 + $0x38] sm:$0xff] %vm90_vm0, %v5081_v8 }
0x1c69   :  { %5088 = vst.msk [vmem:[%s9535_s20 + $0x30] sm:$0xff] %vm90_vm0, %v5080_v10 }

</bundles_post_ra>
